<compile_context>
chip_gen: v7x
topology: tpu7x:2x2x1
jax: 0.10.0
libtpu: 0.0.40
codegen_flags: <defaults>
</compile_context>

<pallas_src>
import functools

import numpy as np
import jax
import jax.numpy as jnp
from jax.experimental import pallas as pl
from jax.experimental.pallas import tpu as pltpu

_PREC = jax.lax.Precision.HIGHEST   # reference ("ground truth") only


# ----------------------------- Pallas kernel ------------------------------- #
def _inception_resnet_a_kernel(
    x_ref,
    w_stem, b_stem,              # fused stem: [branch_1x1 | 3x3-stem | 3x3db-stem]
    w2b, b2b,                    # branch_3x3    second conv  (9*f1, f2)
    w3b, b3b,                    # branch_3x3db  second conv  (9*f3, f4)
    w3c, b3c,                    # branch_3x3db  third  conv  (9*f4, f5)
    w_up, b_up,                  # up_channel 1x1 conv, rows ordered [f0|f2|f5]
    out_ref,
    pad_ref,                     # scratch: (H+2, W+2, Cmax) f32 padded buffer
    *, scale, stem_split, up_split):
  _, H, W, Cin = x_ref.shape
  HW = H * W
  Hp, Wp, Cp = pad_ref.shape
  f0, f1, f3 = stem_split
  uf0, uf2, _ = up_split
  bf16 = jnp.bfloat16

  # Zero only the 1-pixel border of the shared padded scratch (the interior is
  # fully overwritten by each conv3x3 before it is read).  Done every grid
  # step so the batch axis can safely be "parallel" on multi-core chips.
  pad_ref[0:1, :, :] = jnp.zeros((1, Wp, Cp), jnp.float32)
  pad_ref[Hp - 1:Hp, :, :] = jnp.zeros((1, Wp, Cp), jnp.float32)
  pad_ref[:, 0:1, :] = jnp.zeros((Hp, 1, Cp), jnp.float32)
  pad_ref[:, Wp - 1:Wp, :] = jnp.zeros((Hp, 1, Cp), jnp.float32)

  def mm(a, w):
    # bf16 x bf16 operands, f32 accumulation on the MXU.
    return jnp.dot(a, w, preferred_element_type=jnp.float32)

  relu = lambda v: jnp.maximum(v, 0.0)

  def conv3x3_relu(a_hwc, w_ref, b_ref):
    """'same' 3x3 conv as ONE im2col matmul with K = 9 * c_in."""
    c_in = a_hwc.shape[-1]
    pad_ref[1:H + 1, 1:W + 1, :c_in] = a_hwc
    taps = [pad_ref[ky:ky + H, kx:kx + W, :c_in].astype(bf16)
            for ky in range(3) for kx in range(3)]
    patch = jnp.concatenate(taps, axis=-1).reshape(HW, 9 * c_in)
    return relu(mm(patch, w_ref[...]) + b_ref[...])           # (HW, c_out) f32

  # Fused stem: all three 1x1 convs read x, so run them as one matmul.
  x_bf = x_ref[0].reshape(HW, Cin).astype(bf16)
  stem = relu(mm(x_bf, w_stem[...]) + b_stem[...])            # (HW, f0+f1+f3)

  # up_channel projection accumulated incrementally so each branch activation
  # dies right after it is consumed.
  acc = mm(stem[:, :f0].astype(bf16), w_up[:uf0, :]) + b_up[...]      # (HW, Cin)

  # branch_3x3
  br3 = conv3x3_relu(stem[:, f0:f0 + f1].reshape(H, W, f1), w2b, b2b)
  acc = acc + mm(br3.astype(bf16), w_up[uf0:uf0 + uf2, :])

  # branch_3x3db
  h = conv3x3_relu(stem[:, f0 + f1:].reshape(H, W, f3), w3b, b3b)
  br3db = conv3x3_relu(h.reshape(H, W, -1), w3c, b3c)
  acc = acc + mm(br3db.astype(bf16), w_up[uf0 + uf2:, :])

  # residual: re-read x (f32) here so it is not held live across the branches.
  res = x_ref[0].reshape(HW, Cin)
  out_ref[0] = relu(acc * scale + res).reshape(H, W, Cin)


# ------------------------------ JAX wrapper -------------------------------- #
def inception_resnet_a_pallas(x_nchw, params, scale=0.1):
  x = jnp.transpose(x_nchw, (0, 2, 3, 1)).astype(jnp.float32)   # NCHW -> NHWC
  N, H, W, Cin = x.shape
  ((w1, b1), (w2a, b2a), (w2b, b2b), (w3a, b3a), (w3b, b3b), (w3c, b3c),
   (wu1, wu2, wu3, bu)) = params

  f0, f1, f2 = w1.shape[-1], w2a.shape[-1], w2b.shape[-1]
  f3, f4, f5 = w3a.shape[-1], w3b.shape[-1], w3c.shape[-1]
  bf16 = jnp.bfloat16

  # Host-side weight fusion / im2col reshapes (free; done once under jit).
  w_stem = jnp.concatenate([w1, w2a, w3a], axis=1).astype(bf16)   # (Cin, f0+f1+f3)
  b_stem = jnp.concatenate([b1, b2a, b3a], axis=1)                # (1, f0+f1+f3)
  w2b9 = w2b.reshape(9 * f1, f2).astype(bf16)
  w3b9 = w3b.reshape(9 * f3, f4).astype(bf16)
  w3c9 = w3c.reshape(9 * f4, f5).astype(bf16)
  w_up = jnp.concatenate([wu1, wu2, wu3], axis=0).astype(bf16)    # (f0+f2+f5, Cin)

  weights = [w_stem, b_stem, w2b9, b2b, w3b9, b3b, w3c9, b3c, w_up, bu]
  c_pad = max(f1, f3, f4)

  def full_spec(shape):
    return pl.BlockSpec(shape, lambda n, _nd=len(shape): (0,) * _nd)

  in_specs = [pl.BlockSpec((1, H, W, Cin), lambda n: (n, 0, 0, 0))]
  in_specs += [full_spec(w.shape) for w in weights]

  kernel = functools.partial(
      _inception_resnet_a_kernel, scale=scale,
      stem_split=(f0, f1, f3), up_split=(f0, f2, f5))

  out = pl.pallas_call(
      kernel,
      out_shape=jax.ShapeDtypeStruct((N, H, W, Cin), jnp.float32),
      grid_spec=pltpu.PrefetchScalarGridSpec(
          num_scalar_prefetch=0,
          grid=(N,),
          in_specs=in_specs,
          out_specs=pl.BlockSpec((1, H, W, Cin), lambda n: (n, 0, 0, 0)),
          scratch_shapes=[pltpu.VMEM((H + 2, W + 2, c_pad), jnp.float32)],
      ),
      compiler_params=pltpu.CompilerParams(
          dimension_semantics=("parallel",)),   # 2 TCs on v7x; serial elsewhere
  )(x, *weights)
  return jnp.transpose(out, (0, 3, 1, 2))                        # NHWC -> NCHW


# ----------------------- deterministic parameter init ---------------------- #
def conv_bn_params(key, cin, cout, ksize):
  """Conv2d + BatchNorm2d(eval) folded into one (weight, bias)."""
  kh, kw = ksize
  k1, k2, k3, k4, k5, k6 = jax.random.split(key, 6)
  w = jax.random.normal(k1, (cout, cin, kh, kw), jnp.float32) / np.sqrt(
      cin * kh * kw)
  b = 0.05 * jax.random.normal(k2, (cout,), jnp.float32)
  gamma = 1.0 + 0.1 * jax.random.normal(k3, (cout,), jnp.float32)
  beta = 0.1 * jax.random.normal(k4, (cout,), jnp.float32)
  mean = 0.1 * jax.random.normal(k5, (cout,), jnp.float32)
  var = 1.0 + 0.1 * jnp.abs(jax.random.normal(k6, (cout,), jnp.float32))
  s = gamma / jnp.sqrt(var + 1e-5)
  w_f = w * s[:, None, None, None]
  b_f = (b - mean) * s + beta
  w_k = jnp.transpose(w_f, (2, 3, 1, 0))          # (kh, kw, cin, cout)
  if (kh, kw) == (1, 1):
    w_k = w_k[0, 0]                               # (cin, cout)
  return w_k, b_f.reshape(1, cout)


def conv1x1_params(key, cin, cout):
  k1, k2 = jax.random.split(key)
  w = jax.random.normal(k1, (cout, cin, 1, 1), jnp.float32) / np.sqrt(cin)
  b = 0.05 * jax.random.normal(k2, (cout,), jnp.float32)
  w_k = jnp.transpose(w, (2, 3, 1, 0))[0, 0]      # (cin, cout)
  return w_k, b.reshape(1, cout)


# ------------------------------ JAX reference ------------------------------ #
def _conv_ref(x, w_k, b):
  w4 = w_k[None, None] if w_k.ndim == 2 else w_k
  y = jax.lax.conv_general_dilated(
      x, w4, (1, 1), "SAME",
      dimension_numbers=("NHWC", "HWIO", "NHWC"), precision=_PREC)
  return y + b.reshape(1, 1, 1, -1)


def reference_forward(x_nchw, params, scale):
  x = jnp.transpose(x_nchw, (0, 2, 3, 1))
  ((w1, b1), (w2a, b2a), (w2b, b2b), (w3a, b3a), (w3b, b3b), (w3c, b3c),
   (wu1, wu2, wu3, bu)) = params
  relu = lambda t: jnp.maximum(t, 0.0)
  br1 = relu(_conv_ref(x, w1, b1))
  h = relu(_conv_ref(x, w2a, b2a))
  br3 = relu(_conv_ref(h, w2b, b2b))
  h = relu(_conv_ref(x, w3a, b3a))
  h = relu(_conv_ref(h, w3b, b3b))
  br3db = relu(_conv_ref(h, w3c, b3c))
  cat = jnp.concatenate([br1, br3, br3db], axis=-1)
  wu = jnp.concatenate([wu1, wu2, wu3], axis=0)
  up = _conv_ref(cat, wu, bu) * scale
  out = relu(up + x)
  return jnp.transpose(out, (0, 3, 1, 2))


# ----------------------------------- main ----------------------------------- #
if __name__ == "__main__":
  N, Cin, H, W = 2, 32, 16, 16
  # num_filters = [f0, f1, f2, f3, f4, f5, f6];  f6 must equal Cin (residual).
  num_filters = [16, 16, 24, 16, 24, 32, Cin]
  scale = 0.1

  keys = jax.random.split(jax.random.PRNGKey(0), 8)
  x = jax.random.normal(keys[0], (N, Cin, H, W), jnp.float32)

  p1 = conv_bn_params(keys[1], Cin, num_filters[0], (1, 1))
  p2a = conv_bn_params(keys[2], Cin, num_filters[1], (1, 1))
  p2b = conv_bn_params(keys[3], num_filters[1], num_filters[2], (3, 3))
  p3a = conv_bn_params(keys[4], Cin, num_filters[3], (1, 1))
  p3b = conv_bn_params(keys[5], num_filters[3], num_filters[4], (3, 3))
  p3c = conv_bn_params(keys[6], num_filters[4], num_filters[5], (3, 3))
  cat_c = num_filters[0] + num_filters[2] + num_filters[5]
  wu, bu = conv1x1_params(keys[7], cat_c, num_filters[6])
  f0, f2 = num_filters[0], num_filters[2]
  wu1, wu2, wu3 = wu[:f0], wu[f0:f0 + f2], wu[f0 + f2:]

  params = (p1, p2a, p2b, p3a, p3b, p3c, (wu1, wu2, wu3, bu))

  out = inception_resnet_a_pallas(x, params, scale=scale)
  out = jax.block_until_ready(out)

  ref = jax.block_until_ready(reference_forward(x, params, scale))
  # Kernel uses bf16 matmul operands with f32 accumulation; tolerance relaxed
  # accordingly (reference is f32 / HIGHEST precision).
  np.testing.assert_allclose(np.asarray(out), np.asarray(ref),
                             rtol=2e-2, atol=2e-2)
  print("KERNEL_OK")
</pallas_src>

<mosaic_0001>
module attributes {stable_mosaic.version = 11 : i64} {
  func.func @_inception_resnet_a_kernel(%arg0: i32, %arg1: memref<1x16x16x32xf32, #tpu.memory_space<vmem>>, %arg2: memref<32x48xbf16, #tpu.memory_space<vmem>>, %arg3: memref<1x48xf32, #tpu.memory_space<vmem>>, %arg4: memref<144x24xbf16, #tpu.memory_space<vmem>>, %arg5: memref<1x24xf32, #tpu.memory_space<vmem>>, %arg6: memref<144x24xbf16, #tpu.memory_space<vmem>>, %arg7: memref<1x24xf32, #tpu.memory_space<vmem>>, %arg8: memref<216x32xbf16, #tpu.memory_space<vmem>>, %arg9: memref<1x32xf32, #tpu.memory_space<vmem>>, %arg10: memref<72x32xbf16, #tpu.memory_space<vmem>>, %arg11: memref<1x32xf32, #tpu.memory_space<vmem>>, %arg12: memref<1x16x16x32xf32, #tpu.memory_space<vmem>>, %arg13: memref<18x18x24xf32, #tpu.memory_space<vmem>>) attributes {dimension_semantics = [#tpu.dimension_semantics<parallel>], iteration_bounds = array<i64: 2>, scalar_prefetch = 0 : i64, scratch_operands = 1 : i64, tpu.core_type = #tpu.core_type<tc>, window_params = [{transform_indices = @transform_0, window_bounds = array<i64: 1, 16, 16, 32>}, {pipeline_mode = #tpu.pipeline_mode<synchronous>, transform_indices = @transform_1, window_bounds = array<i64: 32, 48>}, {pipeline_mode = #tpu.pipeline_mode<synchronous>, transform_indices = @transform_2, window_bounds = array<i64: 1, 48>}, {pipeline_mode = #tpu.pipeline_mode<synchronous>, transform_indices = @transform_3, window_bounds = array<i64: 144, 24>}, {pipeline_mode = #tpu.pipeline_mode<synchronous>, transform_indices = @transform_4, window_bounds = array<i64: 1, 24>}, {pipeline_mode = #tpu.pipeline_mode<synchronous>, transform_indices = @transform_5, window_bounds = array<i64: 144, 24>}, {pipeline_mode = #tpu.pipeline_mode<synchronous>, transform_indices = @transform_6, window_bounds = array<i64: 1, 24>}, {pipeline_mode = #tpu.pipeline_mode<synchronous>, transform_indices = @transform_7, window_bounds = array<i64: 216, 32>}, {pipeline_mode = #tpu.pipeline_mode<synchronous>, transform_indices = @transform_8, window_bounds = array<i64: 1, 32>}, {pipeline_mode = #tpu.pipeline_mode<synchronous>, transform_indices = @transform_9, window_bounds = array<i64: 72, 32>}, {pipeline_mode = #tpu.pipeline_mode<synchronous>, transform_indices = @transform_10, window_bounds = array<i64: 1, 32>}, {transform_indices = @transform_11, window_bounds = array<i64: 1, 16, 16, 32>}]} {
    %cst = arith.constant 0.000000e+00 : f32
    %0 = vector.broadcast %cst : f32 to vector<1x18x24xf32>
    %c0 = arith.constant 0 : index
    %c0_0 = arith.constant 0 : index
    %c0_1 = arith.constant 0 : index
    %1 = vector.load %arg13[%c0, %c0_0, %c0_1] : memref<18x18x24xf32, #tpu.memory_space<vmem>>, vector<1x18x24xf32>
    tpu.vector_store %arg13[%c0, %c0_0, %c0_1], %0 {strides = array<i32>} : memref<18x18x24xf32, #tpu.memory_space<vmem>>, vector<1x18x24xf32>,
    %cst_2 = arith.constant 0.000000e+00 : f32
    %2 = vector.broadcast %cst_2 : f32 to vector<1x18x24xf32>
    %c17 = arith.constant 17 : index
    %c0_3 = arith.constant 0 : index
    %c0_4 = arith.constant 0 : index
    %3 = vector.load %arg13[%c17, %c0_3, %c0_4] : memref<18x18x24xf32, #tpu.memory_space<vmem>>, vector<1x18x24xf32>
    tpu.vector_store %arg13[%c17, %c0_3, %c0_4], %2 {strides = array<i32>} : memref<18x18x24xf32, #tpu.memory_space<vmem>>, vector<1x18x24xf32>,
    %cst_5 = arith.constant 0.000000e+00 : f32
    %4 = vector.broadcast %cst_5 : f32 to vector<18x1x24xf32>
    %c0_6 = arith.constant 0 : index
    %c0_7 = arith.constant 0 : index
    %c0_8 = arith.constant 0 : index
    %5 = vector.load %arg13[%c0_6, %c0_7, %c0_8] : memref<18x18x24xf32, #tpu.memory_space<vmem>>, vector<18x1x24xf32>
    tpu.vector_store %arg13[%c0_6, %c0_7, %c0_8], %4 {strides = array<i32>} : memref<18x18x24xf32, #tpu.memory_space<vmem>>, vector<18x1x24xf32>,
    %cst_9 = arith.constant 0.000000e+00 : f32
    %6 = vector.broadcast %cst_9 : f32 to vector<18x1x24xf32>
    %c0_10 = arith.constant 0 : index
    %c17_11 = arith.constant 17 : index
    %c0_12 = arith.constant 0 : index
    %7 = vector.load %arg13[%c0_10, %c17_11, %c0_12] : memref<18x18x24xf32, #tpu.memory_space<vmem>>, vector<18x1x24xf32>
    tpu.vector_store %arg13[%c0_10, %c17_11, %c0_12], %6 {strides = array<i32>} : memref<18x18x24xf32, #tpu.memory_space<vmem>>, vector<18x1x24xf32>,
    %c0_13 = arith.constant 0 : index
    %c0_14 = arith.constant 0 : index
    %c0_15 = arith.constant 0 : index
    %c0_16 = arith.constant 0 : index
    %8 = vector.load %arg1[%c0_13, %c0_14, %c0_15, %c0_16] : memref<1x16x16x32xf32, #tpu.memory_space<vmem>>, vector<1x16x16x32xf32>
    %9 = vector.shape_cast %8 : vector<1x16x16x32xf32> to vector<16x16x32xf32>
    %10 = vector.shape_cast %9 : vector<16x16x32xf32> to vector<256x32xf32>
    %11 = arith.truncf %10 : vector<256x32xf32> to vector<256x32xbf16>
    %c0_17 = arith.constant 0 : index
    %c0_18 = arith.constant 0 : index
    %12 = vector.load %arg2[%c0_17, %c0_18] : memref<32x48xbf16, #tpu.memory_space<vmem>>, vector<32x48xbf16>
    %cst_19 = arith.constant dense<0.000000e+00> : vector<256x48xf32>
    %13 = tpu.matmul %11, %12, %cst_19 {dimension_numbers = #tpu.dot_dimension_numbers<[1], [0], [0], [1], [0, 0, 1, 1], [], []>} : vector<256x32xbf16>, vector<32x48xbf16>, vector<256x48xf32> -> vector<256x48xf32>
    %c0_20 = arith.constant 0 : index
    %c0_21 = arith.constant 0 : index
    %14 = vector.load %arg3[%c0_20, %c0_21] : memref<1x48xf32, #tpu.memory_space<vmem>>, vector<1x48xf32>
    %15 = vector.broadcast %14 : vector<1x48xf32> to vector<256x48xf32>
    %16 = arith.addf %13, %15 : vector<256x48xf32>
    %cst_22 = arith.constant 0.000000e+00 : f32
    %17 = vector.broadcast %cst_22 : f32 to vector<256x48xf32>
    %18 = arith.maximumf %16, %17 : vector<256x48xf32>
    %19 = vector.extract_strided_slice %18 {offsets = [0, 0], sizes = [256, 16], strides = [1, 1]} : vector<256x48xf32> to vector<256x16xf32>
    %20 = arith.truncf %19 : vector<256x16xf32> to vector<256x16xbf16>
    %c0_23 = arith.constant 0 : index
    %c0_24 = arith.constant 0 : index
    %21 = vector.load %arg10[%c0_23, %c0_24] : memref<72x32xbf16, #tpu.memory_space<vmem>>, vector<16x32xbf16>
    %cst_25 = arith.constant dense<0.000000e+00> : vector<256x32xf32>
    %22 = tpu.matmul %20, %21, %cst_25 {dimension_numbers = #tpu.dot_dimension_numbers<[1], [0], [0], [1], [0, 0, 1, 1], [], []>} : vector<256x16xbf16>, vector<16x32xbf16>, vector<256x32xf32> -> vector<256x32xf32>
    %c0_26 = arith.constant 0 : index
    %c0_27 = arith.constant 0 : index
    %23 = vector.load %arg11[%c0_26, %c0_27] : memref<1x32xf32, #tpu.memory_space<vmem>>, vector<1x32xf32>
    %24 = vector.broadcast %23 : vector<1x32xf32> to vector<256x32xf32>
    %25 = arith.addf %22, %24 : vector<256x32xf32>
    %26 = vector.extract_strided_slice %18 {offsets = [0, 16], sizes = [256, 16], strides = [1, 1]} : vector<256x48xf32> to vector<256x16xf32>
    %27 = vector.shape_cast %26 : vector<256x16xf32> to vector<16x16x16xf32>
    %c1 = arith.constant 1 : index
    %c1_28 = arith.constant 1 : index
    %c0_29 = arith.constant 0 : index
    %28 = vector.load %arg13[%c1, %c1_28, %c0_29] : memref<18x18x24xf32, #tpu.memory_space<vmem>>, vector<16x16x16xf32>
    tpu.vector_store %arg13[%c1, %c1_28, %c0_29], %27 {strides = array<i32>} : memref<18x18x24xf32, #tpu.memory_space<vmem>>, vector<16x16x16xf32>,
    %c0_30 = arith.constant 0 : index
    %c0_31 = arith.constant 0 : index
    %c0_32 = arith.constant 0 : index
    %29 = vector.load %arg13[%c0_30, %c0_31, %c0_32] : memref<18x18x24xf32, #tpu.memory_space<vmem>>, vector<16x16x16xf32>
    %30 = arith.truncf %29 : vector<16x16x16xf32> to vector<16x16x16xbf16>
    %c0_33 = arith.constant 0 : index
    %c1_34 = arith.constant 1 : index
    %c0_35 = arith.constant 0 : index
    %31 = vector.load %arg13[%c0_33, %c1_34, %c0_35] : memref<18x18x24xf32, #tpu.memory_space<vmem>>, vector<16x16x16xf32>
    %32 = arith.truncf %31 : vector<16x16x16xf32> to vector<16x16x16xbf16>
    %c0_36 = arith.constant 0 : index
    %c2 = arith.constant 2 : index
    %c0_37 = arith.constant 0 : index
    %33 = vector.load %arg13[%c0_36, %c2, %c0_37] : memref<18x18x24xf32, #tpu.memory_space<vmem>>, vector<16x16x16xf32>
    %34 = arith.truncf %33 : vector<16x16x16xf32> to vector<16x16x16xbf16>
    %c1_38 = arith.constant 1 : index
    %c0_39 = arith.constant 0 : index
    %c0_40 = arith.constant 0 : index
    %35 = vector.load %arg13[%c1_38, %c0_39, %c0_40] : memref<18x18x24xf32, #tpu.memory_space<vmem>>, vector<16x16x16xf32>
    %36 = arith.truncf %35 : vector<16x16x16xf32> to vector<16x16x16xbf16>
    %c1_41 = arith.constant 1 : index
    %c1_42 = arith.constant 1 : index
    %c0_43 = arith.constant 0 : index
    %37 = vector.load %arg13[%c1_41, %c1_42, %c0_43] : memref<18x18x24xf32, #tpu.memory_space<vmem>>, vector<16x16x16xf32>
    %38 = arith.truncf %37 : vector<16x16x16xf32> to vector<16x16x16xbf16>
    %c1_44 = arith.constant 1 : index
    %c2_45 = arith.constant 2 : index
    %c0_46 = arith.constant 0 : index
    %39 = vector.load %arg13[%c1_44, %c2_45, %c0_46] : memref<18x18x24xf32, #tpu.memory_space<vmem>>, vector<16x16x16xf32>
    %40 = arith.truncf %39 : vector<16x16x16xf32> to vector<16x16x16xbf16>
    %c2_47 = arith.constant 2 : index
    %c0_48 = arith.constant 0 : index
    %c0_49 = arith.constant 0 : index
    %41 = vector.load %arg13[%c2_47, %c0_48, %c0_49] : memref<18x18x24xf32, #tpu.memory_space<vmem>>, vector<16x16x16xf32>
    %42 = arith.truncf %41 : vector<16x16x16xf32> to vector<16x16x16xbf16>
    %c2_50 = arith.constant 2 : index
    %c1_51 = arith.constant 1 : index
    %c0_52 = arith.constant 0 : index
    %43 = vector.load %arg13[%c2_50, %c1_51, %c0_52] : memref<18x18x24xf32, #tpu.memory_space<vmem>>, vector<16x16x16xf32>
    %44 = arith.truncf %43 : vector<16x16x16xf32> to vector<16x16x16xbf16>
    %c2_53 = arith.constant 2 : index
    %c2_54 = arith.constant 2 : index
    %c0_55 = arith.constant 0 : index
    %45 = vector.load %arg13[%c2_53, %c2_54, %c0_55] : memref<18x18x24xf32, #tpu.memory_space<vmem>>, vector<16x16x16xf32>
    %46 = arith.truncf %45 : vector<16x16x16xf32> to vector<16x16x16xbf16>
    %47 = tpu.concatenate %30, %32, %34, %36, %38, %40, %42, %44, %46 in 2 : vector<16x16x16xbf16>, vector<16x16x16xbf16>, vector<16x16x16xbf16>, vector<16x16x16xbf16>, vector<16x16x16xbf16>, vector<16x16x16xbf16>, vector<16x16x16xbf16>, vector<16x16x16xbf16>, vector<16x16x16xbf16> -> vector<16x16x144xbf16>
    %48 = vector.shape_cast %47 : vector<16x16x144xbf16> to vector<256x144xbf16>
    %c0_56 = arith.constant 0 : index
    %c0_57 = arith.constant 0 : index
    %49 = vector.load %arg4[%c0_56, %c0_57] : memref<144x24xbf16, #tpu.memory_space<vmem>>, vector<144x24xbf16>
    %cst_58 = arith.constant dense<0.000000e+00> : vector<256x24xf32>
    %50 = tpu.matmul %48, %49, %cst_58 {dimension_numbers = #tpu.dot_dimension_numbers<[1], [0], [0], [1], [0, 0, 1, 1], [], []>} : vector<256x144xbf16>, vector<144x24xbf16>, vector<256x24xf32> -> vector<256x24xf32>
    %c0_59 = arith.constant 0 : index
    %c0_60 = arith.constant 0 : index
    %51 = vector.load %arg5[%c0_59, %c0_60] : memref<1x24xf32, #tpu.memory_space<vmem>>, vector<1x24xf32>
    %52 = vector.broadcast %51 : vector<1x24xf32> to vector<256x24xf32>
    %53 = arith.addf %50, %52 : vector<256x24xf32>
    %cst_61 = arith.constant 0.000000e+00 : f32
    %54 = vector.broadcast %cst_61 : f32 to vector<256x24xf32>
    %55 = arith.maximumf %53, %54 : vector<256x24xf32>
    %56 = arith.truncf %55 : vector<256x24xf32> to vector<256x24xbf16>
    %c16 = arith.constant 16 : index
    %c0_62 = arith.constant 0 : index
    %57 = vector.load %arg10[%c16, %c0_62] : memref<72x32xbf16, #tpu.memory_space<vmem>>, vector<24x32xbf16>
    %cst_63 = arith.constant dense<0.000000e+00> : vector<256x32xf32>
    %58 = tpu.matmul %56, %57, %cst_63 {dimension_numbers = #tpu.dot_dimension_numbers<[1], [0], [0], [1], [0, 0, 1, 1], [], []>} : vector<256x24xbf16>, vector<24x32xbf16>, vector<256x32xf32> -> vector<256x32xf32>
    %59 = arith.addf %25, %58 : vector<256x32xf32>
    %60 = vector.extract_strided_slice %18 {offsets = [0, 32], sizes = [256, 16], strides = [1, 1]} : vector<256x48xf32> to vector<256x16xf32>
    %61 = vector.shape_cast %60 : vector<256x16xf32> to vector<16x16x16xf32>
    %c1_64 = arith.constant 1 : index
    %c1_65 = arith.constant 1 : index
    %c0_66 = arith.constant 0 : index
    %62 = vector.load %arg13[%c1_64, %c1_65, %c0_66] : memref<18x18x24xf32, #tpu.memory_space<vmem>>, vector<16x16x16xf32>
    tpu.vector_store %arg13[%c1_64, %c1_65, %c0_66], %61 {strides = array<i32>} : memref<18x18x24xf32, #tpu.memory_space<vmem>>, vector<16x16x16xf32>,
    %c0_67 = arith.constant 0 : index
    %c0_68 = arith.constant 0 : index
    %c0_69 = arith.constant 0 : index
    %63 = vector.load %arg13[%c0_67, %c0_68, %c0_69] : memref<18x18x24xf32, #tpu.memory_space<vmem>>, vector<16x16x16xf32>
    %64 = arith.truncf %63 : vector<16x16x16xf32> to vector<16x16x16xbf16>
    %c0_70 = arith.constant 0 : index
    %c1_71 = arith.constant 1 : index
    %c0_72 = arith.constant 0 : index
    %65 = vector.load %arg13[%c0_70, %c1_71, %c0_72] : memref<18x18x24xf32, #tpu.memory_space<vmem>>, vector<16x16x16xf32>
    %66 = arith.truncf %65 : vector<16x16x16xf32> to vector<16x16x16xbf16>
    %c0_73 = arith.constant 0 : index
    %c2_74 = arith.constant 2 : index
    %c0_75 = arith.constant 0 : index
    %67 = vector.load %arg13[%c0_73, %c2_74, %c0_75] : memref<18x18x24xf32, #tpu.memory_space<vmem>>, vector<16x16x16xf32>
    %68 = arith.truncf %67 : vector<16x16x16xf32> to vector<16x16x16xbf16>
    %c1_76 = arith.constant 1 : index
    %c0_77 = arith.constant 0 : index
    %c0_78 = arith.constant 0 : index
    %69 = vector.load %arg13[%c1_76, %c0_77, %c0_78] : memref<18x18x24xf32, #tpu.memory_space<vmem>>, vector<16x16x16xf32>
    %70 = arith.truncf %69 : vector<16x16x16xf32> to vector<16x16x16xbf16>
    %c1_79 = arith.constant 1 : index
    %c1_80 = arith.constant 1 : index
    %c0_81 = arith.constant 0 : index
    %71 = vector.load %arg13[%c1_79, %c1_80, %c0_81] : memref<18x18x24xf32, #tpu.memory_space<vmem>>, vector<16x16x16xf32>
    %72 = arith.truncf %71 : vector<16x16x16xf32> to vector<16x16x16xbf16>
    %c1_82 = arith.constant 1 : index
    %c2_83 = arith.constant 2 : index
    %c0_84 = arith.constant 0 : index
    %73 = vector.load %arg13[%c1_82, %c2_83, %c0_84] : memref<18x18x24xf32, #tpu.memory_space<vmem>>, vector<16x16x16xf32>
    %74 = arith.truncf %73 : vector<16x16x16xf32> to vector<16x16x16xbf16>
    %c2_85 = arith.constant 2 : index
    %c0_86 = arith.constant 0 : index
    %c0_87 = arith.constant 0 : index
    %75 = vector.load %arg13[%c2_85, %c0_86, %c0_87] : memref<18x18x24xf32, #tpu.memory_space<vmem>>, vector<16x16x16xf32>
    %76 = arith.truncf %75 : vector<16x16x16xf32> to vector<16x16x16xbf16>
    %c2_88 = arith.constant 2 : index
    %c1_89 = arith.constant 1 : index
    %c0_90 = arith.constant 0 : index
    %77 = vector.load %arg13[%c2_88, %c1_89, %c0_90] : memref<18x18x24xf32, #tpu.memory_space<vmem>>, vector<16x16x16xf32>
    %78 = arith.truncf %77 : vector<16x16x16xf32> to vector<16x16x16xbf16>
    %c2_91 = arith.constant 2 : index
    %c2_92 = arith.constant 2 : index
    %c0_93 = arith.constant 0 : index
    %79 = vector.load %arg13[%c2_91, %c2_92, %c0_93] : memref<18x18x24xf32, #tpu.memory_space<vmem>>, vector<16x16x16xf32>
    %80 = arith.truncf %79 : vector<16x16x16xf32> to vector<16x16x16xbf16>
    %81 = tpu.concatenate %64, %66, %68, %70, %72, %74, %76, %78, %80 in 2 : vector<16x16x16xbf16>, vector<16x16x16xbf16>, vector<16x16x16xbf16>, vector<16x16x16xbf16>, vector<16x16x16xbf16>, vector<16x16x16xbf16>, vector<16x16x16xbf16>, vector<16x16x16xbf16>, vector<16x16x16xbf16> -> vector<16x16x144xbf16>
    %82 = vector.shape_cast %81 : vector<16x16x144xbf16> to vector<256x144xbf16>
    %c0_94 = arith.constant 0 : index
    %c0_95 = arith.constant 0 : index
    %83 = vector.load %arg6[%c0_94, %c0_95] : memref<144x24xbf16, #tpu.memory_space<vmem>>, vector<144x24xbf16>
    %cst_96 = arith.constant dense<0.000000e+00> : vector<256x24xf32>
    %84 = tpu.matmul %82, %83, %cst_96 {dimension_numbers = #tpu.dot_dimension_numbers<[1], [0], [0], [1], [0, 0, 1, 1], [], []>} : vector<256x144xbf16>, vector<144x24xbf16>, vector<256x24xf32> -> vector<256x24xf32>
    %c0_97 = arith.constant 0 : index
    %c0_98 = arith.constant 0 : index
    %85 = vector.load %arg7[%c0_97, %c0_98] : memref<1x24xf32, #tpu.memory_space<vmem>>, vector<1x24xf32>
    %86 = vector.broadcast %85 : vector<1x24xf32> to vector<256x24xf32>
    %87 = arith.addf %84, %86 : vector<256x24xf32>
    %cst_99 = arith.constant 0.000000e+00 : f32
    %88 = vector.broadcast %cst_99 : f32 to vector<256x24xf32>
    %89 = arith.maximumf %87, %88 : vector<256x24xf32>
    %90 = vector.shape_cast %89 : vector<256x24xf32> to vector<16x16x24xf32>
    %c1_100 = arith.constant 1 : index
    %c1_101 = arith.constant 1 : index
    %c0_102 = arith.constant 0 : index
    %91 = vector.load %arg13[%c1_100, %c1_101, %c0_102] : memref<18x18x24xf32, #tpu.memory_space<vmem>>, vector<16x16x24xf32>
    tpu.vector_store %arg13[%c1_100, %c1_101, %c0_102], %90 {strides = array<i32>} : memref<18x18x24xf32, #tpu.memory_space<vmem>>, vector<16x16x24xf32>,
    %c0_103 = arith.constant 0 : index
    %c0_104 = arith.constant 0 : index
    %c0_105 = arith.constant 0 : index
    %92 = vector.load %arg13[%c0_103, %c0_104, %c0_105] : memref<18x18x24xf32, #tpu.memory_space<vmem>>, vector<16x16x24xf32>
    %93 = arith.truncf %92 : vector<16x16x24xf32> to vector<16x16x24xbf16>
    %c0_106 = arith.constant 0 : index
    %c1_107 = arith.constant 1 : index
    %c0_108 = arith.constant 0 : index
    %94 = vector.load %arg13[%c0_106, %c1_107, %c0_108] : memref<18x18x24xf32, #tpu.memory_space<vmem>>, vector<16x16x24xf32>
    %95 = arith.truncf %94 : vector<16x16x24xf32> to vector<16x16x24xbf16>
    %c0_109 = arith.constant 0 : index
    %c2_110 = arith.constant 2 : index
    %c0_111 = arith.constant 0 : index
    %96 = vector.load %arg13[%c0_109, %c2_110, %c0_111] : memref<18x18x24xf32, #tpu.memory_space<vmem>>, vector<16x16x24xf32>
    %97 = arith.truncf %96 : vector<16x16x24xf32> to vector<16x16x24xbf16>
    %c1_112 = arith.constant 1 : index
    %c0_113 = arith.constant 0 : index
    %c0_114 = arith.constant 0 : index
    %98 = vector.load %arg13[%c1_112, %c0_113, %c0_114] : memref<18x18x24xf32, #tpu.memory_space<vmem>>, vector<16x16x24xf32>
    %99 = arith.truncf %98 : vector<16x16x24xf32> to vector<16x16x24xbf16>
    %c1_115 = arith.constant 1 : index
    %c1_116 = arith.constant 1 : index
    %c0_117 = arith.constant 0 : index
    %100 = vector.load %arg13[%c1_115, %c1_116, %c0_117] : memref<18x18x24xf32, #tpu.memory_space<vmem>>, vector<16x16x24xf32>
    %101 = arith.truncf %100 : vector<16x16x24xf32> to vector<16x16x24xbf16>
    %c1_118 = arith.constant 1 : index
    %c2_119 = arith.constant 2 : index
    %c0_120 = arith.constant 0 : index
    %102 = vector.load %arg13[%c1_118, %c2_119, %c0_120] : memref<18x18x24xf32, #tpu.memory_space<vmem>>, vector<16x16x24xf32>
    %103 = arith.truncf %102 : vector<16x16x24xf32> to vector<16x16x24xbf16>
    %c2_121 = arith.constant 2 : index
    %c0_122 = arith.constant 0 : index
    %c0_123 = arith.constant 0 : index
    %104 = vector.load %arg13[%c2_121, %c0_122, %c0_123] : memref<18x18x24xf32, #tpu.memory_space<vmem>>, vector<16x16x24xf32>
    %105 = arith.truncf %104 : vector<16x16x24xf32> to vector<16x16x24xbf16>
    %c2_124 = arith.constant 2 : index
    %c1_125 = arith.constant 1 : index
    %c0_126 = arith.constant 0 : index
    %106 = vector.load %arg13[%c2_124, %c1_125, %c0_126] : memref<18x18x24xf32, #tpu.memory_space<vmem>>, vector<16x16x24xf32>
    %107 = arith.truncf %106 : vector<16x16x24xf32> to vector<16x16x24xbf16>
    %c2_127 = arith.constant 2 : index
    %c2_128 = arith.constant 2 : index
    %c0_129 = arith.constant 0 : index
    %108 = vector.load %arg13[%c2_127, %c2_128, %c0_129] : memref<18x18x24xf32, #tpu.memory_space<vmem>>, vector<16x16x24xf32>
    %109 = arith.truncf %108 : vector<16x16x24xf32> to vector<16x16x24xbf16>
    %110 = tpu.concatenate %93, %95, %97, %99, %101, %103, %105, %107, %109 in 2 : vector<16x16x24xbf16>, vector<16x16x24xbf16>, vector<16x16x24xbf16>, vector<16x16x24xbf16>, vector<16x16x24xbf16>, vector<16x16x24xbf16>, vector<16x16x24xbf16>, vector<16x16x24xbf16>, vector<16x16x24xbf16> -> vector<16x16x216xbf16>
    %111 = vector.shape_cast %110 : vector<16x16x216xbf16> to vector<256x216xbf16>
    %c0_130 = arith.constant 0 : index
    %c0_131 = arith.constant 0 : index
    %112 = vector.load %arg8[%c0_130, %c0_131] : memref<216x32xbf16, #tpu.memory_space<vmem>>, vector<216x32xbf16>
    %cst_132 = arith.constant dense<0.000000e+00> : vector<256x32xf32>
    %113 = tpu.matmul %111, %112, %cst_132 {dimension_numbers = #tpu.dot_dimension_numbers<[1], [0], [0], [1], [0, 0, 1, 1], [], []>} : vector<256x216xbf16>, vector<216x32xbf16>, vector<256x32xf32> -> vector<256x32xf32>
    %c0_133 = arith.constant 0 : index
    %c0_134 = arith.constant 0 : index
    %114 = vector.load %arg9[%c0_133, %c0_134] : memref<1x32xf32, #tpu.memory_space<vmem>>, vector<1x32xf32>
    %115 = vector.broadcast %114 : vector<1x32xf32> to vector<256x32xf32>
    %116 = arith.addf %113, %115 : vector<256x32xf32>
    %cst_135 = arith.constant 0.000000e+00 : f32
    %117 = vector.broadcast %cst_135 : f32 to vector<256x32xf32>
    %118 = arith.maximumf %116, %117 : vector<256x32xf32>
    %119 = arith.truncf %118 : vector<256x32xf32> to vector<256x32xbf16>
    %c40 = arith.constant 40 : index
    %c0_136 = arith.constant 0 : index
    %120 = vector.load %arg10[%c40, %c0_136] : memref<72x32xbf16, #tpu.memory_space<vmem>>, vector<32x32xbf16>
    %cst_137 = arith.constant dense<0.000000e+00> : vector<256x32xf32>
    %121 = tpu.matmul %119, %120, %cst_137 {dimension_numbers = #tpu.dot_dimension_numbers<[1], [0], [0], [1], [0, 0, 1, 1], [], []>} : vector<256x32xbf16>, vector<32x32xbf16>, vector<256x32xf32> -> vector<256x32xf32>
    %122 = arith.addf %59, %121 : vector<256x32xf32>
    %c0_138 = arith.constant 0 : index
    %c0_139 = arith.constant 0 : index
    %c0_140 = arith.constant 0 : index
    %c0_141 = arith.constant 0 : index
    %123 = vector.load %arg1[%c0_138, %c0_139, %c0_140, %c0_141] : memref<1x16x16x32xf32, #tpu.memory_space<vmem>>, vector<1x16x16x32xf32>
    %124 = vector.shape_cast %123 : vector<1x16x16x32xf32> to vector<16x16x32xf32>
    %125 = vector.shape_cast %124 : vector<16x16x32xf32> to vector<256x32xf32>
    %cst_142 = arith.constant 1.000000e-01 : f32
    %126 = vector.broadcast %cst_142 : f32 to vector<256x32xf32>
    %127 = arith.mulf %122, %126 : vector<256x32xf32>
    %128 = arith.addf %127, %125 : vector<256x32xf32>
    %cst_143 = arith.constant 0.000000e+00 : f32
    %129 = vector.broadcast %cst_143 : f32 to vector<256x32xf32>
    %130 = arith.maximumf %128, %129 : vector<256x32xf32>
    %131 = vector.shape_cast %130 : vector<256x32xf32> to vector<16x16x32xf32>
    %c0_144 = arith.constant 0 : index
    %c0_145 = arith.constant 0 : index
    %c0_146 = arith.constant 0 : index
    %c0_147 = arith.constant 0 : index
    %132 = vector.load %arg12[%c0_144, %c0_145, %c0_146, %c0_147] : memref<1x16x16x32xf32, #tpu.memory_space<vmem>>, vector<1x16x16x32xf32>
    %133 = vector.shape_cast %132 : vector<1x16x16x32xf32> to vector<16x16x32xf32>
    %134 = vector.shape_cast %131 : vector<16x16x32xf32> to vector<1x16x16x32xf32>
    tpu.vector_store %arg12[%c0_144, %c0_145, %c0_146, %c0_147], %134 {strides = array<i32>} : memref<1x16x16x32xf32, #tpu.memory_space<vmem>>, vector<1x16x16x32xf32>,
    return
  }
  func.func @transform_0(%arg0: i32) -> (i32, i32, i32, i32) {
    %c0_i32 = arith.constant 0 : i32
    %c0_i32_0 = arith.constant 0 : i32
    %c0_i32_1 = arith.constant 0 : i32
    %c0_i32_2 = arith.constant 0 : i32
    return %arg0, %c0_i32, %c0_i32_0, %c0_i32_1 : i32, i32, i32, i32
  }
  func.func @transform_1(%arg0: i32) -> (i32, i32) {
    %c0_i32 = arith.constant 0 : i32
    %c0_i32_0 = arith.constant 0 : i32
    %c0_i32_1 = arith.constant 0 : i32
    return %c0_i32, %c0_i32_0 : i32, i32
  }
  func.func @transform_2(%arg0: i32) -> (i32, i32) {
    %c0_i32 = arith.constant 0 : i32
    %c0_i32_0 = arith.constant 0 : i32
    %c0_i32_1 = arith.constant 0 : i32
    return %c0_i32, %c0_i32_0 : i32, i32
  }
  func.func @transform_3(%arg0: i32) -> (i32, i32) {
    %c0_i32 = arith.constant 0 : i32
    %c0_i32_0 = arith.constant 0 : i32
    %c0_i32_1 = arith.constant 0 : i32
    return %c0_i32, %c0_i32_0 : i32, i32
  }
  func.func @transform_4(%arg0: i32) -> (i32, i32) {
    %c0_i32 = arith.constant 0 : i32
    %c0_i32_0 = arith.constant 0 : i32
    %c0_i32_1 = arith.constant 0 : i32
    return %c0_i32, %c0_i32_0 : i32, i32
  }
  func.func @transform_5(%arg0: i32) -> (i32, i32) {
    %c0_i32 = arith.constant 0 : i32
    %c0_i32_0 = arith.constant 0 : i32
    %c0_i32_1 = arith.constant 0 : i32
    return %c0_i32, %c0_i32_0 : i32, i32
  }
  func.func @transform_6(%arg0: i32) -> (i32, i32) {
    %c0_i32 = arith.constant 0 : i32
    %c0_i32_0 = arith.constant 0 : i32
    %c0_i32_1 = arith.constant 0 : i32
    return %c0_i32, %c0_i32_0 : i32, i32
  }
  func.func @transform_7(%arg0: i32) -> (i32, i32) {
    %c0_i32 = arith.constant 0 : i32
    %c0_i32_0 = arith.constant 0 : i32
    %c0_i32_1 = arith.constant 0 : i32
    return %c0_i32, %c0_i32_0 : i32, i32
  }
  func.func @transform_8(%arg0: i32) -> (i32, i32) {
    %c0_i32 = arith.constant 0 : i32
    %c0_i32_0 = arith.constant 0 : i32
    %c0_i32_1 = arith.constant 0 : i32
    return %c0_i32, %c0_i32_0 : i32, i32
  }
  func.func @transform_9(%arg0: i32) -> (i32, i32) {
    %c0_i32 = arith.constant 0 : i32
    %c0_i32_0 = arith.constant 0 : i32
    %c0_i32_1 = arith.constant 0 : i32
    return %c0_i32, %c0_i32_0 : i32, i32
  }
  func.func @transform_10(%arg0: i32) -> (i32, i32) {
    %c0_i32 = arith.constant 0 : i32
    %c0_i32_0 = arith.constant 0 : i32
    %c0_i32_1 = arith.constant 0 : i32
    return %c0_i32, %c0_i32_0 : i32, i32
  }
  func.func @transform_11(%arg0: i32) -> (i32, i32, i32, i32) {
    %c0_i32 = arith.constant 0 : i32
    %c0_i32_0 = arith.constant 0 : i32
    %c0_i32_1 = arith.constant 0 : i32
    %c0_i32_2 = arith.constant 0 : i32
    return %arg0, %c0_i32, %c0_i32_0, %c0_i32_1 : i32, i32, i32, i32
  }
}

</mosaic_0001>

<bundles_post_ra>
// kernel: tpu_custom_call.1
= control target key start
LH: loop header
LB: loop body
LE: loop exit
PB: predicated region body
PF: predicated region fallthrough
CT: control target
= control target key end

     0   :  { %16 = vsyncpa [#allocation4], 0  ;;  %s9593_s0 = inlined_call_operand.hbm [shape: f32[2,16,16,32], index: 0, kind: input, shape index: {}]   ;;  %s9594_s1 = inlined_call_operand.vmem [shape: bf16[32,48], index: 1, kind: input, shape index: {}]   ;;  %s9595_s2 = inlined_call_operand.vmem [shape: f32[1,48], index: 2, kind: input, shape index: {}]   ;;  %s9596_s3 = inlined_call_operand.vmem [shape: bf16[144,24], index: 3, kind: input, shape index: {}]   ;;  %s9597_s4 = inlined_call_operand.vmem [shape: f32[1,24], index: 4, kind: input, shape index: {}]   ;;  %s9598_s5 = inlined_call_operand.vmem [shape: bf16[144,24], index: 5, kind: input, shape index: {}]   ;;  %s9599_s6 = inlined_call_operand.vmem [shape: f32[1,24], index: 6, kind: input, shape index: {}]   ;;  %s9600_s7 = inlined_call_operand.vmem [shape: bf16[216,32], index: 7, kind: input, shape index: {}]   ;;  %s9601_s8 = inlined_call_operand.vmem [shape: f32[1,32], index: 8, kind: input, shape index: {}]   ;;  %s9602_s9 = inlined_call_operand.vmem [shape: bf16[72,32], index: 9, kind: input, shape index: {}]   ;;  %s9603_s10 = inlined_call_operand.vmem [shape: f32[1,32], index: 10, kind: input, shape index: {}]   ;;  %s9604_s11 = inlined_call_operand.hbm [shape: f32[2,16,16,32], index: 11, kind: output, shape index: {}]  }
   0x1   :  { %18 = vsyncpa [#allocation4 + $0x1], 0 }
   0x2   :  { %19 = vsyncpa [#allocation5], 0 }
   0x3   :  { %21 = vsyncpa [#allocation5 + $0x1], 0  ;;  %s7028_s17 = smov 0   ;;  %s7030_s18 = smov 0  }
   0x4   :  { %s7032_s19 = smov 0   ;;  %s7034_s20 = smov 0  }
   0x5 LB: > { %9633 = sst [smem:[#allocation9_spill]] %s6943_s19  ;;  %s7049_s21 = sadd.s32 4294967295, %s6947_s20   ;;  %s6947_s20 = sphi %s7034_s20, %s9750_s20   ;;  %s6943_s19 = sphi %s7032_s19, %s9747_s19   ;;  %s6939_s18 = sphi %s7030_s18, %s9749_s18   ;;  %s6935_s17 = sphi %s7028_s17, %s9748_s17  }
   0x6   : > { %s6265_s22 = sadd.s32 4294967294, %s6947_s20   ;;  %s7053_s23 = sadd.s32 1, %s6947_s20  }
   0x7   : > { %s34_s24 = sadd.s32 1, %s6943_s19  ;;  %s31_s25 = ssub.s32 %s6947_s20, %s7053_s23 }
   0x8   : > { %p41_p0 = scmp.ne.s32.totalorder %s6943_s19, %s6939_s18  ;;  %p32_p1 = scmp.eq.s32.totalorder %s31_s25, 0 }
   0x9   : > { %p42_p2 = scmp.eq.s32.totalorder %s6947_s20, 0  ;;  %p47_p3 = scmp.ne.s32.totalorder %s6939_s18, %s6935_s17 }
   0xa   : > { %p48_p4 = scmp.eq.s32.totalorder %s7049_s21, 0  ;;  %p281_p7 = scmp.eq.s32.totalorder %s7049_s21, 1 }
   0xb   : > { %s7065_s26 = scalar_select %p32_p1, %s6943_s19, %s34_s24  }
   0xc   : > { %p7067_p5 = por %p42_p2, %p41_p0  ;;  %p7071_p6 = por %p48_p4, %p47_p3 }
   0xd   : > { %9634 = sst [smem:[#allocation10_spill]] %s7065_s26  ;;  %p287_p8 = scmp.eq.s32.totalorder %s6265_s22, 1 }
   0xe   : > { %p6759_p10 = scmp.lt.s32.totalorder %s6947_s20, 2  ;;  %p7078_p11 = por %p281_p7, %p41_p0 }
   0xf   : > { %p7082_p12 = por %p287_p8, %p47_p3  ;;  %s337_s12 = sand.u32 1, %s6943_s19  }
  0x10   : > { %s9637_s29 = scalar_select %p7078_p11, 1, 0 }
  0x11   : > { %s9638_s30 = scalar_select %p7082_p12, 1, 0 }
  0x12   : > { %s6435_s13 = sshll.u32 %s6947_s20, 12  ;;  %s6268_s14 = sshll.u32 %s337_s12, 8 }
  0x13   : > { %s7091_s24 = scalar_lea.hbm %s9593_s0, %s6435_s13  ;;  %s341_s22 = scalar_lea.vmem [#allocation3], %s6268_s14 }
  0x14   : > { %s348_s25 = sshll.u32 %s341_s22, 4  ;;  %p7095_p13 = pnand %p6759_p10, %p7067_p5  ;;  %s7099_s25 = int_to_ptr.vmem [resolvable:$true] %s348_s25 }
  0x15   : > { %s7101_s19 = scalar_lea.sflag [#allocation4], %s337_s12  ;;  %s6851_s15 = scalar_lea.hbm %s7091_s24, 4096 }
  0x16   : > { %p6852_p0 = scmp.ne.s32.totalorder %s7091_s24, %s6851_s15  ;;  %p6853_p1 = pneg %p7095_p13 }
  0x17   : > { %s6856_s14 = scalar_lea.hbm %s9593_s0, 8192  ;;  %p6857_p4 = scmp.lt.u32.totalorder %s7091_s24, %s9593_s0 }
  0x18   : > { %p6854_p2 = pnand %p6853_p1, %p6852_p0  ;;  %p6858_p5 = scmp.lt.u32.totalorder %s6856_s14, %s6851_s15 }
  0x19   : > { %p6860_p8 = scmp.lt.u32.totalorder %s6851_s15, %s7091_s24 }
  0x1a   : > { %p6855_p3 = pneg %p6854_p2  ;;  %p6859_p7 = por %p6858_p5, %p6857_p4 }
  0x1c   : > { %p6861_p10 = por %p6860_p8, %p6859_p7 }
  0x1e   : > { %p6862_p9 = pnand %p6861_p10, %p6855_p3 }
  0x20   : > { %6865 = shalt.err (!%p6862_p9)
}
  0x21   : > { %s6866_s12 = scalar_lea.vmem %s7099_s25, 4096  ;;  %s6949_s13 = smov [#allocation3]  }
  0x22   : > { %p6867_p0 = scmp.ne.s32.totalorder %s7099_s25, %s6866_s12  ;;  %s6871_s27 = sshll.u32 %s6949_s13, 4  ;;  %s6872_s27 = int_to_ptr.vmem [resolvable:$false] %s6871_s27 }
  0x23   : > { %s6873_s16 = scalar_lea.vmem %s6872_s27, 8192  ;;  %p6874_p11 = scmp.lt.s32.totalorder %s7099_s25, %s6872_s27 }
  0x24   : > { %p6869_p2 = pnand %p6867_p0, %p6853_p1  ;;  %p6875_p4 = scmp.lt.s32.totalorder %s6873_s16, %s6866_s12 }
  0x26   : > { %p6870_p12 = pneg %p6869_p2  ;;  %p6876_p5 = por %p6875_p4, %p6874_p11 }
  0x28   : > { %p6877_p7 = pnand %p6876_p5, %p6870_p12 }
  0x2a   : > { %6880 = shalt.err (!%p6877_p7)
}
  0x2b   : > { %s6950_s15 = smov 128   ;;  %s6951_s14 = smov 8  }
  0x2c   : > { %6754 = dma.hbm_to_vmem [thread:$0]  (!%p7095_p13), %s7091_s24, 4096, %s7099_s25, %s7101_s19, %s6950_s15, %s6950_s15, %s6951_s14  }
  0x2d   : > { %p6271_p9 = scmp.ge.s32.totalorder %s6947_s20, 1  ;;  %p356_p1 = scmp.lt.s32.totalorder %s6947_s20, 3 }
  0x2f   : > { %p357_p3 = pnand %p6271_p9, %p356_p1 }
  0x31   : > { %360 = sbr.rel (%p357_p3) target bundleno = 1679 (0x68f), region = 64 }
  0x38   : > { %s7132_s22 = sand.u32 1, %s6939_s18  }
  0x39   : > { %s9607_s12 = sshll.u32 %s7132_s22, 8  ;;  %s363_s13 = scalar_lea.sflag [#allocation4], %s7132_s22 }
  0x3a   : > { %s7138_s27 = scalar_lea.vmem [#allocation3], %s9607_s12 }
  0x3b   : > { %6926 = dma.done.wait (%p7071_p6), %s363_s13, 4096  }
  0x3c   : > { %6928 = vsyncadd (%p7071_p6), %s363_s13, 4294963200  ;;  %vm406_vm0 = vcmask 195584   ;;  %vm409_vm1 = vcmask 189440   ;;  %v6952_v0 = vmov 0.0   ;;  %vm415_vm2 = vcmask 188416   ;;  %v6810_v1 = vld [vmem:[%s9594_s1] sm:$0xff]  }
  0x3d   : > { %412 = vst.msk [vmem:[#allocation2 + $0x198] sm:$0xff] %vm406_vm0, %v6952_v0  ;;  %413 = vst.msk [vmem:[#allocation2 + $0x1a0] sm:$0xff] %vm406_vm0, %v6952_v0  ;;  %v6811_v2 = vld [vmem:[%s9594_s1 + $0x8] sm:$0xff]   ;;  %6508 = vmatprep.subr.bf16.mxu0 %v6810_v1  ;;  %v452_v3 = vld [vmem:[%s7138_s27] sm:$0xff]  ;;  %vm523_vm3 = vcmask 261120   ;;  %s9608_s25 = smov 112  }
  0x3e   : > { %414 = vst.msk [vmem:[#allocation2 + $0x1a8] sm:$0x3] %vm409_vm1, %v6952_v0  ;;  %410 = vst.msk [vmem:[#allocation2 + $0x10] sm:$0x3] %vm409_vm1, %v6952_v0  ;;  %v453_v4 = vld [vmem:[%s7138_s27 + $0x8] sm:$0xff]  ;;  %6509 = vmatpush3.bf16.msra.mxu0 %v6810_v1  ;;  %v454_v6 = vld [vmem:[%s7138_s27 + $0x10] sm:$0xff] }
  0x3f   : > { %407 = vst.msk [vmem:[#allocation2] sm:$0xff] %vm406_vm0, %v6952_v0  ;;  %408 = vst.msk [vmem:[#allocation2 + $0x8] sm:$0xff] %vm406_vm0, %v6952_v0  ;;  %v484_v5 = vpack.c.bf16 %v453_v4, %v452_v3  ;;  %v455_v7 = vld [vmem:[%s7138_s27 + $0x18] sm:$0xff]  ;;  %6510 = vmatprep.subr.bf16.mxu0 %v6811_v2  ;;  %v456_v8 = vld [vmem:[%s7138_s27 + $0x20] sm:$0xff]  ;;  %s9631_s16 = smov 16   ;;  %s9610_s15 = smov 32  }
  0x40   : > { %434 = vst.msk [vmem:[#allocation2 + $0x11] sm:$0x1] %vm415_vm2, %v6952_v0  ;;  %416 = vst.msk [vmem:[#allocation2] sm:$0x1] %vm415_vm2, %v6952_v0  ;;  %v457_v9 = vld [vmem:[%s7138_s27 + $0x28] sm:$0xff]  ;;  %v485_v10 = vpack.c.bf16 %v455_v7, %v454_v6  ;;  %v458_v12 = vld [vmem:[%s7138_s27 + $0x30] sm:$0xff] }
  0x41   : > { %417 = vst.msk [vmem:[#allocation2 + $0x18] sm:$0x1] %vm415_vm2, %v6952_v0  ;;  %418 = vst.msk [vmem:[#allocation2 + $0x30] sm:$0x1] %vm415_vm2, %v6952_v0  ;;  %6512 = vmatprep.mubr.msk.bf16.mxu0 %vm523_vm3, %v484_v5  ;;  %v486_v11 = vpack.c.bf16 %v457_v9, %v456_v8  ;;  %v459_v13 = vld [vmem:[%s7138_s27 + $0x38] sm:$0xff]  ;;  %v460_v14 = vld [vmem:[%s7138_s27 + $0x40] sm:$0xff] }
  0x42   : > { %419 = vst.msk [vmem:[#allocation2 + $0x48] sm:$0x1] %vm415_vm2, %v6952_v0  ;;  %420 = vst.msk [vmem:[#allocation2 + $0x60] sm:$0x1] %vm415_vm2, %v6952_v0  ;;  %6511 = vmatpush3.bf16.msra.mxu0 %v6811_v2  ;;  %v461_v15 = vld [vmem:[%s7138_s27 + $0x48] sm:$0xff]  ;;  %v487_v20 = vpack.c.bf16 %v459_v13, %v458_v12  ;;  %v462_v27 = vld [vmem:[%s7138_s27 + $0x50] sm:$0xff] }
  0x43   : > { %421 = vst.msk [vmem:[#allocation2 + $0x78] sm:$0x1] %vm415_vm2, %v6952_v0  ;;  %422 = vst.msk [vmem:[#allocation2 + $0x90] sm:$0x1] %vm415_vm2, %v6952_v0  ;;  %v488_v25 = vpack.c.bf16 %v461_v15, %v460_v14  ;;  %v463_v28 = vld [vmem:[%s7138_s27 + $0x58] sm:$0xff]  ;;  %v464_v29 = vld [vmem:[%s7138_s27 + $0x60] sm:$0xff] }
  0x44   : > { %423 = vst.msk [vmem:[#allocation2 + $0xa8] sm:$0x1] %vm415_vm2, %v6952_v0  ;;  %424 = vst.msk [vmem:[#allocation2 + $0xc0] sm:$0x1] %vm415_vm2, %v6952_v0  ;;  %v3284_v16 = vld [vmem:[#allocation2 + $0x199] sm:$0xff]  ;;  %v489_v31 = vpack.c.bf16 %v463_v28, %v462_v27  ;;  %v467_v34 = vld [vmem:[%s7138_s27 + $0x78] sm:$0xff] }
  0x45   : > { %425 = vst.msk [vmem:[#allocation2 + $0xd8] sm:$0x1] %vm415_vm2, %v6952_v0  ;;  %426 = vst.msk [vmem:[#allocation2 + $0xf0] sm:$0x1] %vm415_vm2, %v6952_v0  ;;  %6513 = vmatmul.mubr.msk.bf16.vlgmr.msra.gmra.mrb[0].mxu0 %vm523_vm3, %v485_v10  ;;  %v3285_v17 = vld [vmem:[#allocation2 + $0x1a1] sm:$0xff]  ;;  %v465_v30 = vld [vmem:[%s7138_s27 + $0x68] sm:$0xff] }
  0x46   : > { %427 = vst.msk [vmem:[#allocation2 + $0x108] sm:$0x1] %vm415_vm2, %v6952_v0  ;;  %428 = vst.msk [vmem:[#allocation2 + $0x120] sm:$0x1] %vm415_vm2, %v6952_v0  ;;  %6516 = vmatprep.mubr.msk.bf16.mxu0 %vm523_vm3, %v486_v11  ;;  %v2966_v18 = vld [vmem:[#allocation2 + $0x1] sm:$0xff]  ;;  %v2967_v19 = vld [vmem:[#allocation2 + $0x9] sm:$0xff]  ;;  %v3301_v21 = vpack.c.bf16 %v3285_v17, %v3284_v16  ;;  %v490_v32 = vpack.c.bf16 %v465_v30, %v464_v29 }
  0x47   : > { %429 = vst.msk [vmem:[#allocation2 + $0x138] sm:$0x1] %vm415_vm2, %v6952_v0  ;;  %430 = vst.msk [vmem:[#allocation2 + $0x150] sm:$0x1] %vm415_vm2, %v6952_v0  ;;  %v2998_v22 = vpack.c.bf16 %v2967_v19, %v2966_v18  ;;  %v3014_v23 = vld [vmem:[#allocation2 + $0x2] sm:$0xff]  ;;  %v3015_v24 = vld [vmem:[#allocation2 + $0xa] sm:$0xff] }
  0x48   : > { %431 = vst.msk [vmem:[#allocation2 + $0x168] sm:$0x1] %vm415_vm2, %v6952_v0  ;;  %432 = vst.msk [vmem:[#allocation2 + $0x180] sm:$0x1] %vm415_vm2, %v6952_v0  ;;  %3684 = vrot.lane.b32.xlu1 %v3301_v21, %s9608_s25  ;;  %v3046_v26 = vpack.c.bf16 %v3015_v24, %v3014_v23  ;;  %v466_v33 = vld [vmem:[%s7138_s27 + $0x70] sm:$0xff]  ;;  %v468_v35 = vld [vmem:[%s7138_s27 + $0x80] sm:$0xff] }
  0x49   : > { %433 = vst.msk [vmem:[#allocation2 + $0x198] sm:$0x1] %vm415_vm2, %v6952_v0  ;;  %435 = vst.msk [vmem:[#allocation2 + $0x29] sm:$0x1] %vm415_vm2, %v6952_v0  ;;  %3366 = vrot.lane.b32.xlu0 %v2998_v22, %s9631_s16  ;;  %v469_v36 = vld [vmem:[%s7138_s27 + $0x88] sm:$0xff]  ;;  %v491_v37 = vpack.c.bf16 %v467_v34, %v466_v33  ;;  %v470_v39 = vld [vmem:[%s7138_s27 + $0x90] sm:$0xff] }
  0x4a   : > { %436 = vst.msk [vmem:[#allocation2 + $0x41] sm:$0x1] %vm415_vm2, %v6952_v0  ;;  %437 = vst.msk [vmem:[#allocation2 + $0x59] sm:$0x1] %vm415_vm2, %v6952_v0  ;;  %v492_v38 = vpack.c.bf16 %v469_v36, %v468_v35  ;;  %v471_v40 = vld [vmem:[%s7138_s27 + $0x98] sm:$0xff]  ;;  %v472_v41 = vld [vmem:[%s7138_s27 + $0xa0] sm:$0xff] }
  0x4b   : > { %438 = vst.msk [vmem:[#allocation2 + $0x71] sm:$0x1] %vm415_vm2, %v6952_v0  ;;  %439 = vst.msk [vmem:[#allocation2 + $0x89] sm:$0x1] %vm415_vm2, %v6952_v0  ;;  %v473_v42 = vld [vmem:[%s7138_s27 + $0xa8] sm:$0xff]  ;;  %v493_v43 = vpack.c.bf16 %v471_v40, %v470_v39  ;;  %v474_v45 = vld [vmem:[%s7138_s27 + $0xb0] sm:$0xff] }
  0x4c   : > { %440 = vst.msk [vmem:[#allocation2 + $0xa1] sm:$0x1] %vm415_vm2, %v6952_v0  ;;  %441 = vst.msk [vmem:[#allocation2 + $0xb9] sm:$0x1] %vm415_vm2, %v6952_v0  ;;  %3414 = vrot.lane.b32.xlu1 %v3046_v26, %s9610_s15  ;;  %v494_v44 = vpack.c.bf16 %v473_v42, %v472_v41  ;;  %v475_v46 = vld [vmem:[%s7138_s27 + $0xb8] sm:$0xff]  ;;  %v476_v47 = vld [vmem:[%s7138_s27 + $0xc0] sm:$0xff] }
  0x4d   : > { %442 = vst.msk [vmem:[#allocation2 + $0xd1] sm:$0x1] %vm415_vm2, %v6952_v0  ;;  %443 = vst.msk [vmem:[#allocation2 + $0xe9] sm:$0x1] %vm415_vm2, %v6952_v0  ;;  %6517 = vmatmul.mubr.msk.bf16.gmra.mrb[4].mxu0 %vm523_vm3, %v487_v20  ;;  %1616 = vrot.lane.b32.xlu0 %v2998_v22, %s9631_s16  ;;  %v477_v48 = vld [vmem:[%s7138_s27 + $0xc8] sm:$0xff]  ;;  %v495_v49 = vpack.c.bf16 %v475_v46, %v474_v45  ;;  %v478_v51 = vld [vmem:[%s7138_s27 + $0xd0] sm:$0xff] }
  0x4e   : > { %444 = vst.msk [vmem:[#allocation2 + $0x101] sm:$0x1] %vm415_vm2, %v6952_v0  ;;  %445 = vst.msk [vmem:[#allocation2 + $0x119] sm:$0x1] %vm415_vm2, %v6952_v0  ;;  %6520 = vmatprep.mubr.msk.bf16.mxu0 %vm523_vm3, %v488_v25  ;;  %v496_v50 = vpack.c.bf16 %v477_v48, %v476_v47  ;;  %v479_v52 = vld [vmem:[%s7138_s27 + $0xd8] sm:$0xff]  ;;  %v480_v53 = vld [vmem:[%s7138_s27 + $0xe0] sm:$0xff] }
  0x4f   : > { %446 = vst.msk [vmem:[#allocation2 + $0x131] sm:$0x1] %vm415_vm2, %v6952_v0  ;;  %447 = vst.msk [vmem:[#allocation2 + $0x149] sm:$0x1] %vm415_vm2, %v6952_v0  ;;  %v481_v54 = vld [vmem:[%s7138_s27 + $0xe8] sm:$0xff]  ;;  %v497_v55 = vpack.c.bf16 %v479_v52, %v478_v51  ;;  %v482_v57 = vld [vmem:[%s7138_s27 + $0xf0] sm:$0xff] }
  0x50   : > { %448 = vst.msk [vmem:[#allocation2 + $0x161] sm:$0x1] %vm415_vm2, %v6952_v0  ;;  %449 = vst.msk [vmem:[#allocation2 + $0x179] sm:$0x1] %vm415_vm2, %v6952_v0  ;;  %1664 = vrot.lane.b32.xlu1 %v3046_v26, %s9610_s15  ;;  %v498_v56 = vpack.c.bf16 %v481_v54, %v480_v53  ;;  %v483_v58 = vld [vmem:[%s7138_s27 + $0xf8] sm:$0xff]  ;;  %v3236_v60 = vld [vmem:[#allocation2 + $0x198] sm:$0xff] }
  0x51   : > { %450 = vst.msk [vmem:[#allocation2 + $0x191] sm:$0x1] %vm415_vm2, %v6952_v0  ;;  %451 = vst.msk [vmem:[#allocation2 + $0x1a9] sm:$0x1] %vm415_vm2, %v6952_v0  ;;  %v499_v59 = vpack.c.bf16 %v483_v58, %v482_v57  ;;  %v3237_v61 = vld [vmem:[#allocation2 + $0x1a0] sm:$0xff]  ;;  %s6956_s14 = smov 96  }
  0x52   : > { %v3253_v62 = vpack.c.bf16 %v3237_v61, %v3236_v60  ;;  %v6812_v63 = vld [vmem:[%s9602_s9] sm:$0xff]   ;;  %vm796_vm4 = vcmask 130048   ;;  %s6958_s13 = smov 48   ;;  %s6959_s19 = smov 64   ;;  %vm2016_vm5 = vcmask 392192   ;;  %vm2049_vm6 = vcmask 523264  }
  0x53   : > { %6544 = vmatprep.subr.bf16.mxu1 %v6812_v63  ;;  %v7250_v0 = vld [vmem:[%s9595_s2] ss:$0 sm:$0xff]  ;;  %s9612_s26 = smov 80   ;;  %s9643_s12 = smov 32   ;;  %vm2082_vm7 = vcmask 654336   ;;  %vm2115_vm8 = vcmask 785408  }
  0x54   : > { %3636 = vrot.lane.b32.xlu0 %v3253_v62, %s6956_s14  ;;  %6545 = vmatpush3.bf16.msra.mxu1 %v6812_v63  ;;  %s9644_s28 = smov 80   ;;  %vm2148_vm9 = vcmask 916480   ;;  %s9629_s24 = smov 24   ;;  %vm2593_vm10 = vcmask 1043456   ;;  %vm5190_vm11 = vcmask 588800   ;;  %vm5336_vm12 = vcmask 326656  }
  0x55   : > { %6521 = vmatmul.mubr.msk.bf16.gmra.mrb[8].mxu0 %vm523_vm3, %v489_v31  ;;  %vm5516_vm13 = vcmask 719872   ;;  %vm5255_vm14 = vcmask 982016   ;;  %p9743_p11 = scmp.ne.s32.totalorder %s9637_s29, 0 }
  0x56   : > { %6524 = vmatprep.mubr.msk.bf16.mxu0 %vm523_vm3, %v490_v32 }
  0x5d   : > { %6525 = vmatmul.mubr.msk.bf16.gmra.mrb[12].mxu0 %vm523_vm3, %v491_v37 }
  0x5e   : > { %6528 = vmatprep.mubr.msk.bf16.mxu0 %vm523_vm3, %v492_v38 }
  0x65   : > { %6529 = vmatmul.mubr.msk.bf16.gmra.mrb[16].mxu0 %vm523_vm3, %v493_v43 }
  0x66   : > { %6532 = vmatprep.mubr.msk.bf16.mxu0 %vm523_vm3, %v494_v44 }
  0x6d   : > { %6533 = vmatmul.mubr.msk.bf16.gmra.mrb[20].mxu0 %vm523_vm3, %v495_v49 }
  0x6e   : > { %6536 = vmatprep.mubr.msk.bf16.mxu0 %vm523_vm3, %v496_v50 }
  0x75   : > { %6537 = vmatmul.mubr.msk.bf16.gmra.mrb[24].mxu0 %vm523_vm3, %v497_v55 }
  0x76   : > { %6540 = vmatprep.mubr.msk.bf16.mxu0 %vm523_vm3, %v498_v56 }
  0x7d   : > { %6541 = vmatmul.mubr.msk.bf16.gmra.mrb[28].mxu0 %vm523_vm3, %v499_v59 }
 0x118   : > { %v6514_v1 = vpop.f32.mrb[0].mxu0 }
 0x119   : > { %v615_v2 = vadd.f32 %v6514_v1, %v7250_v0  ;;  %v606_v3 = vpop.f32.mrb[1].mxu0 }
 0x11a   : > { %v607_v4 = vadd.f32 %v7250_v0, %v606_v3  ;;  %v6515_v5 = vpop.f32.mrb[2].mxu0 }
 0x11b   : > { %v735_v6 = vmax.f32 %v615_v2, 0.0  ;;  %v618_v7 = vadd.f32 %v6515_v5, %v7250_v0  ;;  %v609_v8 = vpop.f32.mrb[3].mxu0 }
 0x11c   : > { %v610_v9 = vadd.f32 %v7250_v0, %v609_v8  ;;  %v733_v11 = vmax.f32 %v607_v4, 0.0 }
 0x11d   : > { %v736_v10 = vmax.f32 %v618_v7, 0.0  ;;  %1042 = vrot.lane.b32.xlu1 %v735_v6, %s9608_s25  ;;  %2794 = vrot.lane.b32.xlu0 %v735_v6, %s6956_s14 }
 0x11e   : > { %v734_v12 = vmax.f32 %v610_v9, 0.0 }
 0x11f   : > { %v766_v13 = vpack.c.bf16 %v736_v10, %v735_v6 }
 0x120   : > { %v765_v14 = vpack.c.bf16 %v734_v12, %v733_v11  ;;  %v6518_v15 = vpop.f32.mrb[4].mxu0 }
 0x121   : > { %1044 = vrot.lane.b32.xlu1 %v736_v10, %s9608_s25  ;;  %1038 = vrot.lane.b32.xlu0 %v733_v11, %s9608_s25  ;;  %v631_v16 = vadd.f32 %v6518_v15, %v7250_v0  ;;  %v622_v17 = vpop.f32.mrb[5].mxu0 }
 0x122   : > { %6546 = vmatprep.mubr.msk.bf16.mxu1 %vm796_vm4, %v765_v14  ;;  %v623_v18 = vadd.f32 %v7250_v0, %v622_v17  ;;  %v6519_v19 = vpop.f32.mrb[6].mxu0 }
 0x123   : > { %v739_v20 = vmax.f32 %v631_v16, 0.0  ;;  %6547 = vmatmul.mubr.msk.bf16.vlgmr.msra.gmra.mrb[0].mxu1 %vm796_vm4, %v766_v13  ;;  %v634_v21 = vadd.f32 %v6519_v19, %v7250_v0  ;;  %v625_v22 = vpop.f32.mrb[7].mxu0 }
 0x124   : > { %v737_v23 = vmax.f32 %v623_v18, 0.0  ;;  %v626_v24 = vadd.f32 %v7250_v0, %v625_v22 }
 0x125   : > { %v740_v25 = vmax.f32 %v634_v21, 0.0  ;;  %2796 = vrot.lane.b32.xlu1 %v736_v10, %s6956_s14  ;;  %2790 = vrot.lane.b32.xlu0 %v733_v11, %s6956_s14 }
 0x126   : > { %v738_v26 = vmax.f32 %v626_v24, 0.0 }
 0x127   : > { %v768_v27 = vpack.c.bf16 %v740_v25, %v739_v20 }
 0x128   : > { %v767_v28 = vpack.c.bf16 %v738_v26, %v737_v23  ;;  %v6522_v29 = vpop.f32.mrb[8].mxu0 }
 0x129   : > { %2792 = vrot.lane.b32.xlu1 %v734_v12, %s6956_s14  ;;  %1040 = vrot.lane.b32.xlu0 %v734_v12, %s9608_s25  ;;  %v647_v30 = vadd.f32 %v6522_v29, %v7250_v0  ;;  %v638_v31 = vpop.f32.mrb[9].mxu0 }
 0x12a   : > { %6550 = vmatprep.mubr.msk.bf16.mxu1 %vm796_vm4, %v767_v28  ;;  %v639_v32 = vadd.f32 %v7250_v0, %v638_v31  ;;  %v6523_v33 = vpop.f32.mrb[10].mxu0 }
 0x12b   : > { %6551 = vmatmul.mubr.msk.bf16.gmra.mrb[4].mxu1 %vm796_vm4, %v768_v27  ;;  %v743_v34 = vmax.f32 %v647_v30, 0.0  ;;  %v650_v35 = vadd.f32 %v6523_v33, %v7250_v0  ;;  %v641_v36 = vpop.f32.mrb[11].mxu0 }
 0x12c   : > { %v7275_v37 = vmax.f32 %v639_v32, 0.0  ;;  %v642_v38 = vadd.f32 %v7250_v0, %v641_v36 }
 0x12d   : > { %1052 = vrot.lane.b32.xlu1 %v740_v25, %s9608_s25  ;;  %1050 = vrot.lane.b32.xlu0 %v739_v20, %s9608_s25  ;;  %v744_v39 = vmax.f32 %v650_v35, 0.0 }
 0x12e   : > { %v7280_v40 = vmax.f32 %v642_v38, 0.0 }
 0x12f   : > { %v770_v41 = vpack.c.bf16 %v744_v39, %v743_v34 }
 0x130   : > { %v769_v42 = vpack.c.bf16 %v7280_v40, %v7275_v37  ;;  %v6526_v43 = vpop.f32.mrb[12].mxu0 }
 0x131   : > { %2804 = vrot.lane.b32.xlu1 %v740_v25, %s6956_s14  ;;  %2802 = vrot.lane.b32.xlu0 %v739_v20, %s6956_s14  ;;  %v663_v44 = vadd.f32 %v6526_v43, %v7250_v0  ;;  %v654_v45 = vpop.f32.mrb[13].mxu0 }
 0x132   : > { %6554 = vmatprep.mubr.msk.bf16.mxu1 %vm796_vm4, %v769_v42  ;;  %v655_v46 = vadd.f32 %v7250_v0, %v654_v45  ;;  %v6527_v47 = vpop.f32.mrb[14].mxu0 }
 0x133   : > { %6555 = vmatmul.mubr.msk.bf16.gmra.mrb[8].mxu1 %vm796_vm4, %v770_v41  ;;  %v7290_v48 = vmax.f32 %v663_v44, 0.0  ;;  %v666_v49 = vadd.f32 %v6527_v47, %v7250_v0  ;;  %v657_v50 = vpop.f32.mrb[15].mxu0 }
 0x134   : > { %v7293_v51 = vmax.f32 %v655_v46, 0.0  ;;  %v658_v52 = vadd.f32 %v7250_v0, %v657_v50  ;;  %v7413_v50 = vpop.permute.xlu1 %3684 }
 0x135   : > { %1048 = vrot.lane.b32.xlu1 %v738_v26, %s9608_s25  ;;  %1046 = vrot.lane.b32.xlu0 %v737_v23, %s9608_s25  ;;  %v7298_v53 = vmax.f32 %v666_v49, 0.0  ;;  %9640 = vst [vmem:[#allocation11_spill] sm:$0xff] %v7413_v50 }
 0x136   : > { %v7300_v54 = vmax.f32 %v658_v52, 0.0  ;;  %v6813_v52 = vld [vmem:[%s9596_s3] sm:$0xff]  }
 0x137   : > { %v772_v55 = vpack.c.bf16 %v7298_v53, %v7290_v48 }
 0x138   : > { %v771_v56 = vpack.c.bf16 %v7300_v54, %v7293_v51  ;;  %v6530_v57 = vpop.f32.mrb[16].mxu0 }
 0x139   : > { %2800 = vrot.lane.b32.xlu1 %v738_v26, %s6956_s14  ;;  %2798 = vrot.lane.b32.xlu0 %v737_v23, %s6956_s14  ;;  %v679_v58 = vadd.f32 %v6530_v57, %v7250_v0  ;;  %v670_v59 = vpop.f32.mrb[17].mxu0 }
 0x13a   : > { %6558 = vmatprep.mubr.msk.bf16.mxu1 %vm796_vm4, %v771_v56  ;;  %v671_v60 = vadd.f32 %v7250_v0, %v670_v59  ;;  %v6531_v61 = vpop.f32.mrb[18].mxu0 }
 0x13b   : > { %6559 = vmatmul.mubr.msk.bf16.gmra.mrb[12].mxu1 %vm796_vm4, %v772_v55  ;;  %v7312_v62 = vmax.f32 %v679_v58, 0.0  ;;  %v682_v63 = vadd.f32 %v6531_v61, %v7250_v0  ;;  %v673_v1 = vpop.f32.mrb[19].mxu0  ;;  %v6814_v55 = vld [vmem:[%s9596_s3 + $0x8] sm:$0xff]   ;;  %v6815_v58 = vld [vmem:[%s9596_s3 + $0x10] sm:$0xff]   ;;  %v6816_v61 = vld [vmem:[%s9596_s3 + $0x18] sm:$0xff]  }
 0x13c   : > { %v7315_v2 = vmax.f32 %v671_v60, 0.0  ;;  %v674_v3 = vadd.f32 %v7250_v0, %v673_v1  ;;  %v6817_v1 = vld [vmem:[%s9596_s3 + $0x20] sm:$0xff]  }
 0x13d   : > { %1060 = vrot.lane.b32.xlu1 %v744_v39, %s9608_s25  ;;  %1058 = vrot.lane.b32.xlu0 %v743_v34, %s9608_s25  ;;  %v7320_v4 = vmax.f32 %v682_v63, 0.0 }
 0x13e   : > { %v7322_v5 = vmax.f32 %v674_v3, 0.0 }
 0x13f   : > { %v774_v6 = vpack.c.bf16 %v7320_v4, %v7312_v62 }
 0x140   : > { %v773_v7 = vpack.c.bf16 %v7322_v5, %v7315_v2  ;;  %v6534_v8 = vpop.f32.mrb[20].mxu0 }
 0x141   : > { %2812 = vrot.lane.b32.xlu1 %v744_v39, %s6956_s14  ;;  %2810 = vrot.lane.b32.xlu0 %v743_v34, %s6956_s14  ;;  %v695_v9 = vadd.f32 %v6534_v8, %v7250_v0  ;;  %v686_v10 = vpop.f32.mrb[21].mxu0 }
 0x142   : > { %6562 = vmatprep.mubr.msk.bf16.mxu1 %vm796_vm4, %v773_v7  ;;  %v687_v11 = vadd.f32 %v7250_v0, %v686_v10  ;;  %v6535_v12 = vpop.f32.mrb[22].mxu0  ;;  %v6819_v7 = vld [vmem:[%s9596_s3 + $0x30] sm:$0xff]  }
 0x143   : > { %6563 = vmatmul.mubr.msk.bf16.gmra.mrb[16].mxu1 %vm796_vm4, %v774_v6  ;;  %v7334_v13 = vmax.f32 %v695_v9, 0.0  ;;  %v698_v14 = vadd.f32 %v6535_v12, %v7250_v0  ;;  %v689_v15 = vpop.f32.mrb[23].mxu0 }
 0x144   : > { %v753_v16 = vmax.f32 %v687_v11, 0.0  ;;  %v690_v17 = vadd.f32 %v7250_v0, %v689_v15 }
 0x145   : > { %1056 = vrot.lane.b32.xlu1 %v7280_v40, %s9608_s25  ;;  %1054 = vrot.lane.b32.xlu0 %v7275_v37, %s9608_s25  ;;  %v756_v18 = vmax.f32 %v698_v14, 0.0 }
 0x146   : > { %v754_v19 = vmax.f32 %v690_v17, 0.0 }
 0x147   : > { %v776_v20 = vpack.c.bf16 %v756_v18, %v7334_v13 }
 0x148   : > { %v775_v21 = vpack.c.bf16 %v754_v19, %v753_v16  ;;  %v6538_v22 = vpop.f32.mrb[24].mxu0 }
 0x149   : > { %2808 = vrot.lane.b32.xlu1 %v7280_v40, %s6956_s14  ;;  %2806 = vrot.lane.b32.xlu0 %v7275_v37, %s6956_s14  ;;  %v711_v23 = vadd.f32 %v6538_v22, %v7250_v0  ;;  %v702_v24 = vpop.f32.mrb[25].mxu0 }
 0x14a   : > { %6566 = vmatprep.mubr.msk.bf16.mxu1 %vm796_vm4, %v775_v21  ;;  %v703_v25 = vadd.f32 %v7250_v0, %v702_v24  ;;  %v6539_v26 = vpop.f32.mrb[26].mxu0 }
 0x14b   : > { %6567 = vmatmul.mubr.msk.bf16.gmra.mrb[20].mxu1 %vm796_vm4, %v776_v20  ;;  %v759_v27 = vmax.f32 %v711_v23, 0.0  ;;  %v714_v28 = vadd.f32 %v6539_v26, %v7250_v0  ;;  %v705_v29 = vpop.f32.mrb[27].mxu0 }
 0x14c   : > { %v757_v30 = vmax.f32 %v703_v25, 0.0  ;;  %v706_v31 = vadd.f32 %v7250_v0, %v705_v29 }
 0x14d   : > { %1068 = vrot.lane.b32.xlu1 %v7298_v53, %s9608_s25  ;;  %1066 = vrot.lane.b32.xlu0 %v7290_v48, %s9608_s25  ;;  %v760_v32 = vmax.f32 %v714_v28, 0.0 }
 0x14e   : > { %v758_v33 = vmax.f32 %v706_v31, 0.0  ;;  %v6821_v31 = vld [vmem:[%s9596_s3 + $0x40] sm:$0xff]  }
 0x14f   : > { %v778_v34 = vpack.c.bf16 %v760_v32, %v759_v27 }
 0x150   : > { %v777_v35 = vpack.c.bf16 %v758_v33, %v757_v30  ;;  %v6542_v36 = vpop.f32.mrb[28].mxu0 }
 0x151   : > { %2820 = vrot.lane.b32.xlu1 %v7298_v53, %s6956_s14  ;;  %2818 = vrot.lane.b32.xlu0 %v7290_v48, %s6956_s14  ;;  %v727_v37 = vadd.f32 %v6542_v36, %v7250_v0  ;;  %v718_v38 = vpop.f32.mrb[29].mxu0  ;;  %v9614_v53 = vmov 0  }
 0x152   : > { %6570 = vmatprep.mubr.msk.bf16.mxu1 %vm796_vm4, %v777_v35  ;;  %v719_v39 = vadd.f32 %v7250_v0, %v718_v38  ;;  %v6543_v40 = vpop.f32.mrb[30].mxu0  ;;  %2324 = vmatprep.subr.bf16.mxu1 %v9614_v53 }
 0x153   : > { %6571 = vmatmul.mubr.msk.bf16.gmra.mrb[24].mxu1 %vm796_vm4, %v778_v34  ;;  %v763_v41 = vmax.f32 %v727_v37, 0.0  ;;  %v730_v42 = vadd.f32 %v6543_v40, %v7250_v0  ;;  %v721_v43 = vpop.f32.mrb[31].mxu0  ;;  %4069 = vmatprep.subr.bf16.mxu0 %v9614_v53 }
 0x154   : > { %v761_v44 = vmax.f32 %v719_v39, 0.0  ;;  %v722_v45 = vadd.f32 %v7250_v0, %v721_v43  ;;  %v7411_v0 = vpop.permute.xlu0 %3366  ;;  %2325 = vmatpush1.bf16.msra.mxu1 %v6813_v52 }
 0x155   : > { %1064 = vrot.lane.b32.xlu1 %v7300_v54, %s9608_s25  ;;  %1062 = vrot.lane.b32.xlu0 %v7293_v51, %s9608_s25  ;;  %v7371_v46 = vmax.f32 %v730_v42, 0.0 }
 0x156   : > { %v7373_v47 = vmax.f32 %v722_v45, 0.0  ;;  %2326 = vmatprep.subr.bf16.mxu1 %v9614_v53 }
 0x157   : > { %v780_v48 = vpack.c.bf16 %v7371_v46, %v763_v41 }
 0x158   : > { %v779_v49 = vpack.c.bf16 %v7373_v47, %v761_v44  ;;  %2327 = vmatpush1.bf16.msra.mxu1 %v6814_v55 }
 0x159   : > { %2816 = vrot.lane.b32.xlu1 %v7300_v54, %s6956_s14  ;;  %2814 = vrot.lane.b32.xlu0 %v7293_v51, %s6956_s14  ;;  %v7417_v51 = vpop.permute.xlu0 %1616  ;;  %v7424_v54 = vpop.permute.xlu1 %3414 }
 0x15a   : > { %6574 = vmatprep.mubr.msk.bf16.mxu1 %vm796_vm4, %v779_v49  ;;  %2328 = vmatprep.subr.bf16.mxu1 %v9614_v53 }
 0x15b   : > { %6575 = vmatmul.mubr.msk.bf16.gmra.mrb[28].mxu1 %vm796_vm4, %v780_v48 }
 0x15c   : > { %2329 = vmatpush1.bf16.msra.mxu1 %v6815_v58 }
 0x15d   : > { %2826 = vrot.lane.b32.xlu1 %v7312_v62, %s6956_s14  ;;  %1074 = vrot.lane.b32.xlu0 %v7312_v62, %s9608_s25  ;;  %v7434_v56 = vpop.permute.xlu0 %3636  ;;  %v7436_v57 = vpop.permute.xlu1 %1664 }
 0x15e   : > { %9641 = vst [vmem:[#allocation12_spill] sm:$0xff] %v7434_v56  ;;  %2330 = vmatprep.subr.bf16.mxu1 %v9614_v53 }
 0x160   : > { %2331 = vmatpush1.bf16.msra.mxu1 %v6816_v61 }
 0x161   : > { %1076 = vrot.lane.b32.xlu1 %v7320_v4, %s9608_s25  ;;  %1070 = vrot.lane.b32.xlu0 %v7315_v2, %s9608_s25 }
 0x162   : > { %2332 = vmatprep.subr.bf16.mxu1 %v9614_v53 }
 0x164   : > { %2333 = vmatpush1.bf16.msra.mxu1 %v6817_v1 }
 0x165   : > { %1072 = vrot.lane.b32.xlu1 %v7322_v5, %s9608_s25  ;;  %2822 = vrot.lane.b32.xlu0 %v7315_v2, %s6956_s14  ;;  %v6818_v2 = vld [vmem:[%s9596_s3 + $0x28] sm:$0xff]  }
 0x166   : > { %2334 = vmatprep.subr.bf16.mxu1 %v9614_v53 }
 0x168   : > { %2335 = vmatpush1.bf16.msra.mxu1 %v6818_v2 }
 0x169   : > { %2824 = vrot.lane.b32.xlu1 %v7322_v5, %s6956_s14  ;;  %2828 = vrot.lane.b32.xlu0 %v7320_v4, %s6956_s14 }
 0x16a   : > { %2336 = vmatprep.subr.bf16.mxu1 %v9614_v53 }
 0x16c   : > { %2337 = vmatpush1.bf16.msra.mxu1 %v6819_v7  ;;  %v6825_v7 = vld [vmem:[%s9598_s5 + $0x18] sm:$0xff]  }
 0x16d   : > { %2834 = vrot.lane.b32.xlu1 %v7334_v13, %s6956_s14  ;;  %1082 = vrot.lane.b32.xlu0 %v7334_v13, %s9608_s25 }
 0x16e   : > { %2338 = vmatprep.subr.bf16.mxu1 %v9614_v53 }
 0x171   : > { %1078 = vrot.lane.b32.xlu1 %v753_v16, %s9608_s25  ;;  %2830 = vrot.lane.b32.xlu0 %v753_v16, %s6956_s14 }
 0x175   : > { %1084 = vrot.lane.b32.xlu1 %v756_v18, %s9608_s25  ;;  %2836 = vrot.lane.b32.xlu0 %v756_v18, %s6956_s14 }
 0x179   : > { %2832 = vrot.lane.b32.xlu1 %v754_v19, %s6956_s14  ;;  %1080 = vrot.lane.b32.xlu0 %v754_v19, %s9608_s25  ;;  %v6820_v19 = vld [vmem:[%s9596_s3 + $0x38] sm:$0xff]  }
 0x17a   : > { %2339 = vmatpush1.bf16.msra.mxu1 %v6820_v19 }
 0x17b   : > { %2340 = vmatprep.subr.bf16.mxu1 %v9614_v53 }
 0x17d   : > { %2842 = vrot.lane.b32.xlu1 %v759_v27, %s6956_s14  ;;  %1090 = vrot.lane.b32.xlu0 %v759_v27, %s9608_s25 }
 0x17e   : > { %2341 = vmatpush1.bf16.msra.mxu1 %v6821_v31 }
 0x181   : > { %1086 = vrot.lane.b32.xlu1 %v757_v30, %s9608_s25  ;;  %2838 = vrot.lane.b32.xlu0 %v757_v30, %s6956_s14 }
 0x185   : > { %1092 = vrot.lane.b32.xlu1 %v760_v32, %s9608_s25  ;;  %2844 = vrot.lane.b32.xlu0 %v760_v32, %s6956_s14 }
 0x189   : > { %2840 = vrot.lane.b32.xlu1 %v758_v33, %s6956_s14  ;;  %1088 = vrot.lane.b32.xlu0 %v758_v33, %s9608_s25 }
 0x18d   : > { %2850 = vrot.lane.b32.xlu1 %v763_v41, %s6956_s14  ;;  %1098 = vrot.lane.b32.xlu0 %v763_v41, %s9608_s25  ;;  %v6822_v41 = vld [vmem:[%s9598_s5] sm:$0xff]  }
 0x18e   : > { %4070 = vmatpush1.bf16.msra.mxu0 %v6822_v41 }
 0x18f   : > { %v1043_v59 = vpop.permute.xlu1 %1042  ;;  %v2795_v60 = vpop.permute.xlu0 %2794  ;;  %4071 = vmatprep.subr.bf16.mxu0 %v9614_v53 }
 0x190   : > { %1137 = vst.msk [vmem:[#allocation2 + $0x31] sm:$0xff] %vm796_vm4, %v1043_v59 }
 0x191   : > { %1094 = vrot.lane.b32.xlu1 %v761_v44, %s9608_s25  ;;  %2846 = vrot.lane.b32.xlu0 %v761_v44, %s6956_s14 }
 0x193   : > { %v1045_v62 = vpop.permute.xlu1 %1044  ;;  %v1039_v63 = vpop.permute.xlu0 %1038 }
 0x194   : > { %1138 = vst.msk [vmem:[#allocation2 + $0x39] sm:$0xff] %vm796_vm4, %v1045_v62  ;;  %1135 = vst.msk [vmem:[#allocation2 + $0x19] sm:$0xff] %vm796_vm4, %v1039_v63 }
 0x195   : > { %1100 = vrot.lane.b32.xlu1 %v7371_v46, %s9608_s25  ;;  %2852 = vrot.lane.b32.xlu0 %v7371_v46, %s6956_s14  ;;  %v6823_v46 = vld [vmem:[%s9598_s5 + $0x8] sm:$0xff]  }
 0x196   : > { %4072 = vmatpush1.bf16.msra.mxu0 %v6823_v46 }
 0x197   : > { %v2797_v3 = vpop.permute.xlu1 %2796  ;;  %v2791_v4 = vpop.permute.xlu0 %2790  ;;  %v1171_v5 = vld [vmem:[#allocation2 + $0x30] sm:$0xff]  ;;  %4073 = vmatprep.subr.bf16.mxu0 %v9614_v53 }
 0x198   : > { %v1504_v6 = vld [vmem:[#allocation2 + $0x31] sm:$0xff] }
 0x199   : > { %2848 = vrot.lane.b32.xlu1 %v7373_v47, %s6956_s14  ;;  %1096 = vrot.lane.b32.xlu0 %v7373_v47, %s9608_s25 }
 0x19b   : > { %v1172_v8 = vld [vmem:[#allocation2 + $0x38] sm:$0xff]  ;;  %v2793_v11 = vpop.permute.xlu1 %2792  ;;  %v1041_v12 = vpop.permute.xlu0 %1040 }
 0x19c   : > { %v1267_v9 = vld [vmem:[#allocation2 + $0x32] sm:$0xff]  ;;  %v1268_v10 = vld [vmem:[#allocation2 + $0x3a] sm:$0xff]  ;;  %1136 = vst.msk [vmem:[#allocation2 + $0x21] sm:$0xff] %vm796_vm4, %v1041_v12  ;;  %v7474_v14 = vpack.c.bf16 %v1172_v8, %v1171_v5 }
 0x19d   : > { %v1584_v13 = vpack.c.bf16 %v1268_v10, %v1267_v9  ;;  %v1505_v15 = vld [vmem:[#allocation2 + $0x39] sm:$0xff]  ;;  %2888 = vst.msk [vmem:[#allocation2 + $0x31] sm:$0xff] %vm796_vm4, %v2795_v60 }
 0x19e   : > { %v1536_v16 = vpack.c.bf16 %v1505_v15, %v1504_v6  ;;  %2889 = vst.msk [vmem:[#allocation2 + $0x39] sm:$0xff] %vm796_vm4, %v2797_v3  ;;  %1856 = vrot.lane.b32.xlu1 %v7474_v14, %s6956_s14  ;;  %v1169_v20 = vld [vmem:[#allocation2 + $0x18] sm:$0xff] }
 0x19f   : > { %6321 = vmatprep.mubr.msk.bf16.mxu1 %vm796_vm4, %v1584_v13  ;;  %v1053_v17 = vpop.permute.xlu1 %1052  ;;  %v1051_v18 = vpop.permute.xlu0 %1050  ;;  %v1359_v21 = vld [vmem:[#allocation2 + $0x19] sm:$0xff] }
 0x1a0   : > { %1904 = vrot.lane.b32.xlu0 %v1536_v16, %s9608_s25  ;;  %1142 = vst.msk [vmem:[#allocation2 + $0x69] sm:$0xff] %vm796_vm4, %v1053_v17  ;;  %1141 = vst.msk [vmem:[#allocation2 + $0x61] sm:$0xff] %vm796_vm4, %v1051_v18  ;;  %s9741_s25 = smov 24  }
 0x1a2   : > { %1714 = vrot.lane.b32.xlu1 %v7474_v14, %s6958_s13 }
 0x1a3   : > { %v1170_v22 = vld [vmem:[#allocation2 + $0x20] sm:$0xff]  ;;  %v2805_v23 = vpop.permute.xlu1 %2804  ;;  %v2803_v24 = vpop.permute.xlu0 %2802 }
 0x1a4   : > { %1762 = vrot.lane.b32.xlu0 %v1536_v16, %s6959_s19  ;;  %v1360_v25 = vld [vmem:[#allocation2 + $0x21] sm:$0xff]  ;;  %v7517_v40 = vpack.c.bf16 %v1170_v22, %v1169_v20  ;;  %v3206_v61 = vld [vmem:[#allocation2 + $0x30] sm:$0xff] }
 0x1a5   : > { %v1407_v26 = vld [vmem:[#allocation2 + $0x1a] sm:$0xff]  ;;  %v3302_v27 = vld [vmem:[#allocation2 + $0x32] sm:$0xff]  ;;  %v1408_v29 = vld [vmem:[#allocation2 + $0x22] sm:$0xff]  ;;  %v1391_v44 = vpack.c.bf16 %v1360_v25, %v1359_v21 }
 0x1a6   : > { %v3303_v28 = vld [vmem:[#allocation2 + $0x3a] sm:$0xff]  ;;  %2886 = vst.msk [vmem:[#allocation2 + $0x19] sm:$0xff] %vm796_vm4, %v2791_v4  ;;  %2887 = vst.msk [vmem:[#allocation2 + $0x21] sm:$0xff] %vm796_vm4, %v2793_v11  ;;  %1810 = vrot.lane.b32.xlu1 %v1584_v13, %s9612_s26  ;;  %v1439_v45 = vpack.c.bf16 %v1408_v29, %v1407_v26  ;;  %v3254_v63 = vld [vmem:[#allocation2 + $0x31] sm:$0xff] }
 0x1a7   : > { %v7493_v30 = vpack.c.bf16 %v3303_v28, %v3302_v27  ;;  %v7500_v32 = vld [vmem:[#allocation2 + $0x6a] sm:$0xff]  ;;  %v7502_v33 = vld [vmem:[#allocation2 + $0x60] sm:$0xff]  ;;  %v1049_v35 = vpop.permute.xlu1 %1048  ;;  %v1047_v36 = vpop.permute.xlu0 %1046  ;;  %v3207_v62 = vld [vmem:[#allocation2 + $0x38] sm:$0xff] }
 0x1a8   : > { %v7504_v34 = vld [vmem:[#allocation2 + $0x68] sm:$0xff]  ;;  %1620 = vrot.lane.b32.xlu0 %v1536_v16, %s9631_s16  ;;  %1140 = vst.msk [vmem:[#allocation2 + $0x51] sm:$0xff] %vm796_vm4, %v1049_v35  ;;  %1139 = vst.msk [vmem:[#allocation2 + $0x49] sm:$0xff] %vm796_vm4, %v1047_v36  ;;  %v3255_v1 = vld [vmem:[#allocation2 + $0x39] sm:$0xff]  ;;  %v3238_v5 = vpack.c.bf16 %v3207_v62, %v3206_v61 }
 0x1a9   : > { %6365 = vmatprep.mubr.msk.bf16.mxu0 %vm796_vm4, %v7493_v30  ;;  %v7509_v37 = vld [vmem:[#allocation2 + $0x62] sm:$0xff]  ;;  %v6824_v4 = vld [vmem:[%s9598_s5 + $0x10] sm:$0xff]   ;;  %v3286_v6 = vpack.c.bf16 %v3255_v1, %v3254_v63 }
 0x1aa   : > { %v7513_v38 = vld [vmem:[#allocation2 + $0x61] sm:$0xff]  ;;  %v7515_v39 = vld [vmem:[#allocation2 + $0x69] sm:$0xff]  ;;  %1668 = vrot.lane.b32.xlu1 %v1584_v13, %s9610_s15  ;;  %4074 = vmatpush1.bf16.msra.mxu0 %v6824_v4 }
 0x1ab   : > { %2892 = vst.msk [vmem:[#allocation2 + $0x61] sm:$0xff] %vm796_vm4, %v2803_v24  ;;  %2893 = vst.msk [vmem:[#allocation2 + $0x69] sm:$0xff] %vm796_vm4, %v2805_v23  ;;  %v2801_v42 = vpop.permute.xlu1 %2800  ;;  %v2799_v43 = vpop.permute.xlu0 %2798  ;;  %4075 = vmatprep.subr.bf16.mxu0 %v9614_v53  ;;  %v6826_v20 = vld [vmem:[%s9598_s5 + $0x20] sm:$0xff]   ;;  %v6827_v21 = vld [vmem:[%s9598_s5 + $0x28] sm:$0xff]   ;;  %v1538_v31 = vpack.c.bf16 %v7515_v39, %v7513_v38  ;;  %v7613_v39 = vpack.c.bf16 %v7504_v34, %v7502_v33 }
 0x1ac   : > { %1712 = vrot.lane.b32.xlu0 %v7517_v40, %s6958_s13  ;;  %v6828_v38 = vld [vmem:[%s9598_s5 + $0x30] sm:$0xff]  }
 0x1ad   : > { %v3062_v61 = vld [vmem:[#allocation2 + $0x18] sm:$0xff]  ;;  %v3063_v62 = vld [vmem:[#allocation2 + $0x20] sm:$0xff] }
 0x1ae   : > { %1760 = vrot.lane.b32.xlu1 %v1391_v44, %s6959_s19  ;;  %4076 = vmatpush1.bf16.msra.mxu0 %v6825_v7  ;;  %v3094_v4 = vpack.c.bf16 %v3063_v62, %v3062_v61 }
 0x1af   : > { %v7532_v47 = vld [vmem:[#allocation2 + $0x52] sm:$0xff]  ;;  %v7534_v48 = vld [vmem:[#allocation2 + $0x48] sm:$0xff]  ;;  %v1061_v52 = vpop.permute.xlu1 %1060  ;;  %v1059_v55 = vpop.permute.xlu0 %1058  ;;  %4077 = vmatprep.subr.bf16.mxu0 %v9614_v53 }
 0x1b0   : > { %v7536_v49 = vld [vmem:[#allocation2 + $0x50] sm:$0xff]  ;;  %1808 = vrot.lane.b32.xlu0 %v1439_v45, %s9612_s26  ;;  %1146 = vst.msk [vmem:[#allocation2 + $0x99] sm:$0xff] %vm796_vm4, %v1061_v52  ;;  %1145 = vst.msk [vmem:[#allocation2 + $0x91] sm:$0xff] %vm796_vm4, %v1059_v55 }
 0x1b1   : > { %v7539_v58 = vld [vmem:[#allocation2 + $0x4a] sm:$0xff] }
 0x1b2   : > { %v7543_v59 = vld [vmem:[#allocation2 + $0x49] sm:$0xff]  ;;  %v7545_v60 = vld [vmem:[#allocation2 + $0x51] sm:$0xff]  ;;  %1618 = vrot.lane.b32.xlu1 %v1391_v44, %s9631_s16  ;;  %4078 = vmatpush1.bf16.msra.mxu0 %v6826_v20  ;;  %v3110_v20 = vld [vmem:[#allocation2 + $0x19] sm:$0xff] }
 0x1b3   : > { %2890 = vst.msk [vmem:[#allocation2 + $0x49] sm:$0xff] %vm796_vm4, %v2799_v43  ;;  %2891 = vst.msk [vmem:[#allocation2 + $0x51] sm:$0xff] %vm796_vm4, %v2801_v42  ;;  %v2813_v2 = vpop.permute.xlu1 %2812  ;;  %v2811_v3 = vpop.permute.xlu0 %2810  ;;  %4079 = vmatprep.subr.bf16.mxu0 %v9614_v53  ;;  %v6829_v42 = vld [vmem:[%s9598_s5 + $0x38] sm:$0xff]  }
 0x1b4   : > { %1666 = vrot.lane.b32.xlu0 %v1439_v45, %s9610_s15  ;;  %s9642_s15 = smov 112  }
 0x1b6   : > { %3606 = vrot.lane.b32.xlu1 %v3238_v5, %s6956_s14  ;;  %4080 = vmatpush1.bf16.msra.mxu0 %v6827_v21  ;;  %v3111_v21 = vld [vmem:[#allocation2 + $0x21] sm:$0xff] }
 0x1b7   : > { %v1228_v8 = vld [vmem:[#allocation2 + $0x99] sm:$0xff]  ;;  %v7562_v10 = vld [vmem:[#allocation2 + $0x90] sm:$0xff]  ;;  %v1057_v11 = vpop.permute.xlu1 %1056  ;;  %v1055_v12 = vpop.permute.xlu0 %1054  ;;  %4081 = vmatprep.subr.bf16.mxu0 %v9614_v53 }
 0x1b8   : > { %v7560_v9 = vld [vmem:[#allocation2 + $0x9a] sm:$0xff]  ;;  %3654 = vrot.lane.b32.xlu0 %v3286_v6, %s9642_s15  ;;  %v1227_v15 = vld [vmem:[#allocation2 + $0x91] sm:$0xff]  ;;  %1144 = vst.msk [vmem:[#allocation2 + $0x81] sm:$0xff] %vm796_vm4, %v1057_v11  ;;  %1143 = vst.msk [vmem:[#allocation2 + $0x79] sm:$0xff] %vm796_vm4, %v1055_v12 }
 0x1b9   : > { %v7565_v13 = vld [vmem:[#allocation2 + $0x98] sm:$0xff]  ;;  %v7573_v17 = vpack.c.bf16 %v1228_v8, %v1227_v15 }
 0x1ba   : > { %v7567_v16 = vld [vmem:[#allocation2 + $0x92] sm:$0xff]  ;;  %3464 = vrot.lane.b32.xlu1 %v3238_v5, %s6958_s13  ;;  %4082 = vmatpush1.bf16.msra.mxu0 %v6828_v38  ;;  %v3158_v5 = vld [vmem:[#allocation2 + $0x1a] sm:$0xff] }
 0x1bb   : > { %2896 = vst.msk [vmem:[#allocation2 + $0x91] sm:$0xff] %vm796_vm4, %v2811_v3  ;;  %2897 = vst.msk [vmem:[#allocation2 + $0x99] sm:$0xff] %vm796_vm4, %v2813_v2  ;;  %v2809_v18 = vpop.permute.xlu1 %2808  ;;  %v2807_v19 = vpop.permute.xlu0 %2806  ;;  %4083 = vmatprep.subr.bf16.mxu0 %v9614_v53  ;;  %v6830_v2 = vld [vmem:[%s9598_s5 + $0x40] sm:$0xff]   ;;  %v7645_v3 = vpack.c.bf16 %v7500_v32, %v7509_v37 }
 0x1bc   : > { %3512 = vrot.lane.b32.xlu0 %v3286_v6, %s6959_s19 }
 0x1be   : > { %3560 = vrot.lane.b32.xlu1 %v7493_v30, %s9612_s26  ;;  %4084 = vmatpush1.bf16.msra.mxu0 %v6829_v42  ;;  %s9737_s26 = smov 16  }
 0x1bf   : > { %v7587_v22 = vld [vmem:[#allocation2 + $0x82] sm:$0xff]  ;;  %v7589_v23 = vld [vmem:[#allocation2 + $0x78] sm:$0xff]  ;;  %v1069_v25 = vpop.permute.xlu1 %1068  ;;  %v1067_v26 = vpop.permute.xlu0 %1066  ;;  %4085 = vmatprep.subr.bf16.mxu0 %v9614_v53 }
 0x1c0   : > { %v7591_v24 = vld [vmem:[#allocation2 + $0x80] sm:$0xff]  ;;  %3370 = vrot.lane.b32.xlu0 %v3286_v6, %s9631_s16  ;;  %1150 = vst.msk [vmem:[#allocation2 + $0xc9] sm:$0xff] %vm796_vm4, %v1069_v25  ;;  %1149 = vst.msk [vmem:[#allocation2 + $0xc1] sm:$0xff] %vm796_vm4, %v1067_v26 }
 0x1c1   : > { %v7594_v27 = vld [vmem:[#allocation2 + $0x7a] sm:$0xff]  ;;  %v3159_v6 = vld [vmem:[#allocation2 + $0x22] sm:$0xff] }
 0x1c2   : > { %v1510_v28 = vld [vmem:[#allocation2 + $0x79] sm:$0xff]  ;;  %v1511_v29 = vld [vmem:[#allocation2 + $0x81] sm:$0xff]  ;;  %3418 = vrot.lane.b32.xlu1 %v7493_v30, %s9643_s12  ;;  %4086 = vmatpush1.bf16.msra.mxu0 %v6830_v2 }
 0x1c3   : > { %v7600_v35 = vpack.c.bf16 %v1511_v29, %v1510_v28  ;;  %2894 = vst.msk [vmem:[#allocation2 + $0x79] sm:$0xff] %vm796_vm4, %v2807_v19  ;;  %2895 = vst.msk [vmem:[#allocation2 + $0x81] sm:$0xff] %vm796_vm4, %v2809_v18  ;;  %v2821_v36 = vpop.permute.xlu1 %2820  ;;  %v2819_v41 = vpop.permute.xlu0 %2818  ;;  %5552 = vmatprep.subr.bf16.mxu0 %v9614_v53  ;;  %v3190_v19 = vpack.c.bf16 %v3159_v6, %v3158_v5  ;;  %v3142_v29 = vpack.c.bf16 %v3111_v21, %v3110_v20  ;;  %v3211_v20 = vld [vmem:[#allocation2 + $0x68] sm:$0xff] }
 0x1c4   : > { %1908 = vrot.lane.b32.xlu0 %v1538_v31, %s9642_s15  ;;  %v3258_v21 = vld [vmem:[#allocation2 + $0x61] sm:$0xff] }
 0x1c6   : > { %1860 = vrot.lane.b32.xlu1 %v7613_v39, %s6956_s14 }
 0x1c7   : > { %v1232_v30 = vld [vmem:[#allocation2 + $0xc9] sm:$0xff]  ;;  %v7623_v44 = vld [vmem:[#allocation2 + $0xc0] sm:$0xff]  ;;  %v1065_v45 = vpop.permute.xlu1 %1064  ;;  %v1063_v33 = vpop.permute.xlu0 %1062 }
 0x1c8   : > { %v7621_v43 = vld [vmem:[#allocation2 + $0xca] sm:$0xff]  ;;  %1766 = vrot.lane.b32.xlu0 %v1538_v31, %s6959_s19  ;;  %v1231_v46 = vld [vmem:[#allocation2 + $0xc1] sm:$0xff]  ;;  %1148 = vst.msk [vmem:[#allocation2 + $0xb1] sm:$0xff] %vm796_vm4, %v1065_v45  ;;  %1147 = vst.msk [vmem:[#allocation2 + $0xa9] sm:$0xff] %vm796_vm4, %v1063_v33 }
 0x1c9   : > { %v7626_v34 = vld [vmem:[#allocation2 + $0xc8] sm:$0xff]  ;;  %v7634_v55 = vpack.c.bf16 %v1232_v30, %v1231_v46 }
 0x1ca   : > { %v7628_v52 = vld [vmem:[#allocation2 + $0xc2] sm:$0xff]  ;;  %1718 = vrot.lane.b32.xlu1 %v7613_v39, %s6958_s13 }
 0x1cb   : > { %2901 = vst.msk [vmem:[#allocation2 + $0xc9] sm:$0xff] %vm796_vm4, %v2821_v36  ;;  %2900 = vst.msk [vmem:[#allocation2 + $0xc1] sm:$0xff] %vm796_vm4, %v2819_v41  ;;  %v2817_v63 = vpop.permute.xlu1 %2816  ;;  %v2815_v1 = vpop.permute.xlu0 %2814  ;;  %v7674_v41 = vpack.c.bf16 %v7536_v49, %v7534_v48  ;;  %v1537_v48 = vpack.c.bf16 %v7545_v60, %v7543_v59 }
 0x1cc   : > { %1624 = vrot.lane.b32.xlu0 %v1538_v31, %s9631_s16 }
 0x1ce   : > { %1814 = vrot.lane.b32.xlu1 %v7645_v3, %s9644_s28 }
 0x1cf   : > { %v1230_v7 = vld [vmem:[#allocation2 + $0xb1] sm:$0xff]  ;;  %v7652_v11 = vld [vmem:[#allocation2 + $0xa8] sm:$0xff]  ;;  %v2827_v12 = vpop.permute.xlu1 %2826  ;;  %v1075_v15 = vpop.permute.xlu0 %1074 }
 0x1d0   : > { %v7650_v8 = vld [vmem:[#allocation2 + $0xb2] sm:$0xff]  ;;  %3462 = vrot.lane.b32.xlu0 %v3094_v4, %s6958_s13  ;;  %v1229_v37 = vld [vmem:[#allocation2 + $0xa9] sm:$0xff]  ;;  %1153 = vst.msk [vmem:[#allocation2 + $0xf1] sm:$0xff] %vm796_vm4, %v1075_v15 }
 0x1d1   : > { %v7655_v32 = vld [vmem:[#allocation2 + $0xb0] sm:$0xff]  ;;  %v7662_v25 = vpack.c.bf16 %v1230_v7, %v1229_v37 }
 0x1d2   : > { %v7657_v18 = vld [vmem:[#allocation2 + $0xaa] sm:$0xff]  ;;  %1672 = vrot.lane.b32.xlu1 %v7645_v3, %s9643_s12 }
 0x1d3   : > { %2899 = vst.msk [vmem:[#allocation2 + $0xb1] sm:$0xff] %vm796_vm4, %v2817_v63  ;;  %2898 = vst.msk [vmem:[#allocation2 + $0xa9] sm:$0xff] %vm796_vm4, %v2815_v1  ;;  %v1077_v26 = vpop.permute.xlu1 %1076  ;;  %v1071_v28 = vpop.permute.xlu0 %1070 }
 0x1d4   : > { %3558 = vrot.lane.b32.xlu0 %v3190_v19, %s9644_s28  ;;  %1154 = vst.msk [vmem:[#allocation2 + $0xf9] sm:$0xff] %vm796_vm4, %v1077_v26  ;;  %1151 = vst.msk [vmem:[#allocation2 + $0xd9] sm:$0xff] %vm796_vm4, %v1071_v28  ;;  %v3259_v26 = vld [vmem:[#allocation2 + $0x69] sm:$0xff] }
 0x1d6   : > { %3510 = vrot.lane.b32.xlu1 %v3142_v29, %s6959_s19 }
 0x1d7   : > { %v1073_v31 = vpop.permute.xlu1 %1072  ;;  %v2823_v36 = vpop.permute.xlu0 %2822  ;;  %v7676_v38 = vld [vmem:[#allocation2 + $0xf0] sm:$0xff] }
 0x1d8   : > { %3416 = vrot.lane.b32.xlu0 %v3190_v19, %s9643_s12  ;;  %1152 = vst.msk [vmem:[#allocation2 + $0xe1] sm:$0xff] %vm796_vm4, %v1073_v31  ;;  %9645 = vst [vmem:[#allocation13_spill] sm:$0xff] %v7676_v38  ;;  %v1235_v42 = vld [vmem:[#allocation2 + $0xf1] sm:$0xff]  ;;  %v3210_v19 = vld [vmem:[#allocation2 + $0x60] sm:$0xff] }
 0x1d9   : > { %v3240_v28 = vpack.c.bf16 %v3211_v20, %v3210_v19 }
 0x1da   : > { %3368 = vrot.lane.b32.xlu1 %v3142_v29, %s9631_s16  ;;  %v3288_v29 = vpack.c.bf16 %v3259_v26, %v3258_v21  ;;  %v3171_v38 = vld [vmem:[#allocation2 + $0xb2] sm:$0xff] }
 0x1db   : > { %v7679_v30 = vld [vmem:[#allocation2 + $0xf8] sm:$0xff]  ;;  %v2825_v46 = vpop.permute.xlu1 %2824  ;;  %v2829_v61 = vpop.permute.xlu0 %2828 }
 0x1dc   : > { %9646 = vst [vmem:[#allocation14_spill] sm:$0xff] %v7679_v30  ;;  %v1236_v45 = vld [vmem:[#allocation2 + $0xf9] sm:$0xff]  ;;  %1858 = vrot.lane.b32.xlu0 %v7674_v41, %s6956_s14  ;;  %v3170_v30 = vld [vmem:[#allocation2 + $0xaa] sm:$0xff] }
 0x1dd   : > { %v7681_v33 = vld [vmem:[#allocation2 + $0xf2] sm:$0xff]  ;;  %v7685_v62 = vld [vmem:[#allocation2 + $0xfa] sm:$0xff]  ;;  %v7690_v49 = vpack.c.bf16 %v1236_v45, %v1235_v42  ;;  %v3164_v42 = vld [vmem:[#allocation2 + $0x62] sm:$0xff] }
 0x1de   : > { %9647 = vst [vmem:[#allocation15_spill] sm:$0xff] %v7681_v33  ;;  %9648 = vst [vmem:[#allocation16_spill] sm:$0xff] %v7685_v62  ;;  %v7693_v63 = vld [vmem:[#allocation2 + $0xd8] sm:$0xff]  ;;  %1906 = vrot.lane.b32.xlu1 %v1537_v48, %s9642_s15  ;;  %v3165_v45 = vld [vmem:[#allocation2 + $0x6a] sm:$0xff] }
 0x1df   : > { %2904 = vst.msk [vmem:[#allocation2 + $0xf1] sm:$0xff] %vm796_vm4, %v2827_v12  ;;  %9649 = vst [vmem:[#allocation17_spill] sm:$0xff] %v7690_v49  ;;  %v1233_v1 = vld [vmem:[#allocation2 + $0xd9] sm:$0xff]  ;;  %v1234_v4 = vld [vmem:[#allocation2 + $0xe1] sm:$0xff]  ;;  %v2835_v6 = vpop.permute.xlu1 %2834  ;;  %v1083_v7 = vpop.permute.xlu0 %1082  ;;  %v7711_v12 = vpack.c.bf16 %v7532_v47, %v7539_v58  ;;  %v3193_v20 = vpack.c.bf16 %v3165_v45, %v3164_v42 }
 0x1e0   : > { %2905 = vst.msk [vmem:[#allocation2 + $0xf9] sm:$0xff] %vm796_vm4, %v2829_v61  ;;  %9650 = vst [vmem:[#allocation18_spill] sm:$0xff] %v7693_v63  ;;  %v7696_v2 = vld [vmem:[#allocation2 + $0xe0] sm:$0xff]  ;;  %1716 = vrot.lane.b32.xlu0 %v7674_v41, %s6958_s13  ;;  %v7706_v60 = vpack.c.bf16 %v1234_v4, %v1233_v1  ;;  %v3208_v42 = vld [vmem:[#allocation2 + $0x48] sm:$0xff] }
 0x1e1   : > { %9651 = vst [vmem:[#allocation19_spill] sm:$0xff] %v7696_v2  ;;  %v7698_v5 = vld [vmem:[#allocation2 + $0xda] sm:$0xff]  ;;  %v7702_v59 = vld [vmem:[#allocation2 + $0xe2] sm:$0xff]  ;;  %1157 = vst.msk [vmem:[#allocation2 + $0x121] sm:$0xff] %vm796_vm4, %v1083_v7 }
 0x1e2   : > { %9652 = vst [vmem:[#allocation20_spill] sm:$0xff] %v7698_v5  ;;  %9653 = vst [vmem:[#allocation21_spill] sm:$0xff] %v7702_v59  ;;  %1764 = vrot.lane.b32.xlu1 %v1537_v48, %s6959_s19  ;;  %v3209_v45 = vld [vmem:[#allocation2 + $0x50] sm:$0xff] }
 0x1e3   : > { %2902 = vst.msk [vmem:[#allocation2 + $0xd9] sm:$0xff] %vm796_vm4, %v2823_v36  ;;  %9654 = vst [vmem:[#allocation22_spill] sm:$0xff] %v7706_v60  ;;  %v1079_v15 = vpop.permute.xlu1 %1078  ;;  %v2831_v37 = vpop.permute.xlu0 %2830  ;;  %v3217_v62 = vld [vmem:[#allocation2 + $0xb0] sm:$0xff] }
 0x1e4   : > { %2903 = vst.msk [vmem:[#allocation2 + $0xe1] sm:$0xff] %vm796_vm4, %v2825_v46  ;;  %1812 = vrot.lane.b32.xlu0 %v7711_v12, %s9644_s28  ;;  %1155 = vst.msk [vmem:[#allocation2 + $0x109] sm:$0xff] %vm796_vm4, %v1079_v15  ;;  %v3264_v49 = vld [vmem:[#allocation2 + $0xa9] sm:$0xff]  ;;  %v3265_v59 = vld [vmem:[#allocation2 + $0xb1] sm:$0xff] }
 0x1e5   : > { %v3291_v5 = vpack.c.bf16 %v3265_v59, %v3264_v49 }
 0x1e6   : > { %1622 = vrot.lane.b32.xlu1 %v1537_v48, %s9631_s16 }
 0x1e7   : > { %v1085_v47 = vpop.permute.xlu1 %1084  ;;  %v2837_v58 = vpop.permute.xlu0 %2836 }
 0x1e8   : > { %1670 = vrot.lane.b32.xlu0 %v7711_v12, %s9643_s12  ;;  %1158 = vst.msk [vmem:[#allocation2 + $0x129] sm:$0xff] %vm796_vm4, %v1085_v47  ;;  %v7724_v46 = vld [vmem:[#allocation2 + $0x120] sm:$0xff] }
 0x1e9   : > { %9655 = vst [vmem:[#allocation23_spill] sm:$0xff] %v7724_v46  ;;  %v1239_v61 = vld [vmem:[#allocation2 + $0x121] sm:$0xff] }
 0x1ea   : > { %3610 = vrot.lane.b32.xlu1 %v3240_v28, %s6956_s14  ;;  %v3172_v46 = vld [vmem:[#allocation2 + $0xc2] sm:$0xff] }
 0x1eb   : > { %v2833_v31 = vpop.permute.xlu1 %2832  ;;  %v1081_v36 = vpop.permute.xlu0 %1080  ;;  %v7739_v26 = vld [vmem:[#allocation2 + $0x108] sm:$0xff] }
 0x1ec   : > { %3658 = vrot.lane.b32.xlu0 %v3288_v29, %s9642_s15  ;;  %1156 = vst.msk [vmem:[#allocation2 + $0x111] sm:$0xff] %vm796_vm4, %v1081_v36  ;;  %9660 = vst [vmem:[#allocation28_spill] sm:$0xff] %v7739_v26  ;;  %v1237_v47 = vld [vmem:[#allocation2 + $0x109] sm:$0xff] }
 0x1ee   : > { %3468 = vrot.lane.b32.xlu1 %v3240_v28, %s6958_s13 }
 0x1ef   : > { %v7727_v48 = vld [vmem:[#allocation2 + $0x128] sm:$0xff]  ;;  %v2843_v7 = vpop.permute.xlu1 %2842  ;;  %v1091_v15 = vpop.permute.xlu0 %1090 }
 0x1f0   : > { %9656 = vst [vmem:[#allocation24_spill] sm:$0xff] %v7727_v48  ;;  %v1240_v1 = vld [vmem:[#allocation2 + $0x129] sm:$0xff]  ;;  %3516 = vrot.lane.b32.xlu0 %v3288_v29, %s6959_s19  ;;  %1161 = vst.msk [vmem:[#allocation2 + $0x151] sm:$0xff] %vm796_vm4, %v1091_v15 }
 0x1f1   : > { %v7729_v4 = vld [vmem:[#allocation2 + $0x122] sm:$0xff]  ;;  %v7732_v19 = vld [vmem:[#allocation2 + $0x12a] sm:$0xff]  ;;  %v7736_v21 = vpack.c.bf16 %v1240_v1, %v1239_v61  ;;  %v3239_v1 = vpack.c.bf16 %v3209_v45, %v3208_v42 }
 0x1f2   : > { %9657 = vst [vmem:[#allocation25_spill] sm:$0xff] %v7729_v4  ;;  %9658 = vst [vmem:[#allocation26_spill] sm:$0xff] %v7732_v19  ;;  %3564 = vrot.lane.b32.xlu1 %v3193_v20, %s9644_s28 }
 0x1f3   : > { %2908 = vst.msk [vmem:[#allocation2 + $0x121] sm:$0xff] %vm796_vm4, %v2835_v6  ;;  %9659 = vst [vmem:[#allocation27_spill] sm:$0xff] %v7736_v21  ;;  %v7742_v28 = vld [vmem:[#allocation2 + $0x110] sm:$0xff]  ;;  %v1087_v6 = vpop.permute.xlu1 %1086  ;;  %v2839_v50 = vpop.permute.xlu0 %2838 }
 0x1f4   : > { %2909 = vst.msk [vmem:[#allocation2 + $0x129] sm:$0xff] %vm796_vm4, %v2837_v58  ;;  %9661 = vst [vmem:[#allocation29_spill] sm:$0xff] %v7742_v28  ;;  %v1238_v36 = vld [vmem:[#allocation2 + $0x111] sm:$0xff]  ;;  %3374 = vrot.lane.b32.xlu0 %v3288_v29, %s9631_s16 }
 0x1f5   : > { %v7744_v53 = vld [vmem:[#allocation2 + $0x10a] sm:$0xff]  ;;  %v7747_v15 = vld [vmem:[#allocation2 + $0x112] sm:$0xff]  ;;  %1159 = vst.msk [vmem:[#allocation2 + $0x139] sm:$0xff] %vm796_vm4, %v1087_v6  ;;  %v7751_v58 = vpack.c.bf16 %v1238_v36, %v1237_v47 }
 0x1f6   : > { %9662 = vst [vmem:[#allocation30_spill] sm:$0xff] %v7744_v53  ;;  %9663 = vst [vmem:[#allocation31_spill] sm:$0xff] %v7747_v15  ;;  %3422 = vrot.lane.b32.xlu1 %v3193_v20, %s9643_s12  ;;  %v3162_v47 = vld [vmem:[#allocation2 + $0x4a] sm:$0xff] }
 0x1f7   : > { %2906 = vst.msk [vmem:[#allocation2 + $0x109] sm:$0xff] %vm796_vm4, %v2831_v37  ;;  %9664 = vst [vmem:[#allocation32_spill] sm:$0xff] %v7751_v58  ;;  %v1093_v29 = vpop.permute.xlu1 %1092  ;;  %v2845_v61 = vpop.permute.xlu0 %2844  ;;  %v7760_v37 = vpack.c.bf16 %v7565_v13, %v7562_v10  ;;  %v3256_v36 = vld [vmem:[#allocation2 + $0x49] sm:$0xff]  ;;  %v3257_v6 = vld [vmem:[#allocation2 + $0x51] sm:$0xff] }
 0x1f8   : > { %2907 = vst.msk [vmem:[#allocation2 + $0x111] sm:$0xff] %vm796_vm4, %v2833_v31  ;;  %1912 = vrot.lane.b32.xlu0 %v7573_v17, %s9642_s15  ;;  %1162 = vst.msk [vmem:[#allocation2 + $0x159] sm:$0xff] %vm796_vm4, %v1093_v29  ;;  %v7766_v56 = vld [vmem:[#allocation2 + $0x150] sm:$0xff] }
 0x1f9   : > { %9665 = vst [vmem:[#allocation33_spill] sm:$0xff] %v7760_v37  ;;  %9666 = vst [vmem:[#allocation34_spill] sm:$0xff] %v7766_v56  ;;  %v1243_v29 = vld [vmem:[#allocation2 + $0x151] sm:$0xff]  ;;  %v3287_v56 = vpack.c.bf16 %v3257_v6, %v3256_v36 }
 0x1fa   : > { %1864 = vrot.lane.b32.xlu1 %v7760_v37, %s6956_s14  ;;  %v3163_v10 = vld [vmem:[#allocation2 + $0x52] sm:$0xff]  ;;  %v3173_v58 = vld [vmem:[#allocation2 + $0xca] sm:$0xff] }
 0x1fb   : > { %v2841_v31 = vpop.permute.xlu1 %2840  ;;  %v1089_v20 = vpop.permute.xlu0 %1088 }
 0x1fc   : > { %3608 = vrot.lane.b32.xlu0 %v3239_v1, %s6956_s14  ;;  %1160 = vst.msk [vmem:[#allocation2 + $0x141] sm:$0xff] %vm796_vm4, %v1089_v20 }
 0x1fe   : > { %1722 = vrot.lane.b32.xlu1 %v7760_v37, %s6958_s13  ;;  %v7782_v37 = vpack.c.bf16 %v3163_v10, %v3162_v47 }
 0x1ff   : > { %v7770_v13 = vld [vmem:[#allocation2 + $0x158] sm:$0xff]  ;;  %v2851_v19 = vpop.permute.xlu1 %2850  ;;  %v1099_v4 = vpop.permute.xlu0 %1098 }
 0x200   : > { %9667 = vst [vmem:[#allocation35_spill] sm:$0xff] %v7770_v13  ;;  %v1244_v42 = vld [vmem:[#allocation2 + $0x159] sm:$0xff]  ;;  %3466 = vrot.lane.b32.xlu0 %v3239_v1, %s6958_s13  ;;  %1165 = vst.msk [vmem:[#allocation2 + $0x181] sm:$0xff] %vm796_vm4, %v1099_v4 }
 0x201   : > { %v7772_v45 = vld [vmem:[#allocation2 + $0x152] sm:$0xff]  ;;  %v7775_v20 = vld [vmem:[#allocation2 + $0x15a] sm:$0xff]  ;;  %v7779_v21 = vpack.c.bf16 %v1244_v42, %v1243_v29  ;;  %v7806_v29 = vpack.c.bf16 %v7591_v24, %v7589_v23 }
 0x202   : > { %9668 = vst [vmem:[#allocation36_spill] sm:$0xff] %v7772_v45  ;;  %9669 = vst [vmem:[#allocation37_spill] sm:$0xff] %v7775_v20  ;;  %v7784_v13 = vld [vmem:[#allocation2 + $0x138] sm:$0xff]  ;;  %3656 = vrot.lane.b32.xlu1 %v3287_v56, %s9642_s15 }
 0x203   : > { %2912 = vst.msk [vmem:[#allocation2 + $0x151] sm:$0xff] %vm796_vm4, %v2843_v7  ;;  %9670 = vst [vmem:[#allocation38_spill] sm:$0xff] %v7779_v21  ;;  %v1241_v45 = vld [vmem:[#allocation2 + $0x139] sm:$0xff]  ;;  %v1242_v15 = vld [vmem:[#allocation2 + $0x141] sm:$0xff]  ;;  %v1095_v4 = vpop.permute.xlu1 %1094  ;;  %v2847_v7 = vpop.permute.xlu0 %2846 }
 0x204   : > { %2913 = vst.msk [vmem:[#allocation2 + $0x159] sm:$0xff] %vm796_vm4, %v2845_v61  ;;  %9671 = vst [vmem:[#allocation39_spill] sm:$0xff] %v7784_v13  ;;  %v7787_v1 = vld [vmem:[#allocation2 + $0x140] sm:$0xff]  ;;  %3562 = vrot.lane.b32.xlu0 %v7782_v37, %s9644_s28  ;;  %v7797_v61 = vpack.c.bf16 %v1242_v15, %v1241_v45 }
 0x205   : > { %9672 = vst [vmem:[#allocation40_spill] sm:$0xff] %v7787_v1  ;;  %v7789_v20 = vld [vmem:[#allocation2 + $0x13a] sm:$0xff]  ;;  %v7793_v36 = vld [vmem:[#allocation2 + $0x142] sm:$0xff]  ;;  %1163 = vst.msk [vmem:[#allocation2 + $0x169] sm:$0xff] %vm796_vm4, %v1095_v4 }
 0x206   : > { %9673 = vst [vmem:[#allocation41_spill] sm:$0xff] %v7789_v20  ;;  %9674 = vst [vmem:[#allocation42_spill] sm:$0xff] %v7793_v36  ;;  %3514 = vrot.lane.b32.xlu1 %v3287_v56, %s6959_s19  ;;  %v2918_v21 = vld [vmem:[#allocation2] sm:$0xff]  ;;  %v3267_v1 = vld [vmem:[#allocation2 + $0xc9] sm:$0xff] }
 0x207   : > { %2910 = vst.msk [vmem:[#allocation2 + $0x139] sm:$0xff] %vm796_vm4, %v2839_v50  ;;  %9675 = vst [vmem:[#allocation43_spill] sm:$0xff] %v7797_v61  ;;  %v1101_v47 = vpop.permute.xlu1 %1100  ;;  %v2853_v6 = vpop.permute.xlu0 %2852  ;;  %v1389_v10 = vld [vmem:[#allocation2 + $0x181] sm:$0xff]  ;;  %v3212_v61 = vld [vmem:[#allocation2 + $0x78] sm:$0xff] }
 0x208   : > { %2911 = vst.msk [vmem:[#allocation2 + $0x141] sm:$0xff] %vm796_vm4, %v2841_v31  ;;  %3420 = vrot.lane.b32.xlu0 %v7782_v37, %s9643_s12  ;;  %1166 = vst.msk [vmem:[#allocation2 + $0x189] sm:$0xff] %vm796_vm4, %v1101_v47  ;;  %v7812_v31 = vld [vmem:[#allocation2 + $0x180] sm:$0xff] }
 0x209   : > { %9676 = vst [vmem:[#allocation44_spill] sm:$0xff] %v7806_v29  ;;  %9677 = vst [vmem:[#allocation45_spill] sm:$0xff] %v7812_v31 }
 0x20a   : > { %3372 = vrot.lane.b32.xlu1 %v3287_v56, %s9631_s16 }
 0x20b   : > { %v2849_v50 = vpop.permute.xlu1 %2848  ;;  %v1097_v15 = vpop.permute.xlu0 %1096 }
 0x20c   : > { %1862 = vrot.lane.b32.xlu0 %v7806_v29, %s6956_s14  ;;  %1164 = vst.msk [vmem:[#allocation2 + $0x171] sm:$0xff] %vm796_vm4, %v1097_v15  ;;  %v7830_v15 = vpack.c.bf16 %v7587_v22, %v7594_v27 }
 0x20e   : > { %1910 = vrot.lane.b32.xlu1 %v7600_v35, %s9642_s15 }
 0x20f   : > { %v7816_v42 = vld [vmem:[#allocation2 + $0x188] sm:$0xff] }
 0x210   : > { %9678 = vst [vmem:[#allocation46_spill] sm:$0xff] %v7816_v42  ;;  %v1390_v45 = vld [vmem:[#allocation2 + $0x189] sm:$0xff]  ;;  %1720 = vrot.lane.b32.xlu0 %v7806_v29, %s6958_s13  ;;  %v1857_v24 = vpop.permute.xlu1 %1856 }
 0x211   : > { %v7818_v23 = vld [vmem:[#allocation2 + $0x182] sm:$0xff]  ;;  %v7822_v56 = vld [vmem:[#allocation2 + $0x18a] sm:$0xff]  ;;  %v7825_v4 = vpack.c.bf16 %v1390_v45, %v1389_v10 }
 0x212   : > { %9679 = vst [vmem:[#allocation47_spill] sm:$0xff] %v7818_v23  ;;  %9680 = vst [vmem:[#allocation48_spill] sm:$0xff] %v7822_v56  ;;  %v1905_v47 = vpop.permute.xlu0 %1904  ;;  %v7832_v42 = vld [vmem:[#allocation2 + $0x168] sm:$0xff]  ;;  %1768 = vrot.lane.b32.xlu1 %v7600_v35, %s6959_s19  ;;  %v3214_v45 = vld [vmem:[#allocation2 + $0x90] sm:$0xff] }
 0x213   : > { %2916 = vst.msk [vmem:[#allocation2 + $0x181] sm:$0xff] %vm796_vm4, %v2851_v19  ;;  %9681 = vst [vmem:[#allocation49_spill] sm:$0xff] %v7825_v4  ;;  %v1245_v23 = vld [vmem:[#allocation2 + $0x169] sm:$0xff]  ;;  %v1246_v56 = vld [vmem:[#allocation2 + $0x171] sm:$0xff] }
 0x214   : > { %2917 = vst.msk [vmem:[#allocation2 + $0x189] sm:$0xff] %vm796_vm4, %v2853_v6  ;;  %9682 = vst [vmem:[#allocation50_spill] sm:$0xff] %v7832_v42  ;;  %v7836_v31 = vld [vmem:[#allocation2 + $0x170] sm:$0xff]  ;;  %1816 = vrot.lane.b32.xlu0 %v7830_v15, %s9644_s28  ;;  %v7845_v22 = vpop.permute.xlu1 %1714  ;;  %v7847_v27 = vpack.c.bf16 %v1246_v56, %v1245_v23  ;;  %v3215_v4 = vld [vmem:[#allocation2 + $0x98] sm:$0xff] }
 0x215   : > { %9683 = vst [vmem:[#allocation51_spill] sm:$0xff] %v7836_v31  ;;  %v7838_v19 = vld [vmem:[#allocation2 + $0x16a] sm:$0xff]  ;;  %v7842_v6 = vld [vmem:[#allocation2 + $0x172] sm:$0xff]  ;;  %v7858_v23 = vpack.c.bf16 %v3215_v4, %v3214_v45  ;;  %v3169_v45 = vld [vmem:[#allocation2 + $0x9a] sm:$0xff] }
 0x216   : > { %9684 = vst [vmem:[#allocation52_spill] sm:$0xff] %v7838_v19  ;;  %9685 = vst [vmem:[#allocation53_spill] sm:$0xff] %v7842_v6  ;;  %v7850_v10 = vpop.permute.xlu0 %1762  ;;  %1626 = vrot.lane.b32.xlu1 %v7600_v35, %s9631_s16  ;;  %v3262_v19 = vld [vmem:[#allocation2 + $0x91] sm:$0xff]  ;;  %v3263_v31 = vld [vmem:[#allocation2 + $0x99] sm:$0xff] }
 0x217   : > { %2914 = vst.msk [vmem:[#allocation2 + $0x169] sm:$0xff] %vm796_vm4, %v2847_v7  ;;  %9686 = vst [vmem:[#allocation54_spill] sm:$0xff] %v7847_v27  ;;  %v2919_v42 = vld [vmem:[#allocation2 + $0x8] sm:$0xff]  ;;  %v3168_v4 = vld [vmem:[#allocation2 + $0x92] sm:$0xff] }
 0x218   : > { %2915 = vst.msk [vmem:[#allocation2 + $0x171] sm:$0xff] %vm796_vm4, %v2849_v50  ;;  %1674 = vrot.lane.b32.xlu0 %v7830_v15, %s9643_s12  ;;  %v7856_v7 = vpop.permute.xlu1 %1810  ;;  %v3290_v50 = vpack.c.bf16 %v3263_v31, %v3262_v19  ;;  %v7862_v6 = vpack.c.bf16 %v2919_v42, %v2918_v21 }
 0x21a   : > { %v7860_v56 = vpop.permute.xlu0 %1620  ;;  %3614 = vrot.lane.b32.xlu1 %v7858_v23, %s6956_s14  ;;  %v1938_v35 = vsel %vm796_vm4, %v7862_v6, %v7417_v51  ;;  %v7878_v51 = vpack.c.bf16 %v3169_v45, %v3168_v4 }
 0x21b   : > { %v1985_v21 = vsel %vm523_vm3, %v1938_v35, %v7436_v57  ;;  %v3213_v57 = vld [vmem:[#allocation2 + $0x80] sm:$0xff] }
 0x21c   : > { %3662 = vrot.lane.b32.xlu0 %v3290_v50, %s9642_s15  ;;  %v7870_v27 = vpop.permute.xlu1 %1668  ;;  %v7887_v45 = vpack.c.bf16 %v3213_v57, %v3212_v61  ;;  %v3166_v61 = vld [vmem:[#allocation2 + $0x7a] sm:$0xff] }
 0x21e   : > { %v1713_v29 = vpop.permute.xlu0 %1712  ;;  %3472 = vrot.lane.b32.xlu1 %v7858_v23, %s6958_s13 }
 0x21f   : > { %v2018_v31 = vsel %vm2016_vm5, %v1985_v21, %v1713_v29 }
 0x220   : > { %3520 = vrot.lane.b32.xlu0 %v3290_v50, %s6959_s19  ;;  %v1761_v42 = vpop.permute.xlu1 %1760 }
 0x221   : > { %v2051_v19 = vsel %vm2049_vm6, %v2018_v31, %v1761_v42  ;;  %v3260_v31 = vld [vmem:[#allocation2 + $0x79] sm:$0xff]  ;;  %v3261_v42 = vld [vmem:[#allocation2 + $0x81] sm:$0xff] }
 0x222   : > { %v1809_v36 = vpop.permute.xlu0 %1808  ;;  %3568 = vrot.lane.b32.xlu1 %v7878_v51, %s9644_s28 }
 0x223   : > { %v2084_v20 = vsel %vm2082_vm7, %v2051_v19, %v1809_v36  ;;  %v3289_v36 = vpack.c.bf16 %v3261_v42, %v3260_v31  ;;  %v3219_v31 = vld [vmem:[#allocation2 + $0xc8] sm:$0xff] }
 0x224   : > { %v2117_v35 = vsel %vm2115_vm8, %v2084_v20, %v1857_v24  ;;  %3378 = vrot.lane.b32.xlu0 %v3290_v50, %s9631_s16  ;;  %v1619_v29 = vpop.permute.xlu1 %1618  ;;  %v3266_v42 = vld [vmem:[#allocation2 + $0xc1] sm:$0xff] }
 0x225   : > { %v2150_v21 = vsel %vm2148_vm9, %v2117_v35, %v1905_v47  ;;  %v3167_v47 = vld [vmem:[#allocation2 + $0x82] sm:$0xff]  ;;  %v3292_v53 = vpack.c.bf16 %v3267_v1, %v3266_v42 }
 0x226   : > { %v1667_v4 = vpop.permute.xlu0 %1666  ;;  %2357 = vmatmul.mubr.bf16.vlgmr.msra.gmra.mrb[32].mxu1 %v2150_v21  ;;  %3426 = vrot.lane.b32.xlu1 %v7878_v51, %s9643_s12  ;;  %v3218_v21 = vld [vmem:[#allocation2 + $0xc0] sm:$0xff]  ;;  %v3216_v42 = vld [vmem:[#allocation2 + $0xa8] sm:$0xff] }
 0x227   : > { %6322 = vmatprep.mubr.msk.bf16.mxu1 %vm796_vm4, %v7711_v12  ;;  %v7906_v12 = vpack.c.bf16 %v3167_v47, %v3166_v61  ;;  %v7920_v47 = vpack.c.bf16 %v3219_v31, %v3218_v21  ;;  %v7936_v31 = vpack.c.bf16 %v3173_v58, %v3172_v46  ;;  %v7945_v26 = vpack.c.bf16 %v3217_v62, %v3216_v42 }
 0x228   : > { %3612 = vrot.lane.b32.xlu0 %v7887_v45, %s6956_s14  ;;  %v7895_v20 = vpop.permute.xlu1 %3606  ;;  %v1941_v46 = vsel %vm796_vm4, %v7517_v40, %v1619_v29 }
 0x229   : > { %v1987_v42 = vsel %vm523_vm3, %v1941_v46, %v1667_v4  ;;  %v3223_v46 = vld [vmem:[#allocation2 + $0xf8] sm:$0xff] }
 0x22a   : > { %v7897_v24 = vpop.permute.xlu0 %3654  ;;  %3660 = vrot.lane.b32.xlu1 %v3289_v36, %s9642_s15 }
 0x22c   : > { %3470 = vrot.lane.b32.xlu0 %v7887_v45, %s6958_s13  ;;  %v7902_v50 = vpop.permute.xlu1 %3464 }
 0x22e   : > { %v7904_v19 = vpop.permute.xlu0 %3512  ;;  %3518 = vrot.lane.b32.xlu1 %v3289_v36, %s6959_s19 }
 0x230   : > { %3566 = vrot.lane.b32.xlu0 %v7906_v12, %s9644_s28  ;;  %v7911_v57 = vpop.permute.xlu1 %3560 }
 0x232   : > { %v7913_v35 = vpop.permute.xlu0 %3370  ;;  %3376 = vrot.lane.b32.xlu1 %v3289_v36, %s9631_s16 }
 0x234   : > { %3424 = vrot.lane.b32.xlu0 %v7906_v12, %s9643_s12  ;;  %v7918_v61 = vpop.permute.xlu1 %3418 }
 0x236   : > { %v7922_v13 = vpop.permute.xlu0 %1908  ;;  %3618 = vrot.lane.b32.xlu1 %v7920_v47, %s6956_s14 }
 0x238   : > { %3666 = vrot.lane.b32.xlu0 %v3292_v53, %s9642_s15  ;;  %v7927_v48 = vpop.permute.xlu1 %1860 }
 0x23a   : > { %v7929_v36 = vpop.permute.xlu0 %1766  ;;  %3476 = vrot.lane.b32.xlu1 %v7920_v47, %s6958_s13 }
 0x23c   : > { %3524 = vrot.lane.b32.xlu0 %v3292_v53, %s6959_s19  ;;  %v7934_v21 = vpop.permute.xlu1 %1718 }
 0x23e   : > { %v7938_v1 = vpop.permute.xlu0 %1624  ;;  %3572 = vrot.lane.b32.xlu1 %v7936_v31, %s9644_s28 }
 0x240   : > { %3382 = vrot.lane.b32.xlu0 %v3292_v53, %s9631_s16  ;;  %v7943_v33 = vpop.permute.xlu1 %1814  ;;  %v3688_v53 = vsel %vm796_vm4, %v7862_v6, %v7411_v0  ;;  %v2020_v0 = vsel %vm2016_vm5, %v1987_v42, %v7845_v22  ;;  %v7970_v6 = vpack.c.bf16 %v3171_v38, %v3170_v30  ;;  %v3222_v30 = vld [vmem:[#allocation2 + $0xf0] sm:$0xff] }
 0x241   : > { %v3735_v40 = vsel %vm523_vm3, %v3688_v53, %v7424_v54  ;;  %v2053_v22 = vsel %vm2049_vm6, %v2020_v0, %v7850_v10  ;;  %v3271_v53 = vld [vmem:[#allocation2 + $0xf9] sm:$0xff]  ;;  %v7992_v42 = vpack.c.bf16 %v3223_v46, %v3222_v30 }
 0x242   : > { %v3463_v28 = vpop.permute.xlu0 %3462  ;;  %3430 = vrot.lane.b32.xlu1 %v7936_v31, %s9643_s12  ;;  %v3220_v46 = vld [vmem:[#allocation2 + $0xd8] sm:$0xff] }
 0x243   : > { %v3767_v29 = vsel %vm2016_vm5, %v3735_v40, %v3463_v28  ;;  %9687 = vst [vmem:[#allocation55_spill] sm:$0xff] %v7992_v42 }
 0x244   : > { %3616 = vrot.lane.b32.xlu0 %v7945_v26, %s6956_s14  ;;  %v7956_v58 = vpop.permute.xlu1 %1672 }
 0x246   : > { %v3559_v62 = vpop.permute.xlu0 %3558  ;;  %3664 = vrot.lane.b32.xlu1 %v3291_v5, %s9642_s15 }
 0x248   : > { %3474 = vrot.lane.b32.xlu0 %v7945_v26, %s6958_s13  ;;  %v3511_v60 = vpop.permute.xlu1 %3510 }
 0x249   : > { %v3799_v49 = vsel %vm2049_vm6, %v3767_v29, %v3511_v60 }
 0x24a   : > { %v7968_v59 = vpop.permute.xlu0 %3416  ;;  %v3831_v4 = vsel %vm2082_vm7, %v3799_v49, %v3559_v62  ;;  %3522 = vrot.lane.b32.xlu1 %v3291_v5, %s6959_s19  ;;  %v2086_v62 = vsel %vm2082_vm7, %v2053_v22, %v7856_v7  ;;  %v3176_v22 = vld [vmem:[#allocation2 + $0xf2] sm:$0xff] }
 0x24b   : > { %v3863_v54 = vsel %vm2115_vm8, %v3831_v4, %v7895_v20  ;;  %v3270_v20 = vld [vmem:[#allocation2 + $0xf1] sm:$0xff] }
 0x24c   : > { %3570 = vrot.lane.b32.xlu0 %v7970_v6, %s9644_s28  ;;  %v7978_v28 = vpop.permute.xlu1 %3368  ;;  %v3895_v60 = vsel %vm2148_vm9, %v3863_v54, %v7897_v24  ;;  %v3294_v29 = vpack.c.bf16 %v3271_v53, %v3270_v20  ;;  %v3221_v20 = vld [vmem:[#allocation2 + $0xe0] sm:$0xff] }
 0x24d   : > { %4102 = vmatmul.mubr.bf16.vlgmr.msra.gmra.mrb[32].mxu0 %v3895_v60 }
 0x24e   : > { %v1859_v38 = vpop.permute.xlu0 %1858  ;;  %3380 = vrot.lane.b32.xlu1 %v3291_v5, %s9631_s16  ;;  %6366 = vmatprep.mubr.msk.bf16.mxu0 %vm796_vm4, %v7782_v37  ;;  %v1944_v37 = vsel %vm796_vm4, %v7474_v14, %v7860_v56  ;;  %v3177_v14 = vld [vmem:[#allocation2 + $0xfa] sm:$0xff] }
 0x24f   : > { %v2119_v10 = vsel %vm2115_vm8, %v2086_v62, %v1859_v38  ;;  %v1989_v7 = vsel %vm523_vm3, %v1944_v37, %v7870_v27  ;;  %v8028_v62 = vpack.c.bf16 %v3221_v20, %v3220_v46  ;;  %v3174_v37 = vld [vmem:[#allocation2 + $0xda] sm:$0xff] }
 0x250   : > { %3428 = vrot.lane.b32.xlu0 %v7970_v6, %s9643_s12  ;;  %v1907_v24 = vpop.permute.xlu1 %1906  ;;  %v3274_v20 = vld [vmem:[#allocation2 + $0x121] sm:$0xff] }
 0x251   : > { %v2153_v5 = vsel %vm2148_vm9, %v2119_v10, %v1907_v24  ;;  %9688 = vst [vmem:[#allocation56_spill] sm:$0xff] %v8028_v62  ;;  %v3269_v10 = vld [vmem:[#allocation2 + $0xe1] sm:$0xff] }
 0x252   : > { %v1717_v40 = vpop.permute.xlu0 %1716  ;;  %3622 = vrot.lane.b32.xlu1 %v7992_v42, %s6956_s14  ;;  %2365 = vmatmul.mubr.bf16.gmra.mrb[36].mxu1 %v2153_v5 }
 0x253   : > { %6323 = vmatprep.mubr.msk.bf16.mxu1 %vm796_vm4, %v7645_v3  ;;  %v2022_v0 = vsel %vm2016_vm5, %v1989_v7, %v1717_v40  ;;  %v8013_v3 = vpack.c.bf16 %v3177_v14, %v3176_v22  ;;  %v3175_v7 = vld [vmem:[#allocation2 + $0xe2] sm:$0xff] }
 0x254   : > { %3670 = vrot.lane.b32.xlu0 %v3294_v29, %s9642_s15  ;;  %v1765_v49 = vpop.permute.xlu1 %1764 }
 0x255   : > { %v2055_v4 = vsel %vm2049_vm6, %v2022_v0, %v1765_v49 }
 0x256   : > { %v1813_v54 = vpop.permute.xlu0 %1812  ;;  %3480 = vrot.lane.b32.xlu1 %v7992_v42, %s6958_s13 }
 0x257   : > { %v2088_v56 = vsel %vm2082_vm7, %v2055_v4, %v1813_v54  ;;  %v8045_v54 = vpack.c.bf16 %v3175_v7, %v3174_v37 }
 0x258   : > { %3528 = vrot.lane.b32.xlu0 %v3294_v29, %s6959_s19  ;;  %v2121_v27 = vsel %vm2115_vm8, %v2088_v56, %v7927_v48  ;;  %v1623_v60 = vpop.permute.xlu1 %1622 }
 0x259   : > { %v2156_v38 = vsel %vm2148_vm9, %v2121_v27, %v7922_v13  ;;  %v3268_v13 = vld [vmem:[#allocation2 + $0xd9] sm:$0xff] }
 0x25a   : > { %v8017_v30 = vpop.permute.xlu0 %1670  ;;  %3576 = vrot.lane.b32.xlu1 %v8013_v3, %s9644_s28  ;;  %2373 = vmatmul.mubr.bf16.gmra.mrb[40].mxu1 %v2156_v38  ;;  %v3293_v40 = vpack.c.bf16 %v3269_v10, %v3268_v13  ;;  %v3226_v27 = vld [vmem:[#allocation2 + $0x120] sm:$0xff]  ;;  %v3227_v38 = vld [vmem:[#allocation2 + $0x128] sm:$0xff] }
 0x25b   : > { %6324 = vmatprep.mubr.msk.bf16.mxu1 %vm796_vm4, %v7830_v15  ;;  %v2921_v15 = vld [vmem:[#allocation2 + $0x20] sm:$0xff]  ;;  %v3275_v13 = vld [vmem:[#allocation2 + $0x129] sm:$0xff]  ;;  %v8063_v10 = vpack.c.bf16 %v3227_v38, %v3226_v27 }
 0x25c   : > { %3386 = vrot.lane.b32.xlu0 %v3294_v29, %s9631_s16  ;;  %v8024_v48 = vpop.permute.xlu1 %3610  ;;  %v2920_v29 = vld [vmem:[#allocation2 + $0x18] sm:$0xff]  ;;  %v3296_v37 = vpack.c.bf16 %v3275_v13, %v3274_v20  ;;  %v3180_v27 = vld [vmem:[#allocation2 + $0x122] sm:$0xff]  ;;  %v3181_v38 = vld [vmem:[#allocation2 + $0x12a] sm:$0xff]  ;;  %v1947_v20 = vsel %vm796_vm4, %v7674_v41, %v1623_v60 }
 0x25d   : > { %v2951_v49 = vpack.c.bf16 %v2921_v15, %v2920_v29  ;;  %9689 = vst [vmem:[#allocation57_spill] sm:$0xff] %v8063_v10  ;;  %v8082_v42 = vpack.c.bf16 %v3181_v38, %v3180_v27  ;;  %v1991_v41 = vsel %vm523_vm3, %v1947_v20, %v8017_v30  ;;  %v3225_v60 = vld [vmem:[#allocation2 + $0x110] sm:$0xff] }
 0x25e   : > { %v8026_v53 = vpop.permute.xlu0 %3658  ;;  %3434 = vrot.lane.b32.xlu1 %v8013_v3, %s9643_s12  ;;  %v3273_v27 = vld [vmem:[#allocation2 + $0x111] sm:$0xff] }
 0x25f   : > { %v3691_v22 = vsel %vm796_vm4, %v2951_v49, %v7978_v28  ;;  %v2923_v49 = vld [vmem:[#allocation2 + $0x38] sm:$0xff] }
 0x260   : > { %3620 = vrot.lane.b32.xlu0 %v8028_v62, %s6956_s14  ;;  %v8034_v24 = vpop.permute.xlu1 %3468  ;;  %v3737_v46 = vsel %vm523_vm3, %v3691_v22, %v7968_v59  ;;  %v2922_v59 = vld [vmem:[#allocation2 + $0x30] sm:$0xff] }
 0x261   : > { %v3769_v29 = vsel %vm2016_vm5, %v3737_v46, %v7902_v50  ;;  %v3306_v50 = vld [vmem:[#allocation2 + $0x62] sm:$0xff]  ;;  %v3307_v46 = vld [vmem:[#allocation2 + $0x6a] sm:$0xff] }
 0x262   : > { %v8036_v5 = vpop.permute.xlu0 %3516  ;;  %3668 = vrot.lane.b32.xlu1 %v3293_v40, %s9642_s15 }
 0x264   : > { %3478 = vrot.lane.b32.xlu0 %v8028_v62, %s6958_s13  ;;  %v8041_v0 = vpop.permute.xlu1 %3564 }
 0x266   : > { %v8043_v4 = vpop.permute.xlu0 %3374  ;;  %3526 = vrot.lane.b32.xlu1 %v3293_v40, %s6959_s19 }
 0x268   : > { %3574 = vrot.lane.b32.xlu0 %v8045_v54, %s9644_s28  ;;  %v8052_v14 = vpop.permute.xlu1 %3422 }
 0x26a   : > { %v8054_v56 = vpop.permute.xlu0 %1912  ;;  %3384 = vrot.lane.b32.xlu1 %v3293_v40, %s9631_s16  ;;  %v3801_v40 = vsel %vm2049_vm6, %v3769_v29, %v7904_v19  ;;  %v2952_v19 = vpack.c.bf16 %v2923_v49, %v2922_v59  ;;  %v3272_v49 = vld [vmem:[#allocation2 + $0x109] sm:$0xff] }
 0x26b   : > { %v3833_v13 = vsel %vm2082_vm7, %v3801_v40, %v7911_v57  ;;  %v3224_v57 = vld [vmem:[#allocation2 + $0x108] sm:$0xff] }
 0x26c   : > { %3432 = vrot.lane.b32.xlu0 %v8045_v54, %s9643_s12  ;;  %v8061_v28 = vpop.permute.xlu1 %1864  ;;  %v3694_v63 = vsel %vm796_vm4, %v2952_v19, %v7913_v35  ;;  %v2024_v35 = vsel %vm2016_vm5, %v1991_v41, %v7934_v21  ;;  %v8127_v19 = vpack.c.bf16 %v7560_v9, %v7567_v16 }
 0x26e   : > { %v3609_v15 = vpop.permute.xlu0 %3608  ;;  %3626 = vrot.lane.b32.xlu1 %v8063_v10, %s6956_s14 }
 0x26f   : > { %v3865_v29 = vsel %vm2115_vm8, %v3833_v13, %v3609_v15  ;;  %v3739_v15 = vsel %vm523_vm3, %v3694_v63, %v7918_v61 }
 0x270   : > { %3674 = vrot.lane.b32.xlu0 %v3296_v37, %s9642_s15  ;;  %v8072_v7 = vpop.permute.xlu1 %1722 }
 0x271   : > { %9690 = vst [vmem:[#allocation58_spill] sm:$0xff] %v8072_v7 }
 0x272   : > { %v3467_v22 = vpop.permute.xlu0 %3466  ;;  %3484 = vrot.lane.b32.xlu1 %v8063_v10, %s6958_s13  ;;  %v3336_v10 = vpack.c.bf16 %v3307_v46, %v3306_v50  ;;  %v3179_v50 = vld [vmem:[#allocation2 + $0x112] sm:$0xff] }
 0x273   : > { %v3771_v59 = vsel %vm2016_vm5, %v3739_v15, %v3467_v22 }
 0x274   : > { %3532 = vrot.lane.b32.xlu0 %v3296_v37, %s6959_s19  ;;  %v3657_v7 = vpop.permute.xlu1 %3656 }
 0x275   : > { %v3898_v2 = vsel %vm2148_vm9, %v3865_v29, %v3657_v7 }
 0x276   : > { %v3563_v62 = vpop.permute.xlu0 %3562  ;;  %3580 = vrot.lane.b32.xlu1 %v8082_v42, %s9644_s28  ;;  %4110 = vmatmul.mubr.bf16.gmra.mrb[36].mxu0 %v3898_v2  ;;  %v8101_v2 = vpack.c.bf16 %v3225_v60, %v3224_v57  ;;  %v3230_v57 = vld [vmem:[#allocation2 + $0x150] sm:$0xff] }
 0x277   : > { %6367 = vmatprep.mubr.msk.bf16.mxu0 %vm796_vm4, %v3336_v10  ;;  %v2057_v10 = vsel %vm2049_vm6, %v2024_v35, %v7929_v36  ;;  %v3278_v60 = vld [vmem:[#allocation2 + $0x151] sm:$0xff] }
 0x278   : > { %3390 = vrot.lane.b32.xlu0 %v3296_v37, %s9631_s16  ;;  %v3515_v40 = vpop.permute.xlu1 %3514  ;;  %v3295_v37 = vpack.c.bf16 %v3273_v27, %v3272_v49  ;;  %v2090_v46 = vsel %vm2082_vm7, %v2057_v10, %v7943_v33  ;;  %v1950_v33 = vsel %vm796_vm4, %v7613_v39, %v7938_v1  ;;  %v3231_v39 = vld [vmem:[#allocation2 + $0x158] sm:$0xff]  ;;  %v8157_v27 = vpack.c.bf16 %v7650_v8, %v7657_v18 }
 0x279   : > { %v3803_v30 = vsel %vm2049_vm6, %v3771_v59, %v3515_v40  ;;  %v8149_v40 = vpack.c.bf16 %v3231_v39, %v3230_v57  ;;  %v3182_v57 = vld [vmem:[#allocation2 + $0x13a] sm:$0xff]  ;;  %v3183_v39 = vld [vmem:[#allocation2 + $0x142] sm:$0xff] }
 0x27a   : > { %v8099_v7 = vpop.permute.xlu0 %3420  ;;  %v3835_v63 = vsel %vm2082_vm7, %v3803_v30, %v3563_v62  ;;  %3438 = vrot.lane.b32.xlu1 %v8082_v42, %s9643_s12  ;;  %v3178_v62 = vld [vmem:[#allocation2 + $0x10a] sm:$0xff] }
 0x27b   : > { %v3867_v61 = vsel %vm2115_vm8, %v3835_v63, %v8024_v48  ;;  %v2924_v63 = vld [vmem:[#allocation2 + $0x48] sm:$0xff] }
 0x27c   : > { %3624 = vrot.lane.b32.xlu0 %v8101_v2, %s6956_s14  ;;  %v3373_v21 = vpop.permute.xlu1 %3372  ;;  %v3901_v22 = vsel %vm2148_vm9, %v3867_v61, %v8026_v53  ;;  %v8122_v53 = vpack.c.bf16 %v3179_v50, %v3178_v62  ;;  %v2925_v61 = vld [vmem:[#allocation2 + $0x50] sm:$0xff] }
 0x27e   : > { %v1863_v38 = vpop.permute.xlu0 %1862  ;;  %3672 = vrot.lane.b32.xlu1 %v3295_v37, %s9642_s15  ;;  %4118 = vmatmul.mubr.bf16.gmra.mrb[40].mxu0 %v3901_v22  ;;  %v3185_v22 = vld [vmem:[#allocation2 + $0x15a] sm:$0xff] }
 0x27f   : > { %6368 = vmatprep.mubr.msk.bf16.mxu0 %vm796_vm4, %v7906_v12  ;;  %v2123_v36 = vsel %vm2115_vm8, %v2090_v46, %v1863_v38  ;;  %v1993_v12 = vsel %vm523_vm3, %v1950_v33, %v7956_v58  ;;  %v3279_v58 = vld [vmem:[#allocation2 + $0x159] sm:$0xff] }
 0x280   : > { %3482 = vrot.lane.b32.xlu0 %v8101_v2, %s6958_s13  ;;  %v1911_v48 = vpop.permute.xlu1 %1910  ;;  %v3298_v49 = vpack.c.bf16 %v3279_v58, %v3278_v60  ;;  %v3228_v46 = vld [vmem:[#allocation2 + $0x138] sm:$0xff] }
 0x281   : > { %v2159_v13 = vsel %vm2148_vm9, %v2123_v36, %v1911_v48  ;;  %v3229_v36 = vld [vmem:[#allocation2 + $0x140] sm:$0xff] }
 0x282   : > { %v1721_v20 = vpop.permute.xlu0 %1720  ;;  %3530 = vrot.lane.b32.xlu1 %v3295_v37, %s6959_s19  ;;  %2381 = vmatmul.mubr.bf16.gmra.mrb[44].mxu1 %v2159_v13  ;;  %v8185_v13 = vpack.c.bf16 %v3229_v36, %v3228_v46  ;;  %v3276_v33 = vld [vmem:[#allocation2 + $0x139] sm:$0xff]  ;;  %v3282_v46 = vld [vmem:[#allocation2 + $0x181] sm:$0xff] }
 0x283   : > { %6325 = vmatprep.mubr.msk.bf16.mxu1 %vm796_vm4, %v8127_v19  ;;  %v2026_v29 = vsel %vm2016_vm5, %v1993_v12, %v1721_v20  ;;  %v3277_v12 = vld [vmem:[#allocation2 + $0x141] sm:$0xff] }
 0x284   : > { %3578 = vrot.lane.b32.xlu0 %v8122_v53, %s9644_s28  ;;  %v1769_v9 = vpop.permute.xlu1 %1768 }
 0x285   : > { %v2059_v16 = vsel %vm2049_vm6, %v2026_v29, %v1769_v9  ;;  %v3297_v9 = vpack.c.bf16 %v3277_v12, %v3276_v33 }
 0x286   : > { %v1817_v41 = vpop.permute.xlu0 %1816  ;;  %3388 = vrot.lane.b32.xlu1 %v3295_v37, %s9631_s16  ;;  %v3184_v37 = vld [vmem:[#allocation2 + $0x152] sm:$0xff] }
 0x287   : > { %v2092_v1 = vsel %vm2082_vm7, %v2059_v16, %v1817_v41  ;;  %v8170_v38 = vpack.c.bf16 %v3185_v22, %v3184_v37  ;;  %v2926_v16 = vld [vmem:[#allocation2 + $0x60] sm:$0xff] }
 0x288   : > { %3436 = vrot.lane.b32.xlu0 %v8122_v53, %s9643_s12  ;;  %v2125_v15 = vsel %vm2115_vm8, %v2092_v1, %v8061_v28  ;;  %v8147_v59 = vpop.permute.xlu1 %1626 }
 0x289   : > { %v2162_v35 = vsel %vm2148_vm9, %v2125_v15, %v8054_v56  ;;  %v2953_v56 = vpack.c.bf16 %v2925_v61, %v2924_v63 }
 0x28a   : > { %v8153_v30 = vpop.permute.xlu0 %1674  ;;  %3630 = vrot.lane.b32.xlu1 %v8149_v40, %s6956_s14  ;;  %2389 = vmatmul.mubr.bf16.gmra.mrb[48].mxu1 %v2162_v35 }
 0x28b   : > { %6326 = vmatprep.mubr.msk.bf16.mxu1 %vm796_vm4, %v8157_v27  ;;  %v3697_v8 = vsel %vm796_vm4, %v2953_v56, %v3373_v21 }
 0x28c   : > { %3678 = vrot.lane.b32.xlu0 %v3298_v49, %s9642_s15  ;;  %v3615_v28 = vpop.permute.xlu1 %3614  ;;  %v3741_v50 = vsel %vm523_vm3, %v3697_v8, %v8099_v7  ;;  %v3234_v8 = vld [vmem:[#allocation2 + $0x180] sm:$0xff] }
 0x28d   : > { %v3773_v21 = vsel %vm2016_vm5, %v3741_v50, %v8034_v24  ;;  %v2927_v24 = vld [vmem:[#allocation2 + $0x68] sm:$0xff] }
 0x28e   : > { %v3663_v10 = vpop.permute.xlu0 %3662  ;;  %3488 = vrot.lane.b32.xlu1 %v8149_v40, %s6958_s13  ;;  %v3805_v29 = vsel %vm2049_vm6, %v3773_v21, %v8036_v5  ;;  %v2954_v60 = vpack.c.bf16 %v2927_v24, %v2926_v16  ;;  %v8201_v5 = vpack.c.bf16 %v3183_v39, %v3182_v57  ;;  %v3188_v24 = vld [vmem:[#allocation2 + $0x182] sm:$0xff]  ;;  %v3233_v57 = vld [vmem:[#allocation2 + $0x170] sm:$0xff] }
 0x28f   : > { %v3837_v1 = vsel %vm2082_vm7, %v3805_v29, %v8041_v0 }
 0x290   : > { %3536 = vrot.lane.b32.xlu0 %v3298_v49, %s6959_s19  ;;  %v8168_v18 = vpop.permute.xlu1 %3472  ;;  %v3700_v63 = vsel %vm796_vm4, %v2954_v60, %v8043_v4  ;;  %v3235_v4 = vld [vmem:[#allocation2 + $0x188] sm:$0xff] }
 0x291   : > { %v3743_v0 = vsel %vm523_vm3, %v3700_v63, %v8052_v14  ;;  %v3283_v14 = vld [vmem:[#allocation2 + $0x189] sm:$0xff]  ;;  %v3252_v21 = vpack.c.bf16 %v3235_v4, %v3234_v8 }
 0x292   : > { %v8172_v62 = vpop.permute.xlu0 %3520  ;;  %3584 = vrot.lane.b32.xlu1 %v8170_v38, %s9644_s28  ;;  %v3300_v29 = vpack.c.bf16 %v3283_v14, %v3282_v46 }
 0x294   : > { %3394 = vrot.lane.b32.xlu0 %v3298_v49, %s9631_s16  ;;  %v8179_v48 = vpop.permute.xlu1 %3568 }
 0x296   : > { %v8183_v20 = vpop.permute.xlu0 %3378  ;;  %3442 = vrot.lane.b32.xlu1 %v8170_v38, %s9643_s12 }
 0x298   : > { %3628 = vrot.lane.b32.xlu0 %v8185_v13, %s6956_s14  ;;  %v8191_v7 = vpop.permute.xlu1 %3426 }
 0x29a   : > { %v3613_v41 = vpop.permute.xlu0 %3612  ;;  %3676 = vrot.lane.b32.xlu1 %v3297_v9, %s9642_s15 }
 0x29b   : > { %v3869_v58 = vsel %vm2115_vm8, %v3837_v1, %v3613_v41  ;;  %v3189_v41 = vld [vmem:[#allocation2 + $0x18a] sm:$0xff] }
 0x29c   : > { %3486 = vrot.lane.b32.xlu0 %v8185_v13, %s6958_s13  ;;  %v3661_v15 = vpop.permute.xlu1 %3660  ;;  %v8231_v1 = vpack.c.bf16 %v3189_v41, %v3188_v24  ;;  %v8283_v24 = vpack.c.bf16 %v7655_v32, %v7652_v11 }
 0x29d   : > { %v3904_v49 = vsel %vm2148_vm9, %v3869_v58, %v3661_v15  ;;  %v3280_v58 = vld [vmem:[#allocation2 + $0x169] sm:$0xff]  ;;  %v3281_v15 = vld [vmem:[#allocation2 + $0x171] sm:$0xff] }
 0x29e   : > { %v3471_v35 = vpop.permute.xlu0 %3470  ;;  %3534 = vrot.lane.b32.xlu1 %v3297_v9, %s6959_s19  ;;  %4126 = vmatmul.mubr.bf16.gmra.mrb[44].mxu0 %v3904_v49  ;;  %v3299_v49 = vpack.c.bf16 %v3281_v15, %v3280_v58 }
 0x29f   : > { %6369 = vmatprep.mubr.msk.bf16.mxu0 %vm796_vm4, %v7878_v51  ;;  %v3775_v61 = vsel %vm2016_vm5, %v3743_v0, %v3471_v35 }
 0x2a0   : > { %3582 = vrot.lane.b32.xlu0 %v8201_v5, %s9644_s28  ;;  %v3519_v56 = vpop.permute.xlu1 %3518 }
 0x2a1   : > { %v3807_v37 = vsel %vm2049_vm6, %v3775_v61, %v3519_v56  ;;  %v3186_v61 = vld [vmem:[#allocation2 + $0x16a] sm:$0xff]  ;;  %v3187_v56 = vld [vmem:[#allocation2 + $0x172] sm:$0xff] }
 0x2a2   : > { %v3567_v22 = vpop.permute.xlu0 %3566  ;;  %3392 = vrot.lane.b32.xlu1 %v3297_v9, %s9631_s16  ;;  %v8253_v4 = vpack.c.bf16 %v3187_v56, %v3186_v61 }
 0x2a3   : > { %v3839_v50 = vsel %vm2082_vm7, %v3807_v37, %v3567_v22 }
 0x2a4   : > { %3440 = vrot.lane.b32.xlu0 %v8201_v5, %s9643_s12  ;;  %v3871_v36 = vsel %vm2115_vm8, %v3839_v50, %v3615_v28  ;;  %v3377_v51 = vpop.permute.xlu1 %3376  ;;  %v3232_v28 = vld [vmem:[#allocation2 + $0x168] sm:$0xff] }
 0x2a5   : > { %v3907_v33 = vsel %vm2148_vm9, %v3871_v36, %v3663_v10  ;;  %v3703_v10 = vsel %vm796_vm4, %v7887_v45, %v3377_v51 }
 0x2a6   : > { %v3425_v12 = vpop.permute.xlu0 %3424  ;;  %3634 = vrot.lane.b32.xlu1 %v3252_v21, %s6956_s14  ;;  %4134 = vmatmul.mubr.bf16.gmra.mrb[48].mxu0 %v3907_v33 }
 0x2a7   : > { %6370 = vmatprep.mubr.msk.bf16.mxu0 %vm796_vm4, %v7970_v6  ;;  %v8235_v6 = vpack.c.bf16 %v3233_v57, %v3232_v28  ;;  %v3745_v35 = vsel %vm523_vm3, %v3703_v10, %v3425_v12 }
 0x2a8   : > { %3682 = vrot.lane.b32.xlu0 %v3300_v29, %s9642_s15  ;;  %v3619_v9 = vpop.permute.xlu1 %3618  ;;  %v3777_v63 = vsel %vm2016_vm5, %v3745_v35, %v8168_v18 }
 0x2a9   : > { %v3809_v22 = vsel %vm2049_vm6, %v3777_v63, %v8172_v62  ;;  %v3706_v62 = vsel %vm796_vm4, %v7858_v23, %v8183_v20  ;;  %v8345_v63 = vpack.c.bf16 %v7621_v43, %v7628_v52  ;;  %v9692_v43 = vld [vmem:[#allocation19_spill] sm:$0xff] }
 0x2aa   : > { %v3667_v16 = vpop.permute.xlu0 %3666  ;;  %3492 = vrot.lane.b32.xlu1 %v3252_v21, %s6958_s13  ;;  %v3841_v18 = vsel %vm2082_vm7, %v3809_v22, %v8179_v48  ;;  %v3747_v51 = vsel %vm523_vm3, %v3706_v62, %v8191_v7  ;;  %v9691_v22 = vld [vmem:[#allocation18_spill] sm:$0xff]  ;;  %v9694_v62 = vld [vmem:[#allocation56_spill] sm:$0xff] }
 0x2ab   : > { %v8357_v52 = vpack.c.bf16 %v9692_v43, %v9691_v22  ;;  %v9701_v22 = vld [vmem:[#allocation28_spill] sm:$0xff]  ;;  %v9702_v43 = vld [vmem:[#allocation29_spill] sm:$0xff] }
 0x2ac   : > { %3540 = vrot.lane.b32.xlu0 %v3300_v29, %s6959_s19  ;;  %v8229_v39 = vpop.permute.xlu1 %3476 }
 0x2ae   : > { %v8233_v60 = vpop.permute.xlu0 %3524  ;;  %3588 = vrot.lane.b32.xlu1 %v8231_v1, %s9644_s28 }
 0x2b0   : > { %3632 = vrot.lane.b32.xlu0 %v8235_v6, %s6956_s14  ;;  %v3573_v45 = vpop.permute.xlu1 %3572 }
 0x2b2   : > { %v8244_v0 = vpop.permute.xlu0 %3382  ;;  %3680 = vrot.lane.b32.xlu1 %v3299_v49, %s9642_s15 }
 0x2b4   : > { %3490 = vrot.lane.b32.xlu0 %v8235_v6, %s6958_s13  ;;  %v8249_v37 = vpop.permute.xlu1 %3430 }
 0x2b6   : > { %v3617_v8 = vpop.permute.xlu0 %3616  ;;  %3538 = vrot.lane.b32.xlu1 %v3299_v49, %s6959_s19 }
 0x2b7   : > { %v3873_v50 = vsel %vm2115_vm8, %v3841_v18, %v3617_v8  ;;  %v9693_v8 = vld [vmem:[#allocation22_spill] sm:$0xff] }
 0x2b8   : > { %3586 = vrot.lane.b32.xlu0 %v8253_v4, %s9644_s28  ;;  %v3665_v46 = vpop.permute.xlu1 %3664  ;;  %v4342_v18 = vld [vmem:[#allocation2 + $0x1] sm:$0xff] }
 0x2b9   : > { %v3910_v36 = vsel %vm2148_vm9, %v3873_v50, %v3665_v46  ;;  %v4343_v50 = vld [vmem:[#allocation2 + $0x9] sm:$0xff] }
 0x2ba   : > { %v3475_v14 = vpop.permute.xlu0 %3474  ;;  %3396 = vrot.lane.b32.xlu1 %v3299_v49, %s9631_s16  ;;  %4142 = vmatmul.mubr.bf16.gmra.mrb[52].mxu0 %v3910_v36  ;;  %v3712_v49 = vsel %vm796_vm4, %v7920_v47, %v8244_v0  ;;  %v4374_v36 = vpack.c.bf16 %v4343_v50, %v4342_v18 }
 0x2bb   : > { %6371 = vmatprep.mubr.msk.bf16.mxu0 %vm796_vm4, %v7936_v31  ;;  %v3779_v48 = vsel %vm2016_vm5, %v3747_v51, %v3475_v14 }
 0x2bc   : > { %3444 = vrot.lane.b32.xlu0 %v8253_v4, %s9643_s12  ;;  %v3523_v21 = vpop.permute.xlu1 %3522 }
 0x2bd   : > { %v3811_v33 = vsel %vm2049_vm6, %v3779_v48, %v3523_v21  ;;  %v4390_v48 = vld [vmem:[#allocation2 + $0x2] sm:$0xff]  ;;  %v4391_v21 = vld [vmem:[#allocation2 + $0xa] sm:$0xff] }
 0x2be   : > { %v3571_v12 = vpop.permute.xlu0 %3570  ;;  %1818 = vrot.lane.b32.xlu1 %v8127_v19, %s9644_s28 }
 0x2bf   : > { %v3843_v23 = vsel %vm2082_vm7, %v3811_v33, %v3571_v12 }
 0x2c0   : > { %1770 = vrot.lane.b32.xlu0 %v7573_v17, %s6959_s19  ;;  %v3875_v20 = vsel %vm2115_vm8, %v3843_v23, %v3619_v9  ;;  %v3381_v7 = vpop.permute.xlu1 %3380  ;;  %v4422_v23 = vpack.c.bf16 %v4391_v21, %v4390_v48 }
 0x2c1   : > { %v3913_v29 = vsel %vm2148_vm9, %v3875_v20, %v3667_v16  ;;  %v3709_v16 = vsel %vm796_vm4, %v7945_v26, %v3381_v7  ;;  %v8310_v26 = vpack.c.bf16 %v7626_v34, %v7623_v44 }
 0x2c2   : > { %v3429_v31 = vpop.permute.xlu0 %3428  ;;  %1914 = vrot.lane.b32.xlu1 %v7662_v25, %s9642_s15  ;;  %4150 = vmatmul.mubr.bf16.gmra.mrb[56].mxu0 %v3913_v29 }
 0x2c3   : > { %6372 = vmatprep.mubr.msk.bf16.mxu0 %vm796_vm4, %v8045_v54  ;;  %v3749_v28 = vsel %vm523_vm3, %v3709_v16, %v3429_v31 }
 0x2c4   : > { %1866 = vrot.lane.b32.xlu0 %v8283_v24, %s6956_s14  ;;  %v3623_v41 = vpop.permute.xlu1 %3622 }
 0x2c6   : > { %v3671_v9 = vpop.permute.xlu0 %3670  ;;  %1676 = vrot.lane.b32.xlu1 %v8127_v19, %s9643_s12 }
 0x2c8   : > { %1628 = vrot.lane.b32.xlu0 %v7573_v17, %s9631_s16  ;;  %v8297_v11 = vpop.permute.xlu1 %3480  ;;  %v3781_v17 = vsel %vm2016_vm5, %v3749_v28, %v8229_v39 }
 0x2c9   : > { %v3813_v10 = vsel %vm2049_vm6, %v3781_v17, %v8233_v60  ;;  %v9697_v17 = vld [vmem:[#allocation20_spill] sm:$0xff] }
 0x2ca   : > { %v8299_v32 = vpop.permute.xlu0 %3528  ;;  %1772 = vrot.lane.b32.xlu1 %v7662_v25, %s6959_s19  ;;  %v3845_v44 = vsel %vm2082_vm7, %v3813_v10, %v3573_v45  ;;  %v9698_v10 = vld [vmem:[#allocation21_spill] sm:$0xff] }
 0x2cc   : > { %1724 = vrot.lane.b32.xlu0 %v8283_v24, %s6958_s13  ;;  %v8306_v54 = vpop.permute.xlu1 %3576 }
 0x2ce   : > { %v8314_v19 = vpop.permute.xlu0 %3386  ;;  %1868 = vrot.lane.b32.xlu1 %v8310_v26, %s6956_s14 }
 0x2d0   : > { %1820 = vrot.lane.b32.xlu0 %v8157_v27, %s9644_s28  ;;  %v8320_v57 = vpop.permute.xlu1 %3434 }
 0x2d2   : > { %v3621_v58 = vpop.permute.xlu0 %3620  ;;  %1630 = vrot.lane.b32.xlu1 %v7662_v25, %s9631_s16  ;;  %v3751_v25 = vsel %vm523_vm3, %v3712_v49, %v8249_v37  ;;  %v9700_v49 = vld [vmem:[#allocation17_spill] sm:$0xff] }
 0x2d3   : > { %v3877_v34 = vsel %vm2115_vm8, %v3845_v44, %v3621_v58 }
 0x2d4   : > { %1916 = vrot.lane.b32.xlu0 %v7634_v55, %s9642_s15  ;;  %v3669_v39 = vpop.permute.xlu1 %3668 }
 0x2d5   : > { %v3916_v35 = vsel %vm2148_vm9, %v3877_v34, %v3669_v39 }
 0x2d6   : > { %v3479_v15 = vpop.permute.xlu0 %3478  ;;  %1726 = vrot.lane.b32.xlu1 %v8310_v26, %s6958_s13  ;;  %4158 = vmatmul.mubr.bf16.gmra.mrb[60].mxu0 %v3916_v35 }
 0x2d7   : > { %6373 = vmatprep.mubr.msk.bf16.mxu0 %vm796_vm4, %v8013_v3  ;;  %v3783_v60 = vsel %vm2016_vm5, %v3751_v25, %v3479_v15  ;;  %v9699_v15 = vld [vmem:[#allocation55_spill] sm:$0xff] }
 0x2d8   : > { %1678 = vrot.lane.b32.xlu0 %v8157_v27, %s9643_s12  ;;  %v3527_v45 = vpop.permute.xlu1 %3526  ;;  %v3718_v35 = vsel %vm796_vm4, %v9699_v15, %v8314_v19  ;;  %v9708_v15 = vld [vmem:[#allocation30_spill] sm:$0xff] }
 0x2d9   : > { %v3815_v47 = vsel %vm2049_vm6, %v3783_v60, %v3527_v45 }
 0x2da   : > { %v3575_v0 = vpop.permute.xlu0 %3574  ;;  %1822 = vrot.lane.b32.xlu1 %v8345_v63, %s9644_s28 }
 0x2db   : > { %v3847_v61 = vsel %vm2082_vm7, %v3815_v47, %v3575_v0 }
 0x2dc   : > { %1774 = vrot.lane.b32.xlu0 %v7634_v55, %s6959_s19  ;;  %v3879_v3 = vsel %vm2115_vm8, %v3847_v61, %v3623_v41  ;;  %v3385_v27 = vpop.permute.xlu1 %3384  ;;  %v9695_v41 = vld [vmem:[#allocation13_spill] sm:$0xff] }
 0x2dd   : > { %v3919_v56 = vsel %vm2148_vm9, %v3879_v3, %v3671_v9  ;;  %v3715_v51 = vsel %vm796_vm4, %v9694_v62, %v3385_v27  ;;  %v9696_v9 = vld [vmem:[#allocation14_spill] sm:$0xff]  ;;  %v9704_v62 = vld [vmem:[#allocation16_spill] sm:$0xff] }
 0x2de   : > { %v3433_v37 = vpop.permute.xlu0 %3432  ;;  %1918 = vrot.lane.b32.xlu1 %v9693_v8, %s9642_s15  ;;  %4166 = vmatmul.mubr.bf16.gmra.mrb[64].mxu0 %v3919_v56  ;;  %v8394_v16 = vpack.c.bf16 %v9696_v9, %v9695_v41  ;;  %v9705_v9 = vld [vmem:[#allocation32_spill] sm:$0xff] }
 0x2df   : > { %6374 = vmatprep.mubr.msk.bf16.mxu0 %vm796_vm4, %v8122_v53  ;;  %v3753_v53 = vsel %vm523_vm3, %v3715_v51, %v3433_v37 }
 0x2e0   : > { %1870 = vrot.lane.b32.xlu0 %v8357_v52, %s6956_s14  ;;  %v3627_v46 = vpop.permute.xlu1 %3626 }
 0x2e2   : > { %v3675_v14 = vpop.permute.xlu0 %3674  ;;  %1680 = vrot.lane.b32.xlu1 %v8345_v63, %s9643_s12 }
 0x2e4   : > { %1632 = vrot.lane.b32.xlu0 %v7634_v55, %s9631_s16  ;;  %v8371_v33 = vpop.permute.xlu1 %3484  ;;  %v3785_v55 = vsel %vm2016_vm5, %v3753_v53, %v8297_v11  ;;  %v8398_v11 = vpack.c.bf16 %v9698_v10, %v9697_v17 }
 0x2e5   : > { %v3817_v31 = vsel %vm2049_vm6, %v3785_v55, %v8299_v32 }
 0x2e6   : > { %v8373_v12 = vpop.permute.xlu0 %3532  ;;  %4742 = vrot.lane.b32.xlu1 %v4374_v36, %s9629_s24  ;;  %v3849_v58 = vsel %vm2082_vm7, %v3817_v31, %v8306_v54  ;;  %v3755_v54 = vsel %vm523_vm3, %v3718_v35, %v8320_v57  ;;  %v8427_v57 = vld [vmem:[%s9597_s4] ss:$0 sm:$0xff]  ;;  %v9703_v36 = vld [vmem:[#allocation15_spill] sm:$0xff]  ;;  %s6962_s24 = smov 120  }
 0x2e7   : > { %v8447_v51 = vpack.c.bf16 %v9704_v62, %v9703_v36 }
 0x2e8   : > { %1728 = vrot.lane.b32.xlu0 %v8357_v52, %s6958_s13  ;;  %v8379_v20 = vpop.permute.xlu1 %3580 }
 0x2ea   : > { %v8383_v7 = vpop.permute.xlu0 %3390  ;;  %4790 = vrot.lane.b32.xlu1 %v4422_v23, %s6958_s13 }
 0x2ec   : > { %1776 = vrot.lane.b32.xlu0 %v9693_v8, %s6959_s19  ;;  %v8388_v29 = vpop.permute.xlu1 %3438 }
 0x2ee   : > { %v3625_v28 = vpop.permute.xlu0 %3624  ;;  %1872 = vrot.lane.b32.xlu1 %v8394_v16, %s6956_s14 }
 0x2ef   : > { %v3881_v32 = vsel %vm2115_vm8, %v3849_v58, %v3625_v28 }
 0x2f0   : > { %1824 = vrot.lane.b32.xlu0 %v8398_v11, %s9644_s28  ;;  %v3673_v44 = vpop.permute.xlu1 %3672 }
 0x2f1   : > { %v3922_v39 = vsel %vm2148_vm9, %v3881_v32, %v3673_v44  ;;  %v9706_v32 = vld [vmem:[#allocation23_spill] sm:$0xff]  ;;  %v9707_v44 = vld [vmem:[#allocation24_spill] sm:$0xff] }
 0x2f2   : > { %v3483_v34 = vpop.permute.xlu0 %3482  ;;  %1634 = vrot.lane.b32.xlu1 %v9693_v8, %s9631_s16  ;;  %4174 = vmatmul.mubr.bf16.gmra.mrb[68].mxu0 %v3922_v39  ;;  %v8436_v8 = vpack.c.bf16 %v9702_v43, %v9701_v22  ;;  %v9713_v22 = vld [vmem:[#allocation40_spill] sm:$0xff] }
 0x2f3   : > { %6375 = vmatprep.mubr.msk.bf16.mxu0 %vm796_vm4, %v8082_v42  ;;  %v3787_v25 = vsel %vm2016_vm5, %v3755_v54, %v3483_v34  ;;  %v8476_v34 = vpack.c.bf16 %v9707_v44, %v9706_v32 }
 0x2f4   : > { %1920 = vrot.lane.b32.xlu0 %v9700_v49, %s9642_s15  ;;  %v3531_v60 = vpop.permute.xlu1 %3530 }
 0x2f5   : > { %v3819_v45 = vsel %vm2049_vm6, %v3787_v25, %v3531_v60 }
 0x2f6   : > { %v3579_v47 = vpop.permute.xlu0 %3578  ;;  %1730 = vrot.lane.b32.xlu1 %v8394_v16, %s6958_s13 }
 0x2f7   : > { %v3851_v19 = vsel %vm2082_vm7, %v3819_v45, %v3579_v47  ;;  %v9710_v45 = vld [vmem:[#allocation57_spill] sm:$0xff] }
 0x2f8   : > { %1682 = vrot.lane.b32.xlu0 %v8398_v11, %s9643_s12  ;;  %v3883_v42 = vsel %vm2115_vm8, %v3851_v19, %v3627_v46  ;;  %v3389_v0 = vpop.permute.xlu1 %3388  ;;  %v3724_v47 = vsel %vm796_vm4, %v9710_v45, %v8383_v7  ;;  %v9711_v19 = vld [vmem:[#allocation27_spill] sm:$0xff] }
 0x2f9   : > { %v2358_v61 = vpop.f32.mrb[32].mxu1  ;;  %v3925_v3 = vsel %vm2148_vm9, %v3883_v42, %v3675_v14  ;;  %v3721_v23 = vsel %vm796_vm4, %v8101_v2, %v3389_v0 }
 0x2fa   : > { %v3437_v27 = vpop.permute.xlu0 %3436  ;;  %v2359_v56 = vadd.f32 %v8427_v57, %v2358_v61  ;;  %v2360_v37 = vpop.f32.mrb[33].mxu1  ;;  %1778 = vrot.lane.b32.xlu1 %v9700_v49, %s6959_s19  ;;  %4182 = vmatmul.mubr.bf16.gmra.mrb[72].mxu0 %v3925_v3 }
 0x2fb   : > { %v2361_v18 = vpop.f32.mrb[34].mxu1  ;;  %6376 = vmatprep.mubr.msk.bf16.mxu0 %vm796_vm4, %v8201_v5  ;;  %v3757_v41 = vsel %vm523_vm3, %v3721_v23, %v3437_v27  ;;  %v9712_v37 = vld [vmem:[#allocation39_spill] sm:$0xff]  ;;  %v8545_v23 = vld [vmem:[%s9599_s6] ss:$0 sm:$0xff] }
 0x2fc   : > { %1874 = vrot.lane.b32.xlu0 %v8436_v8, %s6956_s14  ;;  %v2362_v50 = vadd.f32 %v8427_v57, %v2361_v18  ;;  %v2363_v46 = vpop.f32.mrb[35].mxu1  ;;  %v3631_v14 = vpop.permute.xlu1 %3630  ;;  %v2485_v48 = vmax.f32 %v2359_v56, 0.0  ;;  %v3789_v17 = vsel %vm2016_vm5, %v3757_v41, %v8371_v33  ;;  %v9709_v33 = vld [vmem:[#allocation31_spill] sm:$0xff]  ;;  %v8512_v43 = vpack.c.bf16 %v9713_v22, %v9712_v37  ;;  %v3332_v22 = vld [vmem:[#allocation2 + $0x19a] sm:$0xff] }
 0x2fd   : > { %v3821_v58 = vsel %vm2049_vm6, %v3789_v17, %v8373_v12  ;;  %v8480_v35 = vpack.c.bf16 %v9709_v33, %v9708_v15  ;;  %v9714_v46 = vld [vmem:[#allocation25_spill] sm:$0xff] }
 0x2fe   : > { %v2486_v21 = vmax.f32 %v2362_v50, 0.0  ;;  %v3679_v53 = vpop.permute.xlu0 %3678  ;;  %1826 = vrot.lane.b32.xlu1 %v8447_v51, %s9644_s28  ;;  %v3853_v54 = vsel %vm2082_vm7, %v3821_v58, %v8379_v20  ;;  %v3759_v20 = vsel %vm523_vm3, %v3724_v47, %v8388_v29 }
 0x300   : > { %v8453_v55 = vpack.c.bf16 %v2486_v21, %v2485_v48  ;;  %1636 = vrot.lane.b32.xlu0 %v9700_v49, %s9631_s16  ;;  %v3489_v5 = vpop.permute.xlu1 %3488 }
 0x302   : > { %v3537_v31 = vpop.permute.xlu0 %3536  ;;  %1922 = vrot.lane.b32.xlu1 %v9705_v9, %s9642_s15 }
 0x304   : > { %1732 = vrot.lane.b32.xlu0 %v8436_v8, %s6958_s13  ;;  %v3585_v28 = vpop.permute.xlu1 %3584 }
 0x306   : > { %v8464_v2 = vpop.permute.xlu0 %3394  ;;  %1684 = vrot.lane.b32.xlu1 %v8447_v51, %s9643_s12 }
 0x308   : > { %1780 = vrot.lane.b32.xlu0 %v9705_v9, %s6959_s19  ;;  %v8470_v10 = vpop.permute.xlu1 %3442 }
 0x30a   : > { %v3629_v39 = vpop.permute.xlu0 %3628  ;;  %1876 = vrot.lane.b32.xlu1 %v8476_v34, %s6956_s14 }
 0x30b   : > { %v3885_v12 = vsel %vm2115_vm8, %v3853_v54, %v3629_v39 }
 0x30c   : > { %1828 = vrot.lane.b32.xlu0 %v8480_v35, %s9644_s28  ;;  %v3677_v49 = vpop.permute.xlu1 %3676 }
 0x30d   : > { %v3928_v60 = vsel %vm2148_vm9, %v3885_v12, %v3677_v49  ;;  %v9717_v49 = vld [vmem:[#allocation34_spill] sm:$0xff] }
 0x30e   : > { %v3487_v25 = vpop.permute.xlu0 %3486  ;;  %1638 = vrot.lane.b32.xlu1 %v9705_v9, %s9631_s16  ;;  %4190 = vmatmul.mubr.bf16.gmra.mrb[76].mxu0 %v3928_v60 }
 0x30f   : > { %6377 = vmatprep.mubr.msk.bf16.mxu0 %vm796_vm4, %v8170_v38  ;;  %v3791_v42 = vsel %vm2016_vm5, %v3759_v20, %v3487_v25  ;;  %v9718_v25 = vld [vmem:[#allocation35_spill] sm:$0xff] }
 0x310   : > { %1924 = vrot.lane.b32.xlu0 %v9711_v19, %s9642_s15  ;;  %v3535_v0 = vpop.permute.xlu1 %3534  ;;  %v8562_v60 = vpack.c.bf16 %v9718_v25, %v9717_v49 }
 0x311   : > { %v3823_v61 = vsel %vm2049_vm6, %v3791_v42, %v3535_v0 }
 0x312   : > { %v3583_v3 = vpop.permute.xlu0 %3582  ;;  %1734 = vrot.lane.b32.xlu1 %v8476_v34, %s6958_s13 }
 0x313   : > { %v3855_v7 = vsel %vm2082_vm7, %v3823_v61, %v3583_v3  ;;  %v6831_v61 = vld [vmem:[%s9600_s7] sm:$0xff]   ;;  %v3730_v3 = vsel %vm796_vm4, %v8149_v40, %v8464_v2 }
 0x314   : > { %1686 = vrot.lane.b32.xlu0 %v8480_v35, %s9643_s12  ;;  %v3887_v29 = vsel %vm2115_vm8, %v3855_v7, %v3631_v14  ;;  %v3393_v27 = vpop.permute.xlu1 %3392  ;;  %v9715_v14 = vld [vmem:[#allocation26_spill] sm:$0xff]  ;;  %5553 = vmatpush1.bf16.msra.mxu0 %v6831_v61  ;;  %v9726_v61 = vld [vmem:[#allocation51_spill] sm:$0xff] }
 0x315   : > { %v3931_v56 = vsel %vm2148_vm9, %v3887_v29, %v3679_v53  ;;  %v3727_v18 = vsel %vm796_vm4, %v8185_v13, %v3393_v27  ;;  %v8526_v36 = vpack.c.bf16 %v9715_v14, %v9714_v46  ;;  %v9716_v53 = vld [vmem:[#allocation43_spill] sm:$0xff]  ;;  %v3763_v27 = vsel %vm523_vm3, %v3730_v3, %v8470_v10 }
 0x316   : > { %v3441_v38 = vpop.permute.xlu0 %3440  ;;  %1782 = vrot.lane.b32.xlu1 %v9711_v19, %s6959_s19  ;;  %4198 = vmatmul.mubr.bf16.gmra.mrb[80].mxu0 %v3931_v56  ;;  %v9721_v14 = vmov 0  }
 0x317   : > { %6378 = vmatprep.mubr.msk.bf16.mxu0 %vm796_vm4, %v8253_v4  ;;  %v3761_v48 = vsel %vm523_vm3, %v3727_v18, %v3441_v38  ;;  %v3333_v18 = vld [vmem:[#allocation2 + $0x1a2] sm:$0xff]  ;;  %5554 = vmatprep.subr.bf16.mxu0 %v9721_v14 }
 0x318   : > { %1878 = vrot.lane.b32.xlu0 %v8512_v43, %s6956_s14  ;;  %v8522_v50 = vpop.permute.xlu1 %3634  ;;  %v3793_v4 = vsel %vm2016_vm5, %v3761_v48, %v3489_v5 }
 0x319   : > { %v3825_v9 = vsel %vm2049_vm6, %v3793_v4, %v3537_v31 }
 0x31a   : > { %v8528_v62 = vpop.permute.xlu0 %3682  ;;  %1830 = vrot.lane.b32.xlu1 %v8526_v36, %s9644_s28  ;;  %v3857_v39 = vsel %vm2082_vm7, %v3825_v9, %v3585_v28  ;;  %v9719_v28 = vld [vmem:[#allocation41_spill] sm:$0xff] }
 0x31c   : > { %1640 = vrot.lane.b32.xlu0 %v9711_v19, %s9631_s16  ;;  %v8535_v13 = vpop.permute.xlu1 %3492  ;;  %v9720_v19 = vld [vmem:[#allocation42_spill] sm:$0xff] }
 0x31d   : > { %v8567_v42 = vpack.c.bf16 %v9720_v19, %v9719_v28  ;;  %v9724_v28 = vld [vmem:[#allocation58_spill] sm:$0xff] }
 0x31e   : > { %v8538_v21 = vpop.permute.xlu0 %3540  ;;  %1926 = vrot.lane.b32.xlu1 %v9716_v53, %s9642_s15 }
 0x320   : > { %1736 = vrot.lane.b32.xlu0 %v8512_v43, %s6958_s13  ;;  %v8549_v41 = vpop.permute.xlu1 %3588  ;;  %v4103_v17 = vpop.f32.mrb[32].mxu0 }
 0x321   : > { %v4104_v5 = vadd.f32 %v8545_v23, %v4103_v17  ;;  %v4105_v32 = vpop.f32.mrb[33].mxu0  ;;  %v9722_v17 = vld [vmem:[#allocation44_spill] sm:$0xff] }
 0x322   : > { %v3633_v58 = vpop.permute.xlu0 %3632  ;;  %1688 = vrot.lane.b32.xlu1 %v8526_v36, %s9643_s12  ;;  %v4106_v44 = vpop.f32.mrb[34].mxu0 }
 0x323   : > { %v4230_v15 = vmax.f32 %v4104_v5, 0.0  ;;  %v4107_v33 = vadd.f32 %v8545_v23, %v4106_v44  ;;  %v4108_v54 = vpop.f32.mrb[35].mxu0  ;;  %v3889_v31 = vsel %vm2115_vm8, %v3857_v39, %v3633_v58  ;;  %v1953_v58 = vsel %vm796_vm4, %v9722_v17, %v8147_v59  ;;  %v9723_v5 = vld [vmem:[#allocation38_spill] sm:$0xff] }
 0x324   : > { %1784 = vrot.lane.b32.xlu0 %v9716_v53, %s6959_s19  ;;  %v3681_v12 = vpop.permute.xlu1 %3680  ;;  %v3349_v44 = vpack.c.bf16 %v3333_v18, %v3332_v22  ;;  %v1995_v59 = vsel %vm523_vm3, %v1953_v58, %v8153_v30  ;;  %v9729_v22 = vld [vmem:[#allocation37_spill] sm:$0xff] }
 0x325   : > { %4262 = vst.msk [vmem:[#allocation2 + $0x19] sm:$0xff] %vm406_vm0, %v4230_v15  ;;  %v4231_v45 = vmax.f32 %v4107_v33, 0.0  ;;  %v2366_v20 = vpop.f32.mrb[36].mxu1  ;;  %v3934_v0 = vsel %vm2148_vm9, %v3889_v31, %v3681_v12  ;;  %v6835_v58 = vld [vmem:[%s9600_s7 + $0x20] sm:$0xff]  }
 0x326   : > { %v3491_v47 = vpop.permute.xlu0 %3490  ;;  %v2367_v7 = vadd.f32 %v8427_v57, %v2366_v20  ;;  %1880 = vrot.lane.b32.xlu1 %v8562_v60, %s6956_s14  ;;  %v2368_v29 = vpop.f32.mrb[37].mxu1  ;;  %4206 = vmatmul.mubr.bf16.gmra.mrb[84].mxu0 %v3934_v0  ;;  %v6833_v20 = vld [vmem:[%s9600_s7 + $0x10] sm:$0xff]   ;;  %v9725_v0 = vld [vmem:[#allocation50_spill] sm:$0xff] }
 0x327   : > { %4263 = vst.msk [vmem:[#allocation2 + $0x21] sm:$0xff] %vm406_vm0, %v4231_v45  ;;  %v2369_v56 = vpop.f32.mrb[38].mxu1  ;;  %6379 = vmatprep.mubr.msk.bf16.mxu0 %vm796_vm4, %v8231_v1  ;;  %v3795_v40 = vsel %vm2016_vm5, %v3763_v27, %v3491_v47  ;;  %v6832_v1 = vld [vmem:[%s9600_s7 + $0x8] sm:$0xff]   ;;  %v8631_v3 = vpack.c.bf16 %v9726_v61, %v9725_v0 }
 0x328   : > { %1832 = vrot.lane.b32.xlu0 %v8567_v42, %s9644_s28  ;;  %v2370_v2 = vadd.f32 %v8427_v57, %v2369_v56  ;;  %v3539_v38 = vpop.permute.xlu1 %3538  ;;  %v2371_v37 = vpop.f32.mrb[39].mxu1  ;;  %v2487_v48 = vmax.f32 %v2367_v7, 0.0  ;;  %5555 = vmatpush1.bf16.msra.mxu0 %v6832_v1  ;;  %v9727_v56 = vld [vmem:[#allocation12_spill] sm:$0xff] }
 0x329   : > { %v3827_v10 = vsel %vm2049_vm6, %v3795_v40, %v3539_v38  ;;  %5556 = vmatprep.subr.bf16.mxu0 %v9721_v14  ;;  %v9728_v37 = vld [vmem:[#allocation36_spill] sm:$0xff] }
 0x32a   : > { %v3587_v46 = vpop.permute.xlu0 %3586  ;;  %v2488_v4 = vmax.f32 %v2370_v2, 0.0  ;;  %1642 = vrot.lane.b32.xlu1 %v9716_v53, %s9631_s16  ;;  %v8650_v18 = vpack.c.bf16 %v9729_v22, %v9728_v37 }
 0x32b   : > { %v3859_v9 = vsel %vm2082_vm7, %v3827_v10, %v3587_v46 }
 0x32c   : > { %1928 = vrot.lane.b32.xlu0 %v9723_v5, %s9642_s15  ;;  %v3891_v32 = vsel %vm2115_vm8, %v3859_v9, %v8522_v50  ;;  %v8603_v39 = vpack.c.bf16 %v2488_v4, %v2487_v48  ;;  %v3397_v15 = vpop.permute.xlu1 %3396  ;;  %5557 = vmatpush1.bf16.msra.mxu0 %v6833_v20  ;;  %v9730_v48 = vld [vmem:[#allocation11_spill] sm:$0xff] }
 0x32d   : > { %v3937_v53 = vsel %vm2148_vm9, %v3891_v32, %v8528_v62  ;;  %v3733_v33 = vsel %vm796_vm4, %v8235_v6, %v3397_v15  ;;  %v2374_v31 = vpop.f32.mrb[40].mxu1  ;;  %5558 = vmatprep.subr.bf16.mxu0 %v9721_v14 }
 0x32e   : > { %v3445_v54 = vpop.permute.xlu0 %3444  ;;  %v2375_v12 = vadd.f32 %v8427_v57, %v2374_v31  ;;  %1738 = vrot.lane.b32.xlu1 %v8562_v60, %s6958_s13  ;;  %v2376_v49 = vpop.f32.mrb[41].mxu1  ;;  %4214 = vmatmul.mubr.bf16.gmra.mrb[88].mxu0 %v3937_v53  ;;  %v6836_v53 = vld [vmem:[%s9600_s7 + $0x28] sm:$0xff]  }
 0x32f   : > { %v3765_v50 = vsel %vm523_vm3, %v3733_v33, %v3445_v54  ;;  %v2377_v6 = vpop.f32.mrb[42].mxu1  ;;  %6380 = vmatprep.mubr.msk.bf16.mxu0 %vm796_vm4, %v3349_v44  ;;  %v9731_v44 = vld [vmem:[#allocation33_spill] sm:$0xff]  ;;  %v9734_v49 = vld [vmem:[#allocation46_spill] sm:$0xff] }
 0x330   : > { %v3797_v62 = vsel %vm2016_vm5, %v3765_v50, %v8535_v13  ;;  %1690 = vrot.lane.b32.xlu0 %v8567_v42, %s9643_s12  ;;  %v2378_v25 = vadd.f32 %v8427_v57, %v2377_v6  ;;  %v1819_v45 = vpop.permute.xlu1 %1818  ;;  %v2379_v47 = vpop.f32.mrb[43].mxu1  ;;  %v2028_v13 = vsel %vm2016_vm5, %v1995_v59, %v9724_v28  ;;  %v6837_v59 = vld [vmem:[%s9600_s7 + $0x30] sm:$0xff]  }
 0x331   : > { %v3829_v30 = vsel %vm2049_vm6, %v3797_v62, %v8538_v21  ;;  %v2489_v21 = vmax.f32 %v2375_v12, 0.0  ;;  %v9733_v12 = vld [vmem:[#allocation45_spill] sm:$0xff] }
 0x332   : > { %v1771_v19 = vpop.permute.xlu0 %1770  ;;  %v3861_v7 = vsel %vm2082_vm7, %v3829_v30, %v8549_v41  ;;  %v2490_v29 = vmax.f32 %v2378_v25, 0.0  ;;  %1786 = vrot.lane.b32.xlu1 %v9723_v5, %s6959_s19  ;;  %v6834_v41 = vld [vmem:[%s9600_s7 + $0x18] sm:$0xff]   ;;  %v1502_v62 = vpack.c.bf16 %v9734_v49, %v9733_v12  ;;  %v6842_v12 = vld [vmem:[%s9600_s7 + $0x50] sm:$0xff]  }
 0x333   : > { %v2061_v27 = vsel %vm2049_vm6, %v2028_v13, %v1771_v19  ;;  %v3893_v40 = vsel %vm2115_vm8, %v3861_v7, %v9727_v56  ;;  %5559 = vmatpush1.bf16.msra.mxu0 %v6834_v41  ;;  %v9735_v25 = vld [vmem:[#allocation52_spill] sm:$0xff]  ;;  %v9738_v7 = vld [vmem:[#allocation49_spill] sm:$0xff] }
 0x334   : > { %1882 = vrot.lane.b32.xlu0 %v8631_v3, %s6956_s14  ;;  %v8646_v2 = vpack.c.bf16 %v2490_v29, %v2489_v21  ;;  %v1915_v38 = vpop.permute.xlu1 %1914  ;;  %v2094_v10 = vsel %vm2082_vm7, %v2061_v27, %v1819_v45  ;;  %v3940_v4 = vsel %vm2148_vm9, %v3893_v40, %v9730_v48  ;;  %5560 = vmatprep.subr.bf16.mxu0 %v9721_v14  ;;  %v9736_v45 = vld [vmem:[#allocation53_spill] sm:$0xff]  ;;  %v6838_v13 = vld [vmem:[%s9600_s7 + $0x38] sm:$0xff]  }
 0x335   : > { %v8692_v47 = vpack.c.bf16 %v9736_v45, %v9735_v25  ;;  %v1486_v29 = vld [vmem:[#allocation2 + $0x198] sm:$0xff]  ;;  %v1487_v27 = vld [vmem:[#allocation2 + $0x1a0] sm:$0xff] }
 0x336   : > { %v1867_v46 = vpop.permute.xlu0 %1866  ;;  %1834 = vrot.lane.b32.xlu1 %v8650_v18, %s9644_s28  ;;  %4222 = vmatmul.mubr.bf16.gmra.mrb[92].mxu0 %v3940_v4  ;;  %v6839_v56 = vld [vmem:[%s9600_s7 + $0x40] sm:$0xff]  }
 0x337   : > { %v2127_v9 = vsel %vm2115_vm8, %v2094_v10, %v1867_v46  ;;  %5561 = vmatpush1.bf16.msra.mxu0 %v6835_v58  ;;  %v8721_v46 = vpack.c.bf16 %v1487_v27, %v1486_v29 }
 0x338   : > { %1644 = vrot.lane.b32.xlu0 %v9723_v5, %s9631_s16  ;;  %v2165_v1 = vsel %vm2148_vm9, %v2127_v9, %v1915_v38  ;;  %v1677_v17 = vpop.permute.xlu1 %1676  ;;  %v9732_v5 = vld [vmem:[#allocation54_spill] sm:$0xff]  ;;  %5562 = vmatprep.subr.bf16.mxu0 %v9721_v14  ;;  %s6963_s16 = smov 72  }
 0x339   : > { %2397 = vmatmul.mubr.bf16.gmra.mrb[52].mxu1 %v2165_v1  ;;  %v6840_v1 = vld [vmem:[%s9600_s7 + $0x48] sm:$0xff]  }
 0x33a   : > { %v1629_v32 = vpop.permute.xlu0 %1628  ;;  %6327 = vmatprep.mubr.msk.bf16.mxu1 %vm796_vm4, %v8345_v63  ;;  %1930 = vrot.lane.b32.xlu1 %v9732_v5, %s9642_s15 }
 0x33b   : > { %v1956_v15 = vsel %vm796_vm4, %v9731_v44, %v1629_v32  ;;  %5563 = vmatpush1.bf16.msra.mxu0 %v6836_v53  ;;  %v6841_v32 = vld [vmem:[%s9602_s9 + $0x8] sm:$0xff]  }
 0x33c   : > { %1740 = vrot.lane.b32.xlu0 %v8631_v3, %s6958_s13  ;;  %v1773_v33 = vpop.permute.xlu1 %1772  ;;  %v1997_v54 = vsel %vm523_vm3, %v1956_v15, %v1677_v17  ;;  %5564 = vmatprep.subr.bf16.mxu0 %v9721_v14  ;;  %v4535_v53 = vld [vmem:[#allocation2 + $0x22] sm:$0xff] }
 0x33d   : > { %6578 = vmatprep.subr.bf16.mxu1 %v6841_v32 }
 0x33e   : > { %v1725_v63 = vpop.permute.xlu0 %1724  ;;  %1692 = vrot.lane.b32.xlu1 %v8650_v18, %s9643_s12  ;;  %6579 = vmatpush3.bf16.msra.mxu1 %v6841_v32  ;;  %v6846_v32 = vld [vmem:[%s9600_s7 + $0x68] ss:$0 sps:$4 sm:$0xff]  }
 0x33f   : > { %v2030_v31 = vsel %vm2016_vm5, %v1997_v54, %v1725_v63  ;;  %5565 = vmatpush1.bf16.msra.mxu0 %v6837_v59  ;;  %v1535_v54 = vld [vmem:[#allocation2 + $0x1a1] sm:$0xff]  ;;  %v9740_v59 = vld [vmem:[#allocation48_spill] sm:$0xff] }
 0x340   : > { %1788 = vrot.lane.b32.xlu0 %v9732_v5, %s6959_s19  ;;  %v1869_v50 = vpop.permute.xlu1 %1868  ;;  %v2063_v6 = vsel %vm2049_vm6, %v2030_v31, %v1773_v33  ;;  %5566 = vmatprep.subr.bf16.mxu0 %v9721_v14  ;;  %v1534_v33 = vld [vmem:[#allocation2 + $0x199] sm:$0xff]  ;;  %v9739_v31 = vld [vmem:[#allocation47_spill] sm:$0xff] }
 0x342   : > { %v1821_v30 = vpop.permute.xlu0 %1820  ;;  %1884 = vrot.lane.b32.xlu1 %v1502_v62, %s6956_s14 }
 0x343   : > { %v2096_v20 = vsel %vm2082_vm7, %v2063_v6, %v1821_v30  ;;  %5567 = vmatpush1.bf16.msra.mxu0 %v6838_v13  ;;  %v4487_v13 = vld [vmem:[#allocation2 + $0x21] sm:$0xff] }
 0x344   : > { %1836 = vrot.lane.b32.xlu0 %v8692_v47, %s9644_s28  ;;  %v1631_v28 = vpop.permute.xlu1 %1630  ;;  %v2129_v0 = vsel %vm2115_vm8, %v2096_v20, %v1869_v50  ;;  %5568 = vmatprep.subr.bf16.mxu0 %v9721_v14  ;;  %v8741_v50 = vpack.c.bf16 %v9740_v59, %v9739_v31 }
 0x345   : > { %v1959_v40 = vsel %vm796_vm4, %v8283_v24, %v1631_v28  ;;  %v1551_v28 = vpack.c.bf16 %v1535_v54, %v1534_v33 }
 0x346   : > { %v1917_v19 = vpop.permute.xlu0 %1916  ;;  %1646 = vrot.lane.b32.xlu1 %v9732_v5, %s9737_s26  ;;  %v4534_v5 = vld [vmem:[#allocation2 + $0x1a] sm:$0xff] }
 0x347   : > { %v2168_v61 = vsel %vm2148_vm9, %v2129_v0, %v1917_v19  ;;  %5569 = vmatpush1.bf16.msra.mxu0 %v6839_v56  ;;  %v8747_v30 = vpack.c.bf16 %v4535_v53, %v4534_v5  ;;  %v6843_v19 = vld [vmem:[%s9602_s9 + $0x10] ss:$0 sps:$4 sm:$0xff]   ;;  %v4486_v56 = vld [vmem:[#allocation2 + $0x19] sm:$0xff] }
 0x348   : > { %1932 = vrot.lane.b32.xlu0 %v9738_v7, %s9642_s15  ;;  %2405 = vmatmul.mubr.bf16.gmra.mrb[56].mxu1 %v2168_v61  ;;  %v1727_v21 = vpop.permute.xlu1 %1726  ;;  %v4438_v5 = vld [vmem:[#allocation2 + $0x18] sm:$0xff] }
 0x349   : > { %6328 = vmatprep.mubr.msk.bf16.mxu1 %vm796_vm4, %v8398_v11  ;;  %v4111_v38 = vpop.f32.mrb[36].mxu0  ;;  %5570 = vmatprep.subr.bf16.mxu0 %v9721_v14 }
 0x34a   : > { %v1679_v41 = vpop.permute.xlu0 %1678  ;;  %v4112_v22 = vadd.f32 %v8545_v23, %v4111_v38  ;;  %1742 = vrot.lane.b32.xlu1 %v1502_v62, %s6958_s13  ;;  %v4113_v11 = vpop.f32.mrb[37].mxu0  ;;  %6746 = vmatprep.subr.msk.bf16.mxu1 %vm2593_vm10, %v6843_v19 }
 0x34b   : > { %v1999_v37 = vsel %vm523_vm3, %v1959_v40, %v1679_v41  ;;  %v4114_v10 = vpop.f32.mrb[38].mxu0  ;;  %5571 = vmatpush1.bf16.msra.mxu0 %v6840_v1  ;;  %v2595_v40 = vsel %vm2593_vm10, %v6843_v19, 0  ;;  %v6844_v41 = vld [vmem:[%s9600_s7 + $0x58] sm:$0xff]   ;;  %v6845_v1 = vld [vmem:[%s9600_s7 + $0x60] sm:$0xff]  }
 0x34c   : > { %1694 = vrot.lane.b32.xlu0 %v8692_v47, %s9643_s12  ;;  %v4232_v48 = vmax.f32 %v4112_v22, 0.0  ;;  %v4115_v24 = vadd.f32 %v8545_v23, %v4114_v10  ;;  %v1823_v4 = vpop.permute.xlu1 %1822  ;;  %v4116_v9 = vpop.f32.mrb[39].mxu0  ;;  %v2032_v17 = vsel %vm2016_vm5, %v1999_v37, %v1727_v21  ;;  %5572 = vmatprep.subr.bf16.mxu0 %v9721_v14  ;;  %v4518_v22 = vpack.c.bf16 %v4487_v13, %v4486_v56  ;;  %s6964_s12 = smov 40  }
 0x34d   : > { %6581 = vmatpush3.bf16.msra.mxu1 %v2595_v40 }
 0x34e   : > { %v1775_v58 = vpop.permute.xlu0 %1774  ;;  %4264 = vst.msk [vmem:[#allocation2 + $0x31] sm:$0xff] %vm406_vm0, %v4232_v48  ;;  %v4233_v44 = vmax.f32 %v4115_v24, 0.0  ;;  %1790 = vrot.lane.b32.xlu1 %v9738_v7, %s6959_s19 }
 0x34f   : > { %v2065_v15 = vsel %vm2049_vm6, %v2032_v17, %v1775_v58  ;;  %5573 = vmatpush1.bf16.msra.mxu0 %v6842_v12  ;;  %v4439_v58 = vld [vmem:[#allocation2 + $0x20] sm:$0xff] }
 0x350   : > { %1886 = vrot.lane.b32.xlu0 %v8721_v46, %s6956_s14  ;;  %4265 = vst.msk [vmem:[#allocation2 + $0x39] sm:$0xff] %vm406_vm0, %v4233_v44  ;;  %v1919_v63 = vpop.permute.xlu1 %1918  ;;  %v2098_v49 = vsel %vm2082_vm7, %v2065_v15, %v1823_v4  ;;  %5574 = vmatprep.subr.bf16.mxu0 %v9721_v14 }
 0x351   : > { %v4119_v6 = vpop.f32.mrb[40].mxu0 }
 0x352   : > { %v1871_v62 = vpop.permute.xlu0 %1870  ;;  %v4120_v45 = vadd.f32 %v8545_v23, %v4119_v6  ;;  %1838 = vrot.lane.b32.xlu1 %v8741_v50, %s9644_s28  ;;  %v4121_v20 = vpop.f32.mrb[41].mxu0 }
 0x353   : > { %v2131_v25 = vsel %vm2115_vm8, %v2098_v49, %v1871_v62  ;;  %v4122_v61 = vpop.f32.mrb[42].mxu0  ;;  %5575 = vmatpush1.bf16.msra.mxu0 %v6844_v41 }
 0x354   : > { %4934 = vrot.lane.b32.xlu0 %v8747_v30, %s6962_s24  ;;  %v2171_v0 = vsel %vm2148_vm9, %v2131_v25, %v1919_v63  ;;  %v4234_v7 = vmax.f32 %v4120_v45, 0.0  ;;  %v4123_v21 = vadd.f32 %v8545_v23, %v4122_v61  ;;  %v1681_v29 = vpop.permute.xlu1 %1680  ;;  %v4124_v27 = vpop.f32.mrb[43].mxu0  ;;  %5576 = vmatprep.subr.bf16.mxu0 %v9721_v14  ;;  %v8793_v63 = vpack.c.bf16 %v4439_v58, %v4438_v5 }
 0x355   : > { %2413 = vmatmul.mubr.bf16.gmra.mrb[60].mxu1 %v2171_v0  ;;  %v2382_v37 = vpop.f32.mrb[44].mxu1  ;;  %v4582_v45 = vld [vmem:[#allocation2 + $0x30] sm:$0xff] }
 0x356   : > { %v1633_v38 = vpop.permute.xlu0 %1632  ;;  %6329 = vmatprep.mubr.msk.bf16.mxu1 %vm796_vm4, %v8447_v51  ;;  %4266 = vst.msk [vmem:[#allocation2 + $0x49] sm:$0xff] %vm406_vm0, %v4234_v7  ;;  %v4235_v11 = vmax.f32 %v4123_v21, 0.0  ;;  %v2383_v10 = vadd.f32 %v8427_v57, %v2382_v37  ;;  %1934 = vrot.lane.b32.xlu1 %v1551_v28, %s9642_s15  ;;  %v2384_v48 = vpop.f32.mrb[45].mxu1  ;;  %v4630_v0 = vld [vmem:[#allocation2 + $0x31] sm:$0xff]  ;;  %s9742_s15 = sshll.u32 %s7132_s22, 8 }
 0x357   : > { %v2385_v24 = vpop.f32.mrb[46].mxu1  ;;  %v1962_v53 = vsel %vm796_vm4, %v8310_v26, %v1633_v38  ;;  %5577 = vmatpush1.bf16.msra.mxu0 %v6845_v1  ;;  %v4583_v12 = vld [vmem:[#allocation2 + $0x38] sm:$0xff]  ;;  %s9420_s28 = scalar_lea.vmem [#allocation6], %s9742_s15 }
 0x358   : > { %4886 = vrot.lane.b32.xlu0 %v4518_v22, %s6956_s14  ;;  %4267 = vst.msk [vmem:[#allocation2 + $0x51] sm:$0xff] %vm406_vm0, %v4235_v11  ;;  %v2386_v51 = vadd.f32 %v8427_v57, %v2385_v24  ;;  %v8775_v4 = vpop.permute.xlu1 %4742  ;;  %v2387_v9 = vpop.f32.mrb[47].mxu1  ;;  %v2491_v44 = vmax.f32 %v2383_v10, 0.0  ;;  %5578 = vmatprep.subr.bf16.mxu0 %v9721_v14  ;;  %v4631_v62 = vld [vmem:[#allocation2 + $0x39] sm:$0xff]  ;;  %v2001_v6 = vsel %vm523_vm3, %v1962_v53, %v1681_v29 }
 0x359   : > { %v4614_v19 = vpack.c.bf16 %v4583_v12, %v4582_v45  ;;  %v4662_v21 = vpack.c.bf16 %v4631_v62, %v4630_v0  ;;  %v4678_v27 = vld [vmem:[#allocation2 + $0x32] sm:$0xff]  ;;  %v4679_v29 = vld [vmem:[#allocation2 + $0x3a] sm:$0xff] }
 0x35a   : > { %v1729_v17 = vpop.permute.xlu0 %1728  ;;  %v2492_v15 = vmax.f32 %v2386_v51, 0.0  ;;  %5012 = vrot.lane.b32.xlu1 %v8721_v46, %s9737_s26  ;;  %v5550_v46 = vsel %vm2593_vm10, %v6846_v32, 0  ;;  %v4710_v38 = vpack.c.bf16 %v4679_v29, %v4678_v27 }
 0x35b   : > { %v2034_v20 = vsel %vm2016_vm5, %v2001_v6, %v1729_v17  ;;  %5579 = vmatpush1.bf16.msra.mxu0 %v5550_v46 }
 0x35c   : > { %4744 = vrot.lane.b32.xlu0 %v4518_v22, %s9741_s25  ;;  %v8789_v33 = vpack.c.bf16 %v2492_v15, %v2491_v44  ;;  %v8791_v54 = vpop.permute.xlu1 %4790 }
 0x35d   : > { %v2390_v59 = vpop.f32.mrb[48].mxu1  ;;  %v4584_v24 = vld [vmem:[#allocation2 + $0x48] sm:$0xff] }
 0x35e   : > { %v1777_v31 = vpop.permute.xlu0 %1776  ;;  %v2391_v49 = vadd.f32 %v8427_v57, %v2390_v59  ;;  %4838 = vrot.lane.b32.xlu1 %v8793_v63, %s6963_s16  ;;  %v2392_v26 = vpop.f32.mrb[49].mxu1 }
 0x35f   : > { %v2393_v25 = vpop.f32.mrb[50].mxu1  ;;  %v2067_v61 = vsel %vm2049_vm6, %v2034_v20, %v1777_v31  ;;  %v4585_v10 = vld [vmem:[#allocation2 + $0x50] sm:$0xff] }
 0x360   : > { %4792 = vrot.lane.b32.xlu0 %v8747_v30, %s6958_s13  ;;  %v2394_v14 = vadd.f32 %v8427_v57, %v2393_v25  ;;  %v1873_v28 = vpop.permute.xlu1 %1872  ;;  %v2395_v13 = vpop.f32.mrb[51].mxu1  ;;  %v2493_v56 = vmax.f32 %v2391_v49, 0.0  ;;  %v4615_v9 = vpack.c.bf16 %v4585_v10, %v4584_v24  ;;  %v4680_v1 = vld [vmem:[#allocation2 + $0x4a] sm:$0xff]  ;;  %v4681_v17 = vld [vmem:[#allocation2 + $0x52] sm:$0xff] }
 0x361   : > { %v4711_v5 = vpack.c.bf16 %v4681_v17, %v4680_v1  ;;  %v4491_v26 = vld [vmem:[#allocation2 + $0x51] sm:$0xff] }
 0x362   : > { %v1825_v7 = vpop.permute.xlu0 %1824  ;;  %v2494_v40 = vmax.f32 %v2394_v14, 0.0  ;;  %4982 = vrot.lane.b32.xlu1 %v4614_v19, %s9737_s26  ;;  %v4490_v14 = vld [vmem:[#allocation2 + $0x49] sm:$0xff] }
 0x363   : > { %v2100_v30 = vsel %vm2082_vm7, %v2067_v61, %v1825_v7 }
 0x364   : > { %5030 = vrot.lane.b32.xlu0 %v4662_v21, %s6964_s12  ;;  %v8809_v57 = vpack.c.bf16 %v2494_v40, %v2493_v56  ;;  %v1635_v41 = vpop.permute.xlu1 %1634  ;;  %v2133_v22 = vsel %vm2115_vm8, %v2100_v30, %v1873_v28 }
 0x365   : > { %v1965_v58 = vsel %vm796_vm4, %v8357_v52, %v1635_v41 }
 0x366   : > { %v1921_v37 = vpop.permute.xlu0 %1920  ;;  %5078 = vrot.lane.b32.xlu1 %v4710_v38, %s6959_s19 }
 0x367   : > { %v2174_v11 = vsel %vm2148_vm9, %v2133_v22, %v1921_v37 }
 0x368   : > { %4840 = vrot.lane.b32.xlu0 %v4614_v19, %s6963_s16  ;;  %2421 = vmatmul.mubr.bf16.gmra.mrb[64].mxu1 %v2174_v11  ;;  %v1731_v48 = vpop.permute.xlu1 %1730  ;;  %v4520_v19 = vpack.c.bf16 %v4491_v26, %v4490_v14 }
 0x369   : > { %6330 = vmatprep.mubr.msk.bf16.mxu1 %vm796_vm4, %v8480_v35 }
 0x36a   : > { %v1683_v51 = vpop.permute.xlu0 %1682  ;;  %4936 = vrot.lane.b32.xlu1 %v4710_v38, %s6962_s24 }
 0x36b   : > { %v2003_v32 = vsel %vm523_vm3, %v1965_v58, %v1683_v51 }
 0x36c   : > { %4984 = vrot.lane.b32.xlu0 %v4615_v9, %s9737_s26  ;;  %v1779_v44 = vpop.permute.xlu1 %1778  ;;  %v2036_v35 = vsel %vm2016_vm5, %v2003_v32, %v1731_v48 }
 0x36d   : > { %v2069_v53 = vsel %vm2049_vm6, %v2036_v35, %v1779_v44 }
 0x36e   : > { %v1875_v15 = vpop.permute.xlu0 %1874  ;;  %4888 = vrot.lane.b32.xlu1 %v4662_v21, %s6956_s14 }
 0x370   : > { %5080 = vrot.lane.b32.xlu0 %v4711_v5, %s6959_s19  ;;  %v1827_v31 = vpop.permute.xlu1 %1826 }
 0x371   : > { %v2102_v59 = vsel %vm2082_vm7, %v2069_v53, %v1827_v31  ;;  %v4127_v52 = vpop.f32.mrb[44].mxu0 }
 0x372   : > { %v1637_v12 = vpop.permute.xlu0 %1636  ;;  %v4128_v46 = vadd.f32 %v8545_v23, %v4127_v52  ;;  %v4129_v49 = vpop.f32.mrb[45].mxu0  ;;  %4746 = vrot.lane.b32.xlu1 %v4662_v21, %s9741_s25  ;;  %v2135_v28 = vsel %vm2115_vm8, %v2102_v59, %v1875_v15 }
 0x373   : > { %v4130_v62 = vpop.f32.mrb[46].mxu0  ;;  %v1968_v7 = vsel %vm796_vm4, %v8394_v16, %v1637_v12 }
 0x374   : > { %4938 = vrot.lane.b32.xlu0 %v4711_v5, %s6962_s24  ;;  %v4236_v6 = vmax.f32 %v4128_v46, 0.0  ;;  %v4131_v25 = vadd.f32 %v8545_v23, %v4130_v62  ;;  %v1923_v45 = vpop.permute.xlu1 %1922  ;;  %v4132_v20 = vpop.f32.mrb[47].mxu0 }
 0x375   : > { %v2177_v0 = vsel %vm2148_vm9, %v2135_v28, %v1923_v45 }
 0x376   : > { %v1733_v13 = vpop.permute.xlu0 %1732  ;;  %4268 = vst.msk [vmem:[#allocation2 + $0x61] sm:$0xff] %vm406_vm0, %v4236_v6  ;;  %v4237_v61 = vmax.f32 %v4131_v25, 0.0  ;;  %4794 = vrot.lane.b32.xlu1 %v4710_v38, %s6958_s13  ;;  %2429 = vmatmul.mubr.bf16.gmra.mrb[68].mxu1 %v2177_v0 }
 0x377   : > { %6331 = vmatprep.mubr.msk.bf16.mxu1 %vm796_vm4, %v8526_v36 }
 0x378   : > { %4890 = vrot.lane.b32.xlu0 %v4520_v19, %s6956_s14  ;;  %4269 = vst.msk [vmem:[#allocation2 + $0x69] sm:$0xff] %vm406_vm0, %v4237_v61  ;;  %v1685_v21 = vpop.permute.xlu1 %1684 }
 0x379   : > { %v2005_v27 = vsel %vm523_vm3, %v1968_v7, %v1685_v21  ;;  %v4135_v56 = vpop.f32.mrb[48].mxu0 }
 0x37a   : > { %v1781_v29 = vpop.permute.xlu0 %1780  ;;  %v2038_v40 = vsel %vm2016_vm5, %v2005_v27, %v1733_v13  ;;  %v4136_v30 = vadd.f32 %v8545_v23, %v4135_v56  ;;  %v4137_v41 = vpop.f32.mrb[49].mxu0  ;;  %5032 = vrot.lane.b32.xlu1 %v4520_v19, %s6964_s12 }
 0x37b   : > { %v2071_v38 = vsel %vm2049_vm6, %v2038_v40, %v1781_v29  ;;  %v4138_v36 = vpop.f32.mrb[50].mxu0 }
 0x37c   : > { %4748 = vrot.lane.b32.xlu0 %v4520_v19, %s9741_s25  ;;  %v4238_v16 = vmax.f32 %v4136_v30, 0.0  ;;  %v4139_v37 = vadd.f32 %v8545_v23, %v4138_v36  ;;  %v1877_v22 = vpop.permute.xlu1 %1876  ;;  %v4140_v11 = vpop.f32.mrb[51].mxu0 }
 0x37d   : > { %v4586_v51 = vld [vmem:[#allocation2 + $0x60] sm:$0xff] }
 0x37e   : > { %v1829_v10 = vpop.permute.xlu0 %1828  ;;  %4270 = vst.msk [vmem:[#allocation2 + $0x79] sm:$0xff] %vm406_vm0, %v4238_v16  ;;  %v4239_v48 = vmax.f32 %v4139_v37, 0.0  ;;  %4842 = vrot.lane.b32.xlu1 %v4615_v9, %s6963_s16  ;;  %v4634_v17 = vld [vmem:[#allocation2 + $0x61] sm:$0xff] }
 0x37f   : > { %v2104_v24 = vsel %vm2082_vm7, %v2071_v38, %v1829_v10  ;;  %v4587_v1 = vld [vmem:[#allocation2 + $0x68] sm:$0xff] }
 0x380   : > { %4796 = vrot.lane.b32.xlu0 %v4711_v5, %s6958_s13  ;;  %v4635_v58 = vld [vmem:[#allocation2 + $0x69] sm:$0xff]  ;;  %4271 = vst.msk [vmem:[#allocation2 + $0x81] sm:$0xff] %vm406_vm0, %v4239_v48  ;;  %v1639_v32 = vpop.permute.xlu1 %1638  ;;  %v4616_v44 = vpack.c.bf16 %v4587_v1, %v4586_v51  ;;  %v2137_v53 = vsel %vm2115_vm8, %v2104_v24, %v1877_v22 }
 0x381   : > { %v4664_v15 = vpack.c.bf16 %v4635_v58, %v4634_v17  ;;  %v4682_v31 = vld [vmem:[#allocation2 + $0x62] sm:$0xff]  ;;  %v4683_v59 = vld [vmem:[#allocation2 + $0x6a] sm:$0xff]  ;;  %v1971_v46 = vsel %vm796_vm4, %v8436_v8, %v1639_v32 }
 0x382   : > { %v1925_v35 = vpop.permute.xlu0 %1924  ;;  %4986 = vrot.lane.b32.xlu1 %v4616_v44, %s9737_s26  ;;  %v4712_v12 = vpack.c.bf16 %v4683_v59, %v4682_v31 }
 0x383   : > { %v2180_v9 = vsel %vm2148_vm9, %v2137_v53, %v1925_v35 }
 0x384   : > { %5034 = vrot.lane.b32.xlu0 %v4664_v15, %s6964_s12  ;;  %2437 = vmatmul.mubr.bf16.gmra.mrb[72].mxu1 %v2180_v9  ;;  %v1735_v5 = vpop.permute.xlu1 %1734 }
 0x385   : > { %6332 = vmatprep.mubr.msk.bf16.mxu1 %vm796_vm4, %v8567_v42  ;;  %v4588_v49 = vld [vmem:[#allocation2 + $0x78] sm:$0xff] }
 0x386   : > { %v1687_v52 = vpop.permute.xlu0 %1686  ;;  %5082 = vrot.lane.b32.xlu1 %v4712_v12, %s6959_s19  ;;  %v4494_v10 = vld [vmem:[#allocation2 + $0x79] sm:$0xff] }
 0x387   : > { %v4589_v26 = vld [vmem:[#allocation2 + $0x80] sm:$0xff]  ;;  %v2007_v62 = vsel %vm523_vm3, %v1971_v46, %v1687_v52 }
 0x388   : > { %4844 = vrot.lane.b32.xlu0 %v4616_v44, %s6963_s16  ;;  %v1783_v6 = vpop.permute.xlu1 %1782  ;;  %v4617_v25 = vpack.c.bf16 %v4589_v26, %v4588_v49  ;;  %v4684_v42 = vld [vmem:[#allocation2 + $0x7a] sm:$0xff]  ;;  %v4685_v20 = vld [vmem:[#allocation2 + $0x82] sm:$0xff]  ;;  %v2040_v14 = vsel %vm2016_vm5, %v2007_v62, %v1735_v5 }
 0x389   : > { %v2073_v28 = vsel %vm2049_vm6, %v2040_v14, %v1783_v6  ;;  %v4713_v61 = vpack.c.bf16 %v4685_v20, %v4684_v42  ;;  %v4495_v37 = vld [vmem:[#allocation2 + $0x81] sm:$0xff] }
 0x38a   : > { %v1879_v45 = vpop.permute.xlu0 %1878  ;;  %4940 = vrot.lane.b32.xlu1 %v4712_v12, %s6962_s24  ;;  %v4522_v1 = vpack.c.bf16 %v4495_v37, %v4494_v10 }
 0x38c   : > { %4988 = vrot.lane.b32.xlu0 %v4617_v25, %s9737_s26  ;;  %v1831_v8 = vpop.permute.xlu1 %1830 }
 0x38d   : > { %v2106_v13 = vsel %vm2082_vm7, %v2073_v28, %v1831_v8  ;;  %v4143_v0 = vpop.f32.mrb[52].mxu0 }
 0x38e   : > { %v1641_v19 = vpop.permute.xlu0 %1640  ;;  %v4144_v7 = vadd.f32 %v8545_v23, %v4143_v0  ;;  %v4145_v21 = vpop.f32.mrb[53].mxu0  ;;  %4892 = vrot.lane.b32.xlu1 %v4664_v15, %s6956_s14  ;;  %v2139_v41 = vsel %vm2115_vm8, %v2106_v13, %v1879_v45 }
 0x38f   : > { %v4146_v27 = vpop.f32.mrb[54].mxu0  ;;  %v1974_v22 = vsel %vm796_vm4, %v8476_v34, %v1641_v19 }
 0x390   : > { %5084 = vrot.lane.b32.xlu0 %v4713_v61, %s6959_s19  ;;  %v4240_v29 = vmax.f32 %v4144_v7, 0.0  ;;  %v4147_v56 = vadd.f32 %v8545_v23, %v4146_v27  ;;  %v1927_v40 = vpop.permute.xlu1 %1926  ;;  %v4148_v30 = vpop.f32.mrb[55].mxu0 }
 0x391   : > { %v2183_v36 = vsel %vm2148_vm9, %v2139_v41, %v1927_v40 }
 0x392   : > { %v1737_v38 = vpop.permute.xlu0 %1736  ;;  %4272 = vst.msk [vmem:[#allocation2 + $0x91] sm:$0xff] %vm406_vm0, %v4240_v29  ;;  %v4241_v16 = vmax.f32 %v4147_v56, 0.0  ;;  %4750 = vrot.lane.b32.xlu1 %v4664_v15, %s9741_s25  ;;  %2445 = vmatmul.mubr.bf16.gmra.mrb[76].mxu1 %v2183_v36 }
 0x393   : > { %6333 = vmatprep.mubr.msk.bf16.mxu1 %vm796_vm4, %v8650_v18 }
 0x394   : > { %4942 = vrot.lane.b32.xlu0 %v4713_v61, %s6962_s24  ;;  %4273 = vst.msk [vmem:[#allocation2 + $0x99] sm:$0xff] %vm406_vm0, %v4241_v16  ;;  %v1689_v11 = vpop.permute.xlu1 %1688 }
 0x395   : > { %v2009_v48 = vsel %vm523_vm3, %v1974_v22, %v1689_v11  ;;  %v4151_v51 = vpop.f32.mrb[56].mxu0 }
 0x396   : > { %v1785_v24 = vpop.permute.xlu0 %1784  ;;  %v2042_v17 = vsel %vm2016_vm5, %v2009_v48, %v1737_v38  ;;  %v4152_v58 = vadd.f32 %v8545_v23, %v4151_v51  ;;  %v4153_v32 = vpop.f32.mrb[57].mxu0  ;;  %4798 = vrot.lane.b32.xlu1 %v4712_v12, %s6958_s13 }
 0x397   : > { %v2075_v18 = vsel %vm2049_vm6, %v2042_v17, %v1785_v24  ;;  %v4154_v34 = vpop.f32.mrb[58].mxu0 }
 0x398   : > { %4894 = vrot.lane.b32.xlu0 %v4522_v1, %s6956_s14  ;;  %v4242_v44 = vmax.f32 %v4152_v58, 0.0  ;;  %v4155_v15 = vadd.f32 %v8545_v23, %v4154_v34  ;;  %v1881_v35 = vpop.permute.xlu1 %1880  ;;  %v4156_v53 = vpop.f32.mrb[59].mxu0 }
 0x399   : > { %v4590_v62 = vld [vmem:[#allocation2 + $0x90] sm:$0xff] }
 0x39a   : > { %v1833_v31 = vpop.permute.xlu0 %1832  ;;  %4274 = vst.msk [vmem:[#allocation2 + $0xa9] sm:$0xff] %vm406_vm0, %v4242_v44  ;;  %v4243_v59 = vmax.f32 %v4155_v15, 0.0  ;;  %5036 = vrot.lane.b32.xlu1 %v4522_v1, %s6964_s12  ;;  %v4638_v42 = vld [vmem:[#allocation2 + $0x91] sm:$0xff] }
 0x39b   : > { %v2108_v9 = vsel %vm2082_vm7, %v2075_v18, %v1833_v31  ;;  %v4591_v46 = vld [vmem:[#allocation2 + $0x98] sm:$0xff] }
 0x39c   : > { %4752 = vrot.lane.b32.xlu0 %v4522_v1, %s9741_s25  ;;  %4275 = vst.msk [vmem:[#allocation2 + $0xb1] sm:$0xff] %vm406_vm0, %v4243_v59  ;;  %v1643_v5 = vpop.permute.xlu1 %1642  ;;  %v2141_v52 = vsel %vm2115_vm8, %v2108_v9, %v1881_v35  ;;  %v4639_v26 = vld [vmem:[#allocation2 + $0x99] sm:$0xff]  ;;  %v4618_v45 = vpack.c.bf16 %v4591_v46, %v4590_v62 }
 0x39d   : > { %v4666_v14 = vpack.c.bf16 %v4639_v26, %v4638_v42  ;;  %v4686_v28 = vld [vmem:[#allocation2 + $0x92] sm:$0xff]  ;;  %v4687_v8 = vld [vmem:[#allocation2 + $0x9a] sm:$0xff] }
 0x39e   : > { %v1929_v12 = vpop.permute.xlu0 %1928  ;;  %4846 = vrot.lane.b32.xlu1 %v4617_v25, %s6963_s16  ;;  %v1977_v25 = vsel %vm796_vm4, %v8512_v43, %v1643_v5  ;;  %v4714_v0 = vpack.c.bf16 %v4687_v8, %v4686_v28  ;;  %v1582_v62 = vld [vmem:[#allocation2 + $0x19a] sm:$0xff] }
 0x39f   : > { %v2186_v49 = vsel %vm2148_vm9, %v2141_v52, %v1929_v12 }
 0x3a0   : > { %4800 = vrot.lane.b32.xlu0 %v4713_v61, %s6958_s13  ;;  %2453 = vmatmul.mubr.bf16.gmra.mrb[80].mxu1 %v2186_v49  ;;  %v1739_v6 = vpop.permute.xlu1 %1738 }
 0x3a1   : > { %6334 = vmatprep.mubr.msk.bf16.mxu1 %vm796_vm4, %v8692_v47  ;;  %v4592_v29 = vld [vmem:[#allocation2 + $0xa8] sm:$0xff] }
 0x3a2   : > { %v1691_v20 = vpop.permute.xlu0 %1690  ;;  %4990 = vrot.lane.b32.xlu1 %v4618_v45, %s9737_s26  ;;  %v4498_v46 = vld [vmem:[#allocation2 + $0xa9] sm:$0xff] }
 0x3a3   : > { %v2011_v13 = vsel %vm523_vm3, %v1977_v25, %v1691_v20  ;;  %v4593_v47 = vld [vmem:[#allocation2 + $0xb0] sm:$0xff] }
 0x3a4   : > { %5038 = vrot.lane.b32.xlu0 %v4666_v14, %s6964_s12  ;;  %v1787_v19 = vpop.permute.xlu1 %1786  ;;  %v2044_v7 = vsel %vm2016_vm5, %v2011_v13, %v1739_v6  ;;  %v4619_v30 = vpack.c.bf16 %v4593_v47, %v4592_v29  ;;  %v4688_v36 = vld [vmem:[#allocation2 + $0xaa] sm:$0xff]  ;;  %v4689_v16 = vld [vmem:[#allocation2 + $0xb2] sm:$0xff]  ;;  %v1583_v6 = vld [vmem:[#allocation2 + $0x1a2] sm:$0xff] }
 0x3a5   : > { %v2077_v21 = vsel %vm2049_vm6, %v2044_v7, %v1787_v19  ;;  %v4715_v1 = vpack.c.bf16 %v4689_v16, %v4688_v36  ;;  %v4499_v59 = vld [vmem:[#allocation2 + $0xb1] sm:$0xff] }
 0x3a6   : > { %v1883_v61 = vpop.permute.xlu0 %1882  ;;  %5086 = vrot.lane.b32.xlu1 %v4714_v0, %s6959_s19  ;;  %v4524_v26 = vpack.c.bf16 %v4499_v59, %v4498_v46 }
 0x3a8   : > { %4848 = vrot.lane.b32.xlu0 %v4618_v45, %s6963_s16  ;;  %v1835_v27 = vpop.permute.xlu1 %1834 }
 0x3a9   : > { %v2110_v43 = vsel %vm2082_vm7, %v2077_v21, %v1835_v27  ;;  %v4159_v40 = vpop.f32.mrb[60].mxu0 }
 0x3aa   : > { %v1645_v56 = vpop.permute.xlu0 %1644  ;;  %v4160_v41 = vadd.f32 %v8545_v23, %v4159_v40  ;;  %v4161_v38 = vpop.f32.mrb[61].mxu0  ;;  %4944 = vrot.lane.b32.xlu1 %v4714_v0, %s6962_s24  ;;  %v2143_v24 = vsel %vm2115_vm8, %v2110_v43, %v1883_v61 }
 0x3ab   : > { %v4162_v37 = vpop.f32.mrb[62].mxu0  ;;  %v1980_v32 = vsel %vm796_vm4, %v8562_v60, %v1645_v56 }
 0x3ac   : > { %4992 = vrot.lane.b32.xlu0 %v4619_v30, %s9737_s26  ;;  %v4244_v22 = vmax.f32 %v4160_v41, 0.0  ;;  %v4163_v11 = vadd.f32 %v8545_v23, %v4162_v37  ;;  %v1931_v10 = vpop.permute.xlu1 %1930  ;;  %v4164_v48 = vpop.f32.mrb[63].mxu0 }
 0x3ad   : > { %v2189_v17 = vsel %vm2148_vm9, %v2143_v24, %v1931_v10 }
 0x3ae   : > { %v1741_v51 = vpop.permute.xlu0 %1740  ;;  %4276 = vst.msk [vmem:[#allocation2 + $0xc1] sm:$0xff] %vm406_vm0, %v4244_v22  ;;  %v4245_v58 = vmax.f32 %v4163_v11, 0.0  ;;  %4896 = vrot.lane.b32.xlu1 %v4666_v14, %s6956_s14  ;;  %2461 = vmatmul.mubr.bf16.gmra.mrb[84].mxu1 %v2189_v17  ;;  %v8957_v11 = vld [vmem:[%s9599_s6] ss:$0 sm:$0xff] }
 0x3af   : > { %6335 = vmatprep.mubr.msk.bf16.mxu1 %vm796_vm4, %v8741_v50 }
 0x3b0   : > { %5088 = vrot.lane.b32.xlu0 %v4715_v1, %s6959_s19  ;;  %4277 = vst.msk [vmem:[#allocation2 + $0xc9] sm:$0xff] %vm406_vm0, %v4245_v58  ;;  %v1693_v18 = vpop.permute.xlu1 %1692 }
 0x3b1   : > { %v2013_v34 = vsel %vm523_vm3, %v1980_v32, %v1693_v18  ;;  %v4167_v15 = vpop.f32.mrb[64].mxu0 }
 0x3b2   : > { %v1789_v44 = vpop.permute.xlu0 %1788  ;;  %v2046_v35 = vsel %vm2016_vm5, %v2013_v34, %v1741_v51  ;;  %v4168_v53 = vadd.f32 %v8545_v23, %v4167_v15  ;;  %v4169_v31 = vpop.f32.mrb[65].mxu0  ;;  %4754 = vrot.lane.b32.xlu1 %v4666_v14, %s9741_s25 }
 0x3b3   : > { %v2079_v50 = vsel %vm2049_vm6, %v2046_v35, %v1789_v44  ;;  %v4170_v60 = vpop.f32.mrb[66].mxu0  ;;  %v4295_v35 = vld [vmem:[#allocation2 + $0x8] sm:$0xff] }
 0x3b4   : > { %4946 = vrot.lane.b32.xlu0 %v4715_v1, %s6962_s24  ;;  %v4246_v9 = vmax.f32 %v4168_v53, 0.0  ;;  %v4171_v5 = vadd.f32 %v8545_v23, %v4170_v60  ;;  %v1885_v12 = vpop.permute.xlu1 %1884  ;;  %v4172_v52 = vpop.f32.mrb[67].mxu0  ;;  %v1599_v23 = vpack.c.bf16 %v1583_v6, %v1582_v62  ;;  %v4294_v53 = vld [vmem:[#allocation2] sm:$0xff] }
 0x3b5   : > { %v4594_v47 = vld [vmem:[#allocation2 + $0xc0] sm:$0xff] }
 0x3b6   : > { %v1837_v49 = vpop.permute.xlu0 %1836  ;;  %4278 = vst.msk [vmem:[#allocation2 + $0xd9] sm:$0xff] %vm406_vm0, %v4246_v9  ;;  %v4247_v45 = vmax.f32 %v4171_v5, 0.0  ;;  %4802 = vrot.lane.b32.xlu1 %v4714_v0, %s6958_s13  ;;  %v4642_v29 = vld [vmem:[#allocation2 + $0xc1] sm:$0xff] }
 0x3b7   : > { %v2112_v42 = vsel %vm2082_vm7, %v2079_v50, %v1837_v49  ;;  %v4595_v19 = vld [vmem:[#allocation2 + $0xc8] sm:$0xff]  ;;  %v4326_v49 = vpack.c.bf16 %v4295_v35, %v4294_v53 }
 0x3b8   : > { %4898 = vrot.lane.b32.xlu0 %v4524_v26, %s6956_s14  ;;  %4279 = vst.msk [vmem:[#allocation2 + $0xe1] sm:$0xff] %vm406_vm0, %v4247_v45  ;;  %v1647_v20 = vpop.permute.xlu1 %1646  ;;  %v2145_v28 = vsel %vm2115_vm8, %v2112_v42, %v1885_v12  ;;  %v4643_v0 = vld [vmem:[#allocation2 + $0xc9] sm:$0xff]  ;;  %v4620_v27 = vpack.c.bf16 %v4595_v19, %v4594_v47 }
 0x3b9   : > { %v1983_v61 = vsel %vm796_vm4, %v8631_v3, %v1647_v20  ;;  %v4668_v56 = vpack.c.bf16 %v4643_v0, %v4642_v29  ;;  %v4690_v40 = vld [vmem:[#allocation2 + $0xc2] sm:$0xff]  ;;  %v4691_v41 = vld [vmem:[#allocation2 + $0xca] sm:$0xff] }
 0x3ba   : > { %v1933_v14 = vpop.permute.xlu0 %1932  ;;  %5040 = vrot.lane.b32.xlu1 %v4524_v26, %s6964_s12  ;;  %v4716_v36 = vpack.c.bf16 %v4691_v41, %v4690_v40 }
 0x3bb   : > { %v2192_v8 = vsel %vm2148_vm9, %v2145_v28, %v1933_v14  ;;  %v5112_v28 = vsel %vm406_vm0, %v4326_v49, %v8775_v4 }
 0x3bc   : > { %4756 = vrot.lane.b32.xlu0 %v4524_v26, %s9741_s25  ;;  %2469 = vmatmul.mubr.bf16.gmra.mrb[88].mxu1 %v2192_v8  ;;  %v1743_v25 = vpop.permute.xlu1 %1742 }
 0x3bd   : > { %6336 = vmatprep.mubr.msk.bf16.mxu1 %vm796_vm4, %v1599_v23  ;;  %v4596_v59 = vld [vmem:[#allocation2 + $0xd8] sm:$0xff] }
 0x3be   : > { %v1695_v13 = vpop.permute.xlu0 %1694  ;;  %4850 = vrot.lane.b32.xlu1 %v4619_v30, %s6963_s16  ;;  %v4644_v8 = vld [vmem:[#allocation2 + $0xd9] sm:$0xff] }
 0x3bf   : > { %v2015_v7 = vsel %vm523_vm3, %v1983_v61, %v1695_v13  ;;  %v4597_v15 = vld [vmem:[#allocation2 + $0xe0] sm:$0xff] }
 0x3c0   : > { %4804 = vrot.lane.b32.xlu0 %v4715_v1, %s6958_s13  ;;  %v1791_v21 = vpop.permute.xlu1 %1790  ;;  %v2048_v30 = vsel %vm2016_vm5, %v2015_v7, %v1743_v25  ;;  %v4621_v9 = vpack.c.bf16 %v4597_v15, %v4596_v59  ;;  %v4692_v52 = vld [vmem:[#allocation2 + $0xda] sm:$0xff]  ;;  %v4693_v46 = vld [vmem:[#allocation2 + $0xe2] sm:$0xff]  ;;  %v5159_v25 = vsel %vm2016_vm5, %v5112_v28, %v8791_v54 }
 0x3c1   : > { %v2081_v3 = vsel %vm2049_vm6, %v2048_v30, %v1791_v21  ;;  %v4717_v20 = vpack.c.bf16 %v4693_v46, %v4692_v52  ;;  %v4645_v23 = vld [vmem:[#allocation2 + $0xe1] sm:$0xff] }
 0x3c2   : > { %v1887_v43 = vpop.permute.xlu0 %1886  ;;  %4994 = vrot.lane.b32.xlu1 %v4620_v27, %s9737_s26  ;;  %v4669_v19 = vpack.c.bf16 %v4645_v23, %v4644_v8 }
 0x3c4   : > { %5042 = vrot.lane.b32.xlu0 %v4668_v56, %s6964_s12  ;;  %v1839_v38 = vpop.permute.xlu1 %1838 }
 0x3c5   : > { %v2114_v16 = vsel %vm2082_vm7, %v2081_v3, %v1839_v38  ;;  %v4175_v22 = vpop.f32.mrb[68].mxu0 }
 0x3c6   : > { %v8952_v37 = vpop.permute.xlu0 %4934  ;;  %v4176_v10 = vadd.f32 %v8957_v11, %v4175_v22  ;;  %v4177_v48 = vpop.f32.mrb[69].mxu0  ;;  %5090 = vrot.lane.b32.xlu1 %v4716_v36, %s6959_s19  ;;  %v2147_v32 = vsel %vm2115_vm8, %v2114_v16, %v1887_v43 }
 0x3c7   : > { %v4178_v24 = vpop.f32.mrb[70].mxu0 }
 0x3c8   : > { %4852 = vrot.lane.b32.xlu0 %v4620_v27, %s6963_s16  ;;  %v4248_v51 = vmax.f32 %v4176_v10, 0.0  ;;  %v4179_v1 = vadd.f32 %v8957_v11, %v4178_v24  ;;  %v1935_v17 = vpop.permute.xlu1 %1934  ;;  %v4180_v58 = vpop.f32.mrb[71].mxu0 }
 0x3c9   : > { %v2195_v34 = vsel %vm2148_vm9, %v2147_v32, %v1935_v17 }
 0x3ca   : > { %v4887_v18 = vpop.permute.xlu0 %4886  ;;  %4280 = vst.msk [vmem:[#allocation2 + $0xf1] sm:$0xff] %vm406_vm0, %v4248_v51  ;;  %v4249_v44 = vmax.f32 %v4179_v1, 0.0  ;;  %4948 = vrot.lane.b32.xlu1 %v4716_v36, %s6962_s24  ;;  %2477 = vmatmul.mubr.bf16.gmra.mrb[92].mxu1 %v2195_v34 }
 0x3cb   : > { %6582 = vmatprep.mubr.msk.bf16.mxu1 %vm406_vm0, %v8453_v55 }
 0x3cc   : > { %4758 = vrot.lane.b32.xlu0 %v4668_v56, %s9741_s25  ;;  %4281 = vst.msk [vmem:[#allocation2 + $0xf9] sm:$0xff] %vm406_vm0, %v4249_v44  ;;  %v8971_v31 = vpop.permute.xlu1 %5012 }
 0x3cd   : > { %v4183_v60 = vpop.f32.mrb[72].mxu0 }
 0x3ce   : > { %v8973_v50 = vpop.permute.xlu0 %4744  ;;  %v4184_v5 = vadd.f32 %v8957_v11, %v4183_v60  ;;  %v4185_v12 = vpop.f32.mrb[73].mxu0  ;;  %4900 = vrot.lane.b32.xlu1 %v4668_v56, %s6956_s14 }
 0x3cf   : > { %v4186_v55 = vpop.f32.mrb[74].mxu0  ;;  %v5115_v44 = vsel %vm406_vm0, %v8793_v63, %v8973_v50 }
 0x3d0   : > { %4996 = vrot.lane.b32.xlu0 %v4621_v9, %s9737_s26  ;;  %v4250_v26 = vmax.f32 %v4184_v5, 0.0  ;;  %v4187_v62 = vadd.f32 %v8957_v11, %v4186_v55  ;;  %v4188_v6 = vpop.f32.mrb[75].mxu0  ;;  %v4839_v45 = vpop.permute.xlu1 %4838 }
 0x3d1   : > { %v5192_v0 = vsel %vm5190_vm11, %v5159_v25, %v4839_v45  ;;  %v4598_v29 = vld [vmem:[#allocation2 + $0xf0] sm:$0xff] }
 0x3d2   : > { %v8979_v42 = vpop.permute.xlu0 %4792  ;;  %4282 = vst.msk [vmem:[#allocation2 + $0x109] sm:$0xff] %vm406_vm0, %v4250_v26  ;;  %v4251_v14 = vmax.f32 %v4187_v62, 0.0  ;;  %4806 = vrot.lane.b32.xlu1 %v4716_v36, %s6958_s13  ;;  %6583 = vmatmul.mubr.msk.bf16.vlgmr.msra.gmra.mrb[0].mxu1 %vm406_vm0, %v8603_v39  ;;  %v4299_v62 = vld [vmem:[#allocation2 + $0x38] sm:$0xff] }
 0x3d3   : > { %6586 = vmatprep.mubr.msk.bf16.mxu1 %vm406_vm0, %v8646_v2  ;;  %v5224_v2 = vsel %vm2115_vm8, %v5192_v0, %v4887_v18  ;;  %v4599_v21 = vld [vmem:[#allocation2 + $0xf8] sm:$0xff]  ;;  %v5161_v53 = vsel %vm2016_vm5, %v5115_v44, %v8979_v42 }
 0x3d4   : > { %5092 = vrot.lane.b32.xlu0 %v4717_v20, %s6959_s19  ;;  %4283 = vst.msk [vmem:[#allocation2 + $0x111] sm:$0xff] %vm406_vm0, %v4251_v14  ;;  %v4983_v13 = vpop.permute.xlu1 %4982  ;;  %v5257_v27 = vsel %vm5255_vm14, %v5224_v2, %v8952_v37  ;;  %v4622_v56 = vpack.c.bf16 %v4599_v21, %v4598_v29  ;;  %v4647_v41 = vld [vmem:[#allocation2 + $0xf9] sm:$0xff]  ;;  %v4298_v14 = vld [vmem:[#allocation2 + $0x30] sm:$0xff] }
 0x3d5   : > { %v5305_v39 = vsel %vm796_vm4, %v8952_v37, %v4983_v13  ;;  %v4694_v16 = vld [vmem:[#allocation2 + $0xf2] sm:$0xff]  ;;  %v4695_v37 = vld [vmem:[#allocation2 + $0xfa] sm:$0xff]  ;;  %v4328_v25 = vpack.c.bf16 %v4299_v62, %v4298_v14 }
 0x3d6   : > { %v5031_v4 = vpop.permute.xlu0 %5030  ;;  %5044 = vrot.lane.b32.xlu1 %v4669_v19, %s6964_s12  ;;  %v4718_v17 = vpack.c.bf16 %v4695_v37, %v4694_v16 }
 0x3d7   : > { %v5338_v61 = vsel %vm5336_vm12, %v5305_v39, %v5031_v4 }
 0x3d8   : > { %4950 = vrot.lane.b32.xlu0 %v4717_v20, %s6962_s24  ;;  %v5079_v54 = vpop.permute.xlu1 %5078 }
 0x3d9   : > { %v5370_v47 = vsel %vm2049_vm6, %v5338_v61, %v5079_v54  ;;  %v4648_v8 = vld [vmem:[#allocation2 + $0x109] sm:$0xff] }
 0x3da   : > { %v4841_v7 = vpop.permute.xlu0 %4840  ;;  %4808 = vrot.lane.b32.xlu1 %v4717_v20, %s6958_s13  ;;  %6587 = vmatmul.mubr.msk.bf16.gmra.mrb[4].mxu1 %vm406_vm0, %v8789_v33  ;;  %v4646_v33 = vld [vmem:[#allocation2 + $0xf1] sm:$0xff] }
 0x3db   : > { %6396 = vmatprep.mubr.msk.bf16.mxu0 %vm5516_vm13, %v5370_v47  ;;  %6590 = vmatprep.mubr.msk.bf16.mxu1 %vm406_vm0, %v8809_v57  ;;  %v9012_v3 = vpack.c.bf16 %v4647_v41, %v4646_v33  ;;  %v4601_v34 = vld [vmem:[#allocation2 + $0x110] sm:$0xff]  ;;  %v5194_v5 = vsel %vm5190_vm11, %v5161_v53, %v4841_v7 }
 0x3dc   : > { %4854 = vrot.lane.b32.xlu0 %v4621_v9, %s6963_s16  ;;  %5585 = vmatmul.mubr.bf16.vlgmr.msra.gmra.mrb[96].mxu0 %v5257_v27  ;;  %v4937_v43 = vpop.permute.xlu1 %4936  ;;  %v4600_v9 = vld [vmem:[#allocation2 + $0x108] sm:$0xff]  ;;  %v4649_v42 = vld [vmem:[#allocation2 + $0x111] sm:$0xff] }
 0x3dd   : > { %v9034_v52 = vpack.c.bf16 %v4601_v34, %v4600_v9  ;;  %v4696_v39 = vld [vmem:[#allocation2 + $0x10a] sm:$0xff]  ;;  %v4697_v4 = vld [vmem:[#allocation2 + $0x112] sm:$0xff] }
 0x3de   : > { %v4985_v40 = vpop.permute.xlu0 %4984  ;;  %4998 = vrot.lane.b32.xlu1 %v4622_v56, %s9737_s26  ;;  %v4719_v7 = vpack.c.bf16 %v4697_v4, %v4696_v39 }
 0x3df   : > { %v5307_v63 = vsel %vm796_vm4, %v4937_v43, %v4985_v40 }
 0x3e0   : > { %4902 = vrot.lane.b32.xlu0 %v4669_v19, %s6956_s14  ;;  %v4889_v30 = vpop.permute.xlu1 %4888 }
 0x3e1   : > { %v4191_v36 = vpop.f32.mrb[76].mxu0  ;;  %v5226_v50 = vsel %vm2115_vm8, %v5194_v5, %v4889_v30 }
 0x3e2   : > { %v5081_v38 = vpop.permute.xlu0 %5080  ;;  %v4192_v22 = vadd.f32 %v8957_v11, %v4191_v36  ;;  %v4193_v57 = vpop.f32.mrb[77].mxu0  ;;  %5046 = vrot.lane.b32.xlu1 %v9012_v3, %s6964_s12  ;;  %v5260_v28 = vsel %vm5255_vm14, %v5226_v50, %v4937_v43 }
 0x3e3   : > { %v4194_v10 = vpop.f32.mrb[78].mxu0 }
 0x3e4   : > { %4760 = vrot.lane.b32.xlu0 %v4669_v19, %s9741_s25  ;;  %v4252_v48 = vmax.f32 %v4192_v22, 0.0  ;;  %v4195_v24 = vadd.f32 %v8957_v11, %v4194_v10  ;;  %v4196_v51 = vpop.f32.mrb[79].mxu0  ;;  %v4747_v1 = vpop.permute.xlu1 %4746  ;;  %v4671_v19 = vpack.c.bf16 %v4649_v42, %v4648_v8 }
 0x3e5   : > { %v5118_v2 = vsel %vm406_vm0, %v4328_v25, %v4747_v1 }
 0x3e6   : > { %v9019_v58 = vpop.permute.xlu0 %4938  ;;  %4284 = vst.msk [vmem:[#allocation2 + $0x121] sm:$0xff] %vm406_vm0, %v4252_v48  ;;  %v4253_v32 = vmax.f32 %v4195_v24, 0.0  ;;  %5094 = vrot.lane.b32.xlu1 %v4718_v17, %s6959_s19 }
 0x3e8   : > { %4952 = vrot.lane.b32.xlu0 %v4718_v17, %s6962_s24  ;;  %4285 = vst.msk [vmem:[#allocation2 + $0x129] sm:$0xff] %vm406_vm0, %v4253_v32  ;;  %v4795_v18 = vpop.permute.xlu1 %4794 }
 0x3e9   : > { %v4199_v35 = vpop.f32.mrb[80].mxu0  ;;  %v5163_v61 = vsel %vm2016_vm5, %v5118_v2, %v4795_v18 }
 0x3ea   : > { %v4891_v15 = vpop.permute.xlu0 %4890  ;;  %v4200_v59 = vadd.f32 %v8957_v11, %v4199_v35  ;;  %v4201_v60 = vpop.f32.mrb[81].mxu0  ;;  %4810 = vrot.lane.b32.xlu1 %v4718_v17, %s6958_s13 }
 0x3eb   : > { %v4202_v12 = vpop.f32.mrb[82].mxu0 }
 0x3ec   : > { %4856 = vrot.lane.b32.xlu0 %v4622_v56, %s6963_s16  ;;  %v4254_v46 = vmax.f32 %v4200_v59, 0.0  ;;  %v4203_v49 = vadd.f32 %v8957_v11, %v4202_v12  ;;  %v4204_v55 = vpop.f32.mrb[83].mxu0  ;;  %v5033_v26 = vpop.permute.xlu1 %5032 }
 0x3ed   : > { %v5340_v6 = vsel %vm5336_vm12, %v5307_v63, %v5033_v26  ;;  %v4602_v37 = vld [vmem:[#allocation2 + $0x120] sm:$0xff]  ;;  %v4300_v26 = vld [vmem:[#allocation2 + $0x48] sm:$0xff] }
 0x3ee   : > { %v9040_v45 = vpop.permute.xlu0 %4748  ;;  %4286 = vst.msk [vmem:[#allocation2 + $0x139] sm:$0xff] %vm406_vm0, %v4254_v46  ;;  %v4255_v20 = vmax.f32 %v4203_v49, 0.0  ;;  %5000 = vrot.lane.b32.xlu1 %v9034_v52, %s9737_s26  ;;  %v5372_v23 = vsel %vm2049_vm6, %v5340_v6, %v5081_v38  ;;  %v4301_v46 = vld [vmem:[#allocation2 + $0x50] sm:$0xff] }
 0x3ef   : > { %6397 = vmatprep.mubr.msk.bf16.mxu0 %vm5516_vm13, %v5372_v23  ;;  %v4603_v30 = vld [vmem:[#allocation2 + $0x128] sm:$0xff]  ;;  %v4329_v62 = vpack.c.bf16 %v4301_v46, %v4300_v26 }
 0x3f0   : > { %4904 = vrot.lane.b32.xlu0 %v9012_v3, %s6956_s14  ;;  %4287 = vst.msk [vmem:[#allocation2 + $0x141] sm:$0xff] %vm406_vm0, %v4255_v20  ;;  %v4843_v13 = vpop.permute.xlu1 %4842  ;;  %5593 = vmatmul.mubr.bf16.gmra.mrb[100].mxu0 %v5260_v28  ;;  %v9078_v24 = vpack.c.bf16 %v4603_v30, %v4602_v37  ;;  %v4651_v1 = vld [vmem:[#allocation2 + $0x129] sm:$0xff] }
 0x3f1   : > { %v5196_v54 = vsel %vm5190_vm11, %v5163_v61, %v4843_v13  ;;  %v4699_v35 = vld [vmem:[#allocation2 + $0x12a] sm:$0xff]  ;;  %v5121_v14 = vsel %vm406_vm0, %v4329_v62, %v9040_v45 }
 0x3f2   : > { %v9051_v0 = vpop.permute.xlu0 %4796  ;;  %5048 = vrot.lane.b32.xlu1 %v4671_v19, %s6964_s12  ;;  %v5228_v29 = vsel %vm2115_vm8, %v5196_v54, %v4891_v15  ;;  %v4698_v15 = vld [vmem:[#allocation2 + $0x122] sm:$0xff] }
 0x3f3   : > { %v5263_v36 = vsel %vm5255_vm14, %v5228_v29, %v9019_v58  ;;  %v4720_v50 = vpack.c.bf16 %v4699_v35, %v4698_v15  ;;  %v5165_v25 = vsel %vm2016_vm5, %v5121_v14, %v9051_v0 }
 0x3f4   : > { %4762 = vrot.lane.b32.xlu0 %v9012_v3, %s9741_s25  ;;  %v4987_v47 = vpop.permute.xlu1 %4986 }
 0x3f5   : > { %v5309_v21 = vsel %vm796_vm4, %v9019_v58, %v4987_v47  ;;  %v4650_v58 = vld [vmem:[#allocation2 + $0x121] sm:$0xff]  ;;  %v4604_v39 = vld [vmem:[#allocation2 + $0x138] sm:$0xff] }
 0x3f6   : > { %v5035_v27 = vpop.permute.xlu0 %5034  ;;  %5096 = vrot.lane.b32.xlu1 %v4719_v7, %s6959_s19  ;;  %v9085_v18 = vpack.c.bf16 %v4651_v1, %v4650_v58 }
 0x3f7   : > { %v5342_v43 = vsel %vm5336_vm12, %v5309_v21, %v5035_v27  ;;  %v4605_v23 = vld [vmem:[#allocation2 + $0x140] sm:$0xff] }
 0x3f8   : > { %4954 = vrot.lane.b32.xlu0 %v4719_v7, %s6962_s24  ;;  %v5083_v56 = vpop.permute.xlu1 %5082  ;;  %v9113_v47 = vpack.c.bf16 %v4605_v23, %v4604_v39  ;;  %v9121_v21 = vld [vmem:[%s9597_s4] ss:$0 sm:$0xff] }
 0x3f9   : > { %v5374_v40 = vsel %vm2049_vm6, %v5342_v43, %v5083_v56  ;;  %v4207_v33 = vpop.f32.mrb[84].mxu0  ;;  %v4653_v56 = vld [vmem:[#allocation2 + $0x141] sm:$0xff] }
 0x3fa   : > { %v9066_v41 = vpop.permute.xlu0 %4844  ;;  %v4208_v3 = vadd.f32 %v8957_v11, %v4207_v33  ;;  %v4209_v38 = vpop.f32.mrb[85].mxu0  ;;  %4812 = vrot.lane.b32.xlu1 %v4719_v7, %s6958_s13  ;;  %6398 = vmatprep.mubr.msk.bf16.mxu0 %vm5516_vm13, %v5374_v40  ;;  %v4700_v58 = vld [vmem:[#allocation2 + $0x13a] sm:$0xff] }
 0x3fb   : > { %v4210_v16 = vpop.f32.mrb[86].mxu0  ;;  %5601 = vmatmul.mubr.bf16.gmra.mrb[104].mxu0 %v5263_v36  ;;  %v5198_v4 = vsel %vm5190_vm11, %v5165_v25, %v9066_v41  ;;  %v4652_v36 = vld [vmem:[#allocation2 + $0x139] sm:$0xff] }
 0x3fc   : > { %4858 = vrot.lane.b32.xlu0 %v9034_v52, %s6963_s16  ;;  %v4256_v22 = vmax.f32 %v4208_v3, 0.0  ;;  %v4211_v57 = vadd.f32 %v8957_v11, %v4210_v16  ;;  %v4212_v10 = vpop.f32.mrb[87].mxu0  ;;  %v9076_v48 = vpop.permute.xlu1 %4940  ;;  %v4302_v16 = vld [vmem:[#allocation2 + $0x60] sm:$0xff] }
 0x3fe   : > { %v4989_v51 = vpop.permute.xlu0 %4988  ;;  %4288 = vst.msk [vmem:[#allocation2 + $0x151] sm:$0xff] %vm406_vm0, %v4256_v22  ;;  %v4257_v17 = vmax.f32 %v4211_v57, 0.0  ;;  %5002 = vrot.lane.b32.xlu1 %v9078_v24, %s9737_s26  ;;  %v4673_v22 = vpack.c.bf16 %v4653_v56, %v4652_v36  ;;  %v4304_v56 = vld [vmem:[#allocation2 + $0x78] sm:$0xff] }
 0x3ff   : > { %v5311_v7 = vsel %vm796_vm4, %v9076_v48, %v4989_v51 }
 0x400   : > { %4906 = vrot.lane.b32.xlu0 %v4671_v19, %s6956_s14  ;;  %4289 = vst.msk [vmem:[#allocation2 + $0x159] sm:$0xff] %vm406_vm0, %v4257_v17  ;;  %v4893_v32 = vpop.permute.xlu1 %4892 }
 0x401   : > { %v4215_v44 = vpop.f32.mrb[88].mxu0  ;;  %v5230_v0 = vsel %vm2115_vm8, %v5198_v4, %v4893_v32  ;;  %v4701_v32 = vld [vmem:[#allocation2 + $0x142] sm:$0xff] }
 0x402   : > { %v5085_v34 = vpop.permute.xlu0 %5084  ;;  %v4216_v53 = vadd.f32 %v8957_v11, %v4215_v44  ;;  %v4217_v59 = vpop.f32.mrb[89].mxu0  ;;  %5050 = vrot.lane.b32.xlu1 %v9085_v18, %s6964_s12  ;;  %v5266_v37 = vsel %vm5255_vm14, %v5230_v0, %v9076_v48  ;;  %v4721_v15 = vpack.c.bf16 %v4701_v32, %v4700_v58  ;;  %v4305_v0 = vld [vmem:[#allocation2 + $0x80] sm:$0xff] }
 0x403   : > { %v4218_v60 = vpop.f32.mrb[90].mxu0 }
 0x404   : > { %4764 = vrot.lane.b32.xlu0 %v4671_v19, %s9741_s25  ;;  %v4258_v9 = vmax.f32 %v4216_v53, 0.0  ;;  %v4219_v5 = vadd.f32 %v8957_v11, %v4218_v60  ;;  %v4220_v12 = vpop.f32.mrb[91].mxu0  ;;  %v9092_v63 = vpop.permute.xlu1 %4750 }
 0x405   : > { %v4654_v39 = vld [vmem:[#allocation2 + $0x151] sm:$0xff] }
 0x406   : > { %v9094_v49 = vpop.permute.xlu0 %4942  ;;  %4290 = vst.msk [vmem:[#allocation2 + $0x169] sm:$0xff] %vm406_vm0, %v4258_v9  ;;  %v4259_v55 = vmax.f32 %v4219_v5, 0.0  ;;  %5098 = vrot.lane.b32.xlu1 %v4720_v50, %s6959_s19 }
 0x408   : > { %4956 = vrot.lane.b32.xlu0 %v4720_v50, %s6962_s24  ;;  %4291 = vst.msk [vmem:[#allocation2 + $0x171] sm:$0xff] %vm406_vm0, %v4259_v55  ;;  %v4799_v6 = vpop.permute.xlu1 %4798 }
 0x409   : > { %v4223_v20 = vpop.f32.mrb[92].mxu0 }
 0x40a   : > { %v9100_v42 = vpop.permute.xlu0 %4894  ;;  %v4224_v28 = vadd.f32 %v8957_v11, %v4223_v20  ;;  %v4225_v8 = vpop.f32.mrb[93].mxu0  ;;  %4814 = vrot.lane.b32.xlu1 %v4720_v50, %s6958_s13 }
 0x40b   : > { %v4226_v19 = vpop.f32.mrb[94].mxu0  ;;  %v4655_v8 = vld [vmem:[#allocation2 + $0x159] sm:$0xff] }
 0x40c   : > { %4860 = vrot.lane.b32.xlu0 %v9078_v24, %s6963_s16  ;;  %v2398_v13 = vpop.f32.mrb[52].mxu1  ;;  %v4260_v2 = vmax.f32 %v4224_v28, 0.0  ;;  %v4227_v45 = vadd.f32 %v8957_v11, %v4226_v19  ;;  %v4228_v54 = vpop.f32.mrb[95].mxu0  ;;  %v4303_v11 = vld [vmem:[#allocation2 + $0x68] sm:$0xff] }
 0x40d   : > { %v2400_v61 = vpop.f32.mrb[53].mxu1  ;;  %v2399_v27 = vadd.f32 %v9121_v21, %v2398_v13  ;;  %v5037_v29 = vpop.permute.xlu1 %5036  ;;  %v4330_v57 = vpack.c.bf16 %v4303_v11, %v4302_v16  ;;  %v4703_v54 = vld [vmem:[#allocation2 + $0x15a] sm:$0xff] }
 0x40e   : > { %v9124_v43 = vpop.permute.xlu0 %4752  ;;  %4292 = vst.msk [vmem:[#allocation2 + $0x181] sm:$0xff] %vm406_vm0, %v4260_v2  ;;  %v4261_v40 = vmax.f32 %v4227_v45, 0.0  ;;  %v5344_v41 = vsel %vm5336_vm12, %v5311_v7, %v5037_v29  ;;  %v2401_v33 = vpop.f32.mrb[54].mxu1  ;;  %5004 = vrot.lane.b32.xlu1 %v9113_v47, %s9737_s26  ;;  %v4702_v45 = vld [vmem:[#allocation2 + $0x152] sm:$0xff] }
 0x40f   : > { %v2402_v30 = vadd.f32 %v9121_v21, %v2401_v33  ;;  %v2403_v3 = vpop.f32.mrb[55].mxu1  ;;  %v5376_v38 = vsel %vm2049_vm6, %v5344_v41, %v5085_v34  ;;  %v2495_v10 = vmax.f32 %v2399_v27, 0.0  ;;  %v5124_v34 = vsel %vm406_vm0, %v4330_v57, %v9092_v63  ;;  %v4607_v63 = vld [vmem:[#allocation2 + $0x158] sm:$0xff] }
 0x410   : > { %4908 = vrot.lane.b32.xlu0 %v9085_v18, %s6956_s14  ;;  %4293 = vst.msk [vmem:[#allocation2 + $0x189] sm:$0xff] %vm406_vm0, %v4261_v40  ;;  %6399 = vmatprep.mubr.msk.bf16.mxu0 %vm5516_vm13, %v5376_v38  ;;  %v5167_v48 = vsel %vm2016_vm5, %v5124_v34, %v4799_v6  ;;  %v4606_v6 = vld [vmem:[#allocation2 + $0x150] sm:$0xff]  ;;  %v4722_v7 = vpack.c.bf16 %v4703_v54, %v4702_v45 }
 0x411   : > { %v2496_v51 = vmax.f32 %v2402_v30, 0.0  ;;  %v4847_v1 = vpop.permute.xlu1 %4846  ;;  %5609 = vmatmul.mubr.bf16.gmra.mrb[108].mxu0 %v5266_v37  ;;  %v9163_v20 = vpack.c.bf16 %v4607_v63, %v4606_v6  ;;  %v4331_v40 = vpack.c.bf16 %v4305_v0, %v4304_v56  ;;  %v4609_v38 = vld [vmem:[#allocation2 + $0x170] sm:$0xff] }
 0x412   : > { %v9138_v17 = vpop.permute.xlu0 %4800  ;;  %5052 = vrot.lane.b32.xlu1 %v4673_v22, %s6964_s12  ;;  %v5200_v35 = vsel %vm5190_vm11, %v5167_v48, %v4847_v1 }
 0x413   : > { %v2522_v44 = vpack.c.bf16 %v2496_v51, %v2495_v10  ;;  %v5232_v9 = vsel %vm2115_vm8, %v5200_v35, %v9100_v42  ;;  %v5127_v36 = vsel %vm406_vm0, %v4331_v40, %v9124_v43  ;;  %v4608_v10 = vld [vmem:[#allocation2 + $0x168] sm:$0xff] }
 0x414   : > { %4766 = vrot.lane.b32.xlu0 %v9085_v18, %s9741_s25  ;;  %v5269_v62 = vsel %vm5255_vm14, %v5232_v9, %v9094_v49  ;;  %v5169_v37 = vsel %vm2016_vm5, %v5127_v36, %v9138_v17  ;;  %v9186_v1 = vpack.c.bf16 %v4609_v38, %v4608_v10  ;;  %v4657_v17 = vld [vmem:[#allocation2 + $0x171] sm:$0xff]  ;;  %v4308_v10 = vld [vmem:[#allocation2 + $0xa8] sm:$0xff] }
 0x415   : > { %6591 = vmatmul.mubr.msk.bf16.gmra.mrb[8].mxu1 %vm406_vm0, %v2522_v44  ;;  %v4991_v53 = vpop.permute.xlu1 %4990  ;;  %v4306_v9 = vld [vmem:[#allocation2 + $0x90] sm:$0xff]  ;;  %v4610_v54 = vld [vmem:[#allocation2 + $0x180] sm:$0xff] }
 0x416   : > { %v5039_v59 = vpop.permute.xlu0 %5038  ;;  %v5313_v60 = vsel %vm796_vm4, %v9094_v49, %v4991_v53  ;;  %5100 = vrot.lane.b32.xlu1 %v4721_v15, %s6959_s19  ;;  %v4674_v49 = vpack.c.bf16 %v4655_v8, %v4654_v39 }
 0x417   : > { %v5346_v18 = vsel %vm5336_vm12, %v5313_v60, %v5039_v59  ;;  %v4656_v60 = vld [vmem:[#allocation2 + $0x169] sm:$0xff] }
 0x418   : > { %4958 = vrot.lane.b32.xlu0 %v4721_v15, %s6962_s24  ;;  %v4611_v39 = vld [vmem:[#allocation2 + $0x188] sm:$0xff] }
 0x419   : > { %v5087_v5 = vpop.permute.xlu1 %5086  ;;  %v4628_v0 = vpack.c.bf16 %v4611_v39, %v4610_v54  ;;  %v4659_v40 = vld [vmem:[#allocation2 + $0x189] sm:$0xff] }
 0x41a   : > { %v4849_v12 = vpop.permute.xlu0 %4848  ;;  %v5378_v50 = vsel %vm2049_vm6, %v5346_v18, %v5087_v5  ;;  %4816 = vrot.lane.b32.xlu1 %v4721_v15, %s6958_s13  ;;  %v4307_v15 = vld [vmem:[#allocation2 + $0x98] sm:$0xff]  ;;  %v4675_v5 = vpack.c.bf16 %v4657_v17, %v4656_v60  ;;  %v4709_v60 = vld [vmem:[#allocation2 + $0x1a2] sm:$0xff] }
 0x41b   : > { %v2406_v46 = vpop.f32.mrb[56].mxu1  ;;  %6400 = vmatprep.mubr.msk.bf16.mxu0 %vm5516_vm13, %v5378_v50  ;;  %v5202_v51 = vsel %vm5190_vm11, %v5169_v37, %v4849_v12  ;;  %v4332_v12 = vpack.c.bf16 %v4307_v15, %v4306_v9  ;;  %v4311_v39 = vld [vmem:[#allocation2 + $0xc8] sm:$0xff] }
 0x41c   : > { %v2407_v55 = vadd.f32 %v9121_v21, %v2406_v46  ;;  %4862 = vrot.lane.b32.xlu0 %v9113_v47, %s6963_s16  ;;  %v2408_v26 = vpop.f32.mrb[57].mxu1  ;;  %5617 = vmatmul.mubr.bf16.gmra.mrb[112].mxu0 %v5269_v62  ;;  %v4704_v46 = vld [vmem:[#allocation2 + $0x16a] sm:$0xff] }
 0x41d   : > { %v2409_v42 = vpop.f32.mrb[58].mxu1  ;;  %v4945_v14 = vpop.permute.xlu1 %4944 }
 0x41e   : > { %v2410_v23 = vadd.f32 %v9121_v21, %v2409_v42  ;;  %v4993_v28 = vpop.permute.xlu0 %4992  ;;  %v2411_v25 = vpop.f32.mrb[59].mxu1  ;;  %5006 = vrot.lane.b32.xlu1 %v9163_v20, %s9737_s26  ;;  %v2497_v13 = vmax.f32 %v2407_v55, 0.0  ;;  %v4705_v55 = vld [vmem:[#allocation2 + $0x172] sm:$0xff] }
 0x41f   : > { %v5315_v58 = vsel %vm796_vm4, %v4945_v14, %v4993_v28  ;;  %v4723_v6 = vpack.c.bf16 %v4705_v55, %v4704_v46  ;;  %v6848_v55 = vld [vmem:[%s9602_s9 + $0x1c] sm:$0xff]  }
 0x420   : > { %v2498_v19 = vmax.f32 %v2410_v23, 0.0  ;;  %4910 = vrot.lane.b32.xlu0 %v4673_v22, %s6956_s14 }
 0x421   : > { %v4897_v2 = vpop.permute.xlu1 %4896 }
 0x422   : > { %v2523_v4 = vpack.c.bf16 %v2498_v19, %v2497_v13  ;;  %v5089_v61 = vpop.permute.xlu0 %5088  ;;  %5054 = vrot.lane.b32.xlu1 %v4674_v49, %s6964_s12  ;;  %v5234_v43 = vsel %vm2115_vm8, %v5202_v51, %v4897_v2  ;;  %v4660_v51 = vld [vmem:[#allocation2 + $0x199] sm:$0xff] }
 0x423   : > { %v5272_v18 = vsel %vm5255_vm14, %v5234_v43, %v4945_v14 }
 0x424   : > { %4768 = vrot.lane.b32.xlu0 %v4673_v22, %s9741_s25  ;;  %6594 = vmatprep.mubr.msk.bf16.mxu1 %vm406_vm0, %v2523_v4 }
 0x425   : > { %v4755_v27 = vpop.permute.xlu1 %4754 }
 0x426   : > { %v9172_v29 = vpop.permute.xlu0 %4946  ;;  %5102 = vrot.lane.b32.xlu1 %v4722_v7, %s6959_s19  ;;  %v5130_v26 = vsel %vm406_vm0, %v4332_v12, %v4755_v27 }
 0x428   : > { %4960 = vrot.lane.b32.xlu0 %v4722_v7, %s6962_s24  ;;  %v2414_v11 = vpop.f32.mrb[60].mxu1 }
 0x429   : > { %v2416_v41 = vpop.f32.mrb[61].mxu1  ;;  %v2415_v33 = vadd.f32 %v9121_v21, %v2414_v11  ;;  %v4803_v30 = vpop.permute.xlu1 %4802 }
 0x42a   : > { %v4899_v3 = vpop.permute.xlu0 %4898  ;;  %v2417_v16 = vpop.f32.mrb[62].mxu1  ;;  %4818 = vrot.lane.b32.xlu1 %v4722_v7, %s6958_s13  ;;  %v5171_v62 = vsel %vm2016_vm5, %v5130_v26, %v4803_v30 }
 0x42b   : > { %v2418_v22 = vadd.f32 %v9121_v21, %v2417_v16  ;;  %v2419_v57 = vpop.f32.mrb[63].mxu1  ;;  %v2499_v32 = vmax.f32 %v2415_v33, 0.0 }
 0x42c   : > { %4864 = vrot.lane.b32.xlu0 %v9163_v20, %s6963_s16  ;;  %v4707_v57 = vld [vmem:[#allocation2 + $0x18a] sm:$0xff] }
 0x42d   : > { %v2500_v34 = vmax.f32 %v2418_v22, 0.0  ;;  %v5041_v44 = vpop.permute.xlu1 %5040  ;;  %v4706_v22 = vld [vmem:[#allocation2 + $0x182] sm:$0xff] }
 0x42e   : > { %v9190_v48 = vpop.permute.xlu0 %4756  ;;  %v5348_v35 = vsel %vm5336_vm12, %v5315_v58, %v5041_v44  ;;  %5008 = vrot.lane.b32.xlu1 %v9186_v1, %s9737_s26  ;;  %v4661_v58 = vld [vmem:[#allocation2 + $0x1a1] sm:$0xff] }
 0x42f   : > { %v2524_v53 = vpack.c.bf16 %v2500_v34, %v2499_v32  ;;  %v5380_v59 = vsel %vm2049_vm6, %v5348_v35, %v5089_v61  ;;  %v4724_v32 = vpack.c.bf16 %v4707_v57, %v4706_v22  ;;  %v4677_v15 = vpack.c.bf16 %v4661_v58, %v4660_v51  ;;  %v6847_v35 = vld [vmem:[%s9602_s9 + $0x14] sm:$0xff]  }
 0x430   : > { %4912 = vrot.lane.b32.xlu0 %v4674_v49, %s6956_s14  ;;  %6401 = vmatprep.mubr.msk.bf16.mxu0 %vm5516_vm13, %v5380_v59  ;;  %v4708_v59 = vld [vmem:[#allocation2 + $0x19a] sm:$0xff] }
 0x431   : > { %6595 = vmatmul.mubr.msk.bf16.gmra.mrb[12].mxu1 %vm406_vm0, %v2524_v53  ;;  %v4851_v63 = vpop.permute.xlu1 %4850  ;;  %5625 = vmatmul.mubr.bf16.gmra.mrb[116].mxu0 %v5272_v18 }
 0x432   : > { %v9200_v50 = vpop.permute.xlu0 %4804  ;;  %5056 = vrot.lane.b32.xlu1 %v4675_v5, %s6964_s12  ;;  %v5204_v42 = vsel %vm5190_vm11, %v5171_v62, %v4851_v63  ;;  %6614 = vmatprep.subr.bf16.mxu1 %v6847_v35 }
 0x433   : > { %v5236_v8 = vsel %vm2115_vm8, %v5204_v42, %v4899_v3  ;;  %v4658_v3 = vld [vmem:[#allocation2 + $0x181] sm:$0xff]  ;;  %6615 = vmatpush3.bf16.msra.mxu1 %v6847_v35 }
 0x434   : > { %4770 = vrot.lane.b32.xlu0 %v4674_v49, %s9741_s25  ;;  %v5275_v45 = vsel %vm5255_vm14, %v5236_v8, %v9172_v29  ;;  %v4676_v38 = vpack.c.bf16 %v4659_v40, %v4658_v3  ;;  %6616 = vmatprep.subr.bf16.mxu1 %v6848_v55 }
 0x435   : > { %v4995_v23 = vpop.permute.xlu1 %4994 }
 0x436   : > { %v5043_v14 = vpop.permute.xlu0 %5042  ;;  %v5317_v28 = vsel %vm796_vm4, %v9172_v29, %v4995_v23  ;;  %5104 = vrot.lane.b32.xlu1 %v4723_v6, %s6959_s19  ;;  %v4309_v29 = vld [vmem:[#allocation2 + $0xb0] sm:$0xff] }
 0x437   : > { %v5350_v25 = vsel %vm5336_vm12, %v5317_v28, %v5043_v14  ;;  %v4333_v43 = vpack.c.bf16 %v4309_v29, %v4308_v10  ;;  %6617 = vmatpush3.bf16.msra.mxu1 %v6848_v55 }
 0x438   : > { %4962 = vrot.lane.b32.xlu0 %v4723_v6, %s6962_s24 }
 0x439   : > { %v5091_v13 = vpop.permute.xlu1 %5090  ;;  %v5133_v17 = vsel %vm406_vm0, %v4333_v43, %v9190_v48 }
 0x43a   : > { %v4853_v19 = vpop.permute.xlu0 %4852  ;;  %v5382_v49 = vsel %vm2049_vm6, %v5350_v25, %v5091_v13  ;;  %4820 = vrot.lane.b32.xlu1 %v4723_v6, %s6958_s13  ;;  %v5173_v53 = vsel %vm2016_vm5, %v5133_v17, %v9200_v50  ;;  %v4725_v50 = vpack.c.bf16 %v4709_v60, %v4708_v59  ;;  %s6436_s13 = sshll.u32 %s7049_s21, 12  ;;  %s6179_s21 = scalar_lea.sflag [#allocation5], %s7132_s22 }
 0x43b   : > { %v2422_v4 = vpop.f32.mrb[64].mxu1  ;;  %6402 = vmatprep.mubr.msk.bf16.mxu0 %vm5516_vm13, %v5382_v49  ;;  %v5206_v9 = vsel %vm5190_vm11, %v5173_v53, %v4853_v19 }
 0x43c   : > { %v2423_v2 = vadd.f32 %v9121_v21, %v2422_v4  ;;  %4866 = vrot.lane.b32.xlu0 %v9186_v1, %s6963_s16  ;;  %v2424_v61 = vpop.f32.mrb[65].mxu1  ;;  %5633 = vmatmul.mubr.bf16.gmra.mrb[120].mxu0 %v5275_v45 }
 0x43d   : > { %v2425_v7 = vpop.f32.mrb[66].mxu1  ;;  %v4949_v56 = vpop.permute.xlu1 %4948  ;;  %v4310_v61 = vld [vmem:[#allocation2 + $0xc0] sm:$0xff] }
 0x43e   : > { %v2426_v27 = vadd.f32 %v9121_v21, %v2425_v7  ;;  %v9222_v11 = vpop.permute.xlu0 %4758  ;;  %v2427_v41 = vpop.f32.mrb[67].mxu1  ;;  %5010 = vrot.lane.b32.xlu1 %v4628_v0, %s9737_s26  ;;  %v2501_v33 = vmax.f32 %v2423_v2, 0.0  ;;  %v4334_v45 = vpack.c.bf16 %v4311_v39, %v4310_v61  ;;  %v4315_v39 = vld [vmem:[#allocation2 + $0xf8] sm:$0xff]  ;;  %s6192_s26 = sshll.u32 %s9420_s28, 4  ;;  %s9543_s26 = int_to_ptr.vmem [resolvable:$true] %s6192_s26 }
 0x440   : > { %v2502_v30 = vmax.f32 %v2426_v27, 0.0  ;;  %4914 = vrot.lane.b32.xlu0 %v4675_v5, %s6956_s14  ;;  %v5136_v54 = vsel %vm406_vm0, %v4334_v45, %v9222_v11 }
 0x441   : > { %v4901_v16 = vpop.permute.xlu1 %4900 }
 0x442   : > { %v2525_v36 = vpack.c.bf16 %v2502_v30, %v2501_v33  ;;  %v4997_v37 = vpop.permute.xlu0 %4996  ;;  %5058 = vrot.lane.b32.xlu1 %v4676_v38, %s6964_s12  ;;  %v5238_v18 = vsel %vm2115_vm8, %v5206_v9, %v4901_v16 }
 0x443   : > { %v5319_v48 = vsel %vm796_vm4, %v4949_v56, %v4997_v37  ;;  %v5278_v23 = vsel %vm5255_vm14, %v5238_v18, %v4949_v56 }
 0x444   : > { %4772 = vrot.lane.b32.xlu0 %v4675_v5, %s9741_s25  ;;  %6598 = vmatprep.mubr.msk.bf16.mxu1 %vm406_vm0, %v2525_v36 }
 0x445   : > { %v4807_v34 = vpop.permute.xlu1 %4806 }
 0x446   : > { %v5093_v44 = vpop.permute.xlu0 %5092  ;;  %5106 = vrot.lane.b32.xlu1 %v4724_v32, %s6959_s19  ;;  %v5175_v27 = vsel %vm2016_vm5, %v5136_v54, %v4807_v34  ;;  %v4313_v34 = vld [vmem:[#allocation2 + $0xe0] sm:$0xff] }
 0x448   : > { %4964 = vrot.lane.b32.xlu0 %v4724_v32, %s6962_s24 }
 0x449   : > { %v5045_v5 = vpop.permute.xlu1 %5044  ;;  %v2430_v46 = vpop.f32.mrb[68].mxu1 }
 0x44a   : > { %v4951_v12 = vpop.permute.xlu0 %4950  ;;  %v5352_v63 = vsel %vm5336_vm12, %v5319_v48, %v5045_v5  ;;  %5060 = vrot.lane.b32.xlu1 %v4677_v15, %s6964_s12  ;;  %v2431_v26 = vadd.f32 %v9121_v21, %v2430_v46  ;;  %v2432_v62 = vpop.f32.mrb[69].mxu1 }
 0x44b   : > { %v5384_v6 = vsel %vm2049_vm6, %v5352_v63, %v5093_v44  ;;  %v2433_v42 = vpop.f32.mrb[70].mxu1  ;;  %v4312_v44 = vld [vmem:[#allocation2 + $0xd8] sm:$0xff] }
 0x44c   : > { %4868 = vrot.lane.b32.xlu0 %v4628_v0, %s6963_s16  ;;  %6403 = vmatprep.mubr.msk.bf16.mxu0 %vm5516_vm13, %v5384_v6  ;;  %v2434_v14 = vadd.f32 %v9121_v21, %v2433_v42  ;;  %v2435_v25 = vpop.f32.mrb[71].mxu1  ;;  %v2503_v13 = vmax.f32 %v2431_v26, 0.0  ;;  %v4335_v17 = vpack.c.bf16 %v4313_v34, %v4312_v44 }
 0x44d   : > { %v4809_v28 = vpop.permute.xlu1 %4808  ;;  %5641 = vmatmul.mubr.bf16.gmra.mrb[124].mxu0 %v5278_v23 }
 0x44e   : > { %v4855_v8 = vpop.permute.xlu0 %4854  ;;  %5108 = vrot.lane.b32.xlu1 %v4725_v50, %s6959_s19  ;;  %v2504_v19 = vmax.f32 %v2434_v14, 0.0  ;;  %s6965_s19 = smov [#allocation6]  }
 0x44f   : > { %v5208_v40 = vsel %vm5190_vm11, %v5175_v27, %v4855_v8  ;;  %s6885_s16 = sshll.u32 %s6965_s19, 4  ;;  %s6886_s16 = int_to_ptr.vmem [resolvable:$false] %s6885_s16 }
 0x450   : > { %4916 = vrot.lane.b32.xlu0 %v4676_v38, %s6956_s14  ;;  %v2526_v49 = vpack.c.bf16 %v2504_v19, %v2503_v13  ;;  %s9541_s14 = scalar_lea.hbm %s9604_s11, %s6436_s13  ;;  %s6887_s12 = scalar_lea.vmem %s6886_s16, 8192 }
 0x451   : > { %v4999_v4 = vpop.permute.xlu1 %4998  ;;  %p6888_p8 = scmp.lt.s32.totalorder %s9543_s26, %s6886_s16 }
 0x452   : > { %v4903_v2 = vpop.permute.xlu0 %4902  ;;  %6599 = vmatmul.mubr.msk.bf16.gmra.mrb[16].mxu1 %vm406_vm0, %v2526_v49  ;;  %v5321_v30 = vsel %vm796_vm4, %v4951_v12, %v4999_v4  ;;  %v4314_v49 = vld [vmem:[#allocation2 + $0xf0] sm:$0xff] }
 0x453   : > { %v5240_v3 = vsel %vm2115_vm8, %v5208_v40, %v4903_v2  ;;  %v4336_v4 = vpack.c.bf16 %v4315_v39, %v4314_v49 }
 0x454   : > { %v5281_v51 = vsel %vm5255_vm14, %v5240_v3, %v4951_v12 }
 0x455   : > { %v5047_v7 = vpop.permute.xlu1 %5046 }
 0x456   : > { %v4761_v0 = vpop.permute.xlu0 %4760  ;;  %v5354_v29 = vsel %vm5336_vm12, %v5321_v30, %v5047_v7 }
 0x457   : > { %v2438_v56 = vpop.f32.mrb[72].mxu1  ;;  %v5139_v53 = vsel %vm406_vm0, %v4335_v17, %v4761_v0 }
 0x458   : > { %v2439_v41 = vadd.f32 %v9121_v21, %v2438_v56  ;;  %v2440_v33 = vpop.f32.mrb[73].mxu1  ;;  %v5177_v9 = vsel %vm2016_vm5, %v5139_v53, %v4809_v28 }
 0x459   : > { %v2441_v38 = vpop.f32.mrb[74].mxu1  ;;  %v5095_v11 = vpop.permute.xlu1 %5094 }
 0x45a   : > { %v2442_v36 = vadd.f32 %v9121_v21, %v2441_v38  ;;  %v4953_v16 = vpop.permute.xlu0 %4952  ;;  %v5386_v37 = vsel %vm2049_vm6, %v5354_v29, %v5095_v11  ;;  %v2443_v22 = vpop.f32.mrb[75].mxu1  ;;  %v2505_v57 = vmax.f32 %v2439_v41, 0.0 }
 0x45b   : > { %6404 = vmatprep.mubr.msk.bf16.mxu0 %vm5516_vm13, %v5386_v37 }
 0x45c   : > { %v2506_v10 = vmax.f32 %v2442_v36, 0.0  ;;  %5649 = vmatmul.mubr.bf16.gmra.mrb[128].mxu0 %v5281_v51 }
 0x45d   : > { %v4811_v43 = vpop.permute.xlu1 %4810 }
 0x45e   : > { %v2527_v58 = vpack.c.bf16 %v2506_v10, %v2505_v57  ;;  %v4857_v32 = vpop.permute.xlu0 %4856 }
 0x45f   : > { %v5210_v48 = vsel %vm5190_vm11, %v5177_v9, %v4857_v32 }
 0x460   : > { %6602 = vmatprep.mubr.msk.bf16.mxu1 %vm406_vm0, %v2527_v58 }
 0x461   : > { %v5001_v15 = vpop.permute.xlu1 %5000 }
 0x462   : > { %v4905_v35 = vpop.permute.xlu0 %4904  ;;  %v5323_v63 = vsel %vm796_vm4, %v4953_v16, %v5001_v15 }
 0x463   : > { %v5242_v46 = vsel %vm2115_vm8, %v5210_v48, %v4905_v35 }
 0x464   : > { %v5284_v8 = vsel %vm5255_vm14, %v5242_v46, %v4953_v16 }
 0x465   : > { %v5049_v59 = vpop.permute.xlu1 %5048  ;;  %v2446_v18 = vpop.f32.mrb[76].mxu1 }
 0x466   : > { %v4763_v60 = vpop.permute.xlu0 %4762  ;;  %v2447_v5 = vadd.f32 %v9121_v21, %v2446_v18  ;;  %v2448_v12 = vpop.f32.mrb[77].mxu1  ;;  %v5356_v55 = vsel %vm5336_vm12, %v5323_v63, %v5049_v59 }
 0x467   : > { %v2449_v50 = vpop.f32.mrb[78].mxu1  ;;  %v5142_v54 = vsel %vm406_vm0, %v4336_v4, %v4763_v60 }
 0x468   : > { %v2450_v26 = vadd.f32 %v9121_v21, %v2449_v50  ;;  %v2451_v23 = vpop.f32.mrb[79].mxu1  ;;  %v2507_v14 = vmax.f32 %v2447_v5, 0.0  ;;  %v5179_v33 = vsel %vm2016_vm5, %v5142_v54, %v4811_v43 }
 0x469   : > { %v5097_v62 = vpop.permute.xlu1 %5096 }
 0x46a   : > { %v4955_v6 = vpop.permute.xlu0 %4954  ;;  %v5388_v42 = vsel %vm2049_vm6, %v5356_v55, %v5097_v62  ;;  %v2508_v28 = vmax.f32 %v2450_v26, 0.0 }
 0x46b   : > { %6405 = vmatprep.mubr.msk.bf16.mxu0 %vm5516_vm13, %v5388_v42 }
 0x46c   : > { %5657 = vmatmul.mubr.bf16.gmra.mrb[132].mxu0 %v5284_v8  ;;  %v2528_v25 = vpack.c.bf16 %v2508_v28, %v2507_v14 }
 0x46d   : > { %v4813_v13 = vpop.permute.xlu1 %4812 }
 0x46e   : > { %v4859_v19 = vpop.permute.xlu0 %4858  ;;  %6603 = vmatmul.mubr.msk.bf16.gmra.mrb[20].mxu1 %vm406_vm0, %v2528_v25 }
 0x46f   : > { %v5212_v3 = vsel %vm5190_vm11, %v5179_v33, %v4859_v19 }
 0x471   : > { %v5003_v2 = vpop.permute.xlu1 %5002 }
 0x472   : > { %v4907_v61 = vpop.permute.xlu0 %4906  ;;  %v5325_v36 = vsel %vm796_vm4, %v4955_v6, %v5003_v2 }
 0x473   : > { %v2454_v45 = vpop.f32.mrb[80].mxu1  ;;  %v5244_v11 = vsel %vm2115_vm8, %v5212_v3, %v4907_v61 }
 0x474   : > { %v2455_v7 = vadd.f32 %v9121_v21, %v2454_v45  ;;  %v2456_v0 = vpop.f32.mrb[81].mxu1  ;;  %v5287_v51 = vsel %vm5255_vm14, %v5244_v11, %v4955_v6 }
 0x475   : > { %v2457_v27 = vpop.f32.mrb[82].mxu1  ;;  %v5051_v40 = vpop.permute.xlu1 %5050 }
 0x476   : > { %v2458_v56 = vadd.f32 %v9121_v21, %v2457_v27  ;;  %v4765_v41 = vpop.permute.xlu0 %4764  ;;  %v2459_v30 = vpop.f32.mrb[83].mxu1  ;;  %v2509_v38 = vmax.f32 %v2455_v7, 0.0  ;;  %v5358_v37 = vsel %vm5336_vm12, %v5325_v36, %v5051_v40 }
 0x477   : > { %v5145_v17 = vsel %vm406_vm0, %v9034_v52, %v4765_v41 }
 0x478   : > { %v2510_v29 = vmax.f32 %v2458_v56, 0.0  ;;  %v5181_v18 = vsel %vm2016_vm5, %v5145_v17, %v4813_v13 }
 0x479   : > { %v5099_v22 = vpop.permute.xlu1 %5098 }
 0x47a   : > { %v2529_v16 = vpack.c.bf16 %v2510_v29, %v2509_v38  ;;  %v4957_v57 = vpop.permute.xlu0 %4956  ;;  %v5390_v10 = vsel %vm2049_vm6, %v5358_v37, %v5099_v22 }
 0x47b   : > { %6406 = vmatprep.mubr.msk.bf16.mxu0 %vm5516_vm13, %v5390_v10 }
 0x47c   : > { %6606 = vmatprep.mubr.msk.bf16.mxu1 %vm406_vm0, %v2529_v16  ;;  %5665 = vmatmul.mubr.bf16.gmra.mrb[136].mxu0 %v5287_v51 }
 0x47d   : > { %v4815_v58 = vpop.permute.xlu1 %4814 }
 0x47e   : > { %v4861_v43 = vpop.permute.xlu0 %4860 }
 0x47f   : > { %v5214_v5 = vsel %vm5190_vm11, %v5181_v18, %v4861_v43 }
 0x481   : > { %v5005_v32 = vpop.permute.xlu1 %5004  ;;  %v2462_v44 = vpop.f32.mrb[84].mxu1 }
 0x482   : > { %v4909_v34 = vpop.permute.xlu0 %4908  ;;  %v2463_v15 = vadd.f32 %v9121_v21, %v2462_v44  ;;  %v2464_v35 = vpop.f32.mrb[85].mxu1  ;;  %v5327_v46 = vsel %vm796_vm4, %v4957_v57, %v5005_v32 }
 0x483   : > { %v2465_v53 = vpop.f32.mrb[86].mxu1  ;;  %v5246_v50 = vsel %vm2115_vm8, %v5214_v5, %v4909_v34 }
 0x484   : > { %v2466_v59 = vadd.f32 %v9121_v21, %v2465_v53  ;;  %v2467_v48 = vpop.f32.mrb[87].mxu1  ;;  %v2511_v12 = vmax.f32 %v2463_v15, 0.0  ;;  %v5290_v42 = vsel %vm5255_vm14, %v5246_v50, %v4957_v57 }
 0x485   : > { %v5053_v60 = vpop.permute.xlu1 %5052 }
 0x486   : > { %v4767_v9 = vpop.permute.xlu0 %4766  ;;  %v2512_v63 = vmax.f32 %v2466_v59, 0.0  ;;  %v5360_v55 = vsel %vm5336_vm12, %v5327_v46, %v5053_v60 }
 0x487   : > { %v5148_v2 = vsel %vm406_vm0, %v9078_v24, %v4767_v9 }
 0x488   : > { %v2530_v52 = vpack.c.bf16 %v2512_v63, %v2511_v12  ;;  %v5183_v27 = vsel %vm2016_vm5, %v5148_v2, %v4815_v58  ;;  %v9334_v63 = vld [vmem:[%s9601_s8] ss:$0 sm:$0xff] }
 0x489   : > { %v5101_v26 = vpop.permute.xlu1 %5100 }
 0x48a   : > { %v4959_v62 = vpop.permute.xlu0 %4958  ;;  %v5392_v6 = vsel %vm2049_vm6, %v5360_v55, %v5101_v26  ;;  %6607 = vmatmul.mubr.msk.bf16.gmra.mrb[24].mxu1 %vm406_vm0, %v2530_v52 }
 0x48b   : > { %6407 = vmatprep.mubr.msk.bf16.mxu0 %vm5516_vm13, %v5392_v6 }
 0x48c   : > { %5673 = vmatmul.mubr.bf16.gmra.mrb[140].mxu0 %v5290_v42 }
 0x48d   : > { %v4817_v23 = vpop.permute.xlu1 %4816 }
 0x48e   : > { %v4863_v14 = vpop.permute.xlu0 %4862 }
 0x48f   : > { %v2470_v28 = vpop.f32.mrb[88].mxu1  ;;  %v5216_v56 = vsel %vm5190_vm11, %v5183_v27, %v4863_v14 }
 0x490   : > { %v2471_v8 = vadd.f32 %v9121_v21, %v2470_v28  ;;  %v2472_v25 = vpop.f32.mrb[89].mxu1 }
 0x491   : > { %v2473_v13 = vpop.f32.mrb[90].mxu1  ;;  %v5007_v39 = vpop.permute.xlu1 %5006 }
 0x492   : > { %v2474_v19 = vadd.f32 %v9121_v21, %v2473_v13  ;;  %v4911_v49 = vpop.permute.xlu0 %4910  ;;  %v2475_v4 = vpop.f32.mrb[91].mxu1  ;;  %v2513_v61 = vmax.f32 %v2471_v8, 0.0  ;;  %v5329_v40 = vsel %vm796_vm4, %v4959_v62, %v5007_v39 }
 0x493   : > { %v5248_v41 = vsel %vm2115_vm8, %v5216_v56, %v4911_v49 }
 0x494   : > { %v2514_v45 = vmax.f32 %v2474_v19, 0.0  ;;  %v5293_v38 = vsel %vm5255_vm14, %v5248_v41, %v4959_v62 }
 0x495   : > { %v5055_v7 = vpop.permute.xlu1 %5054 }
 0x496   : > { %v2531_v54 = vpack.c.bf16 %v2514_v45, %v2513_v61  ;;  %v4769_v0 = vpop.permute.xlu0 %4768  ;;  %v5362_v33 = vsel %vm5336_vm12, %v5329_v40, %v5055_v7 }
 0x497   : > { %v5151_v43 = vsel %vm406_vm0, %v9113_v47, %v4769_v0 }
 0x498   : > { %6610 = vmatprep.mubr.msk.bf16.mxu1 %vm406_vm0, %v2531_v54  ;;  %v5185_v35 = vsel %vm2016_vm5, %v5151_v43, %v4817_v23 }
 0x499   : > { %v5103_v30 = vpop.permute.xlu1 %5102 }
 0x49a   : > { %v4961_v3 = vpop.permute.xlu0 %4960  ;;  %v5394_v24 = vsel %vm2049_vm6, %v5362_v33, %v5103_v30 }
 0x49b   : > { %6408 = vmatprep.mubr.msk.bf16.mxu0 %vm5516_vm13, %v5394_v24 }
 0x49c   : > { %5681 = vmatmul.mubr.bf16.gmra.mrb[144].mxu0 %v5293_v38 }
 0x49d   : > { %v4819_v29 = vpop.permute.xlu1 %4818  ;;  %v2478_v11 = vpop.f32.mrb[92].mxu1 }
 0x49e   : > { %v4865_v36 = vpop.permute.xlu0 %4864  ;;  %v2479_v16 = vadd.f32 %v9121_v21, %v2478_v11  ;;  %v2480_v37 = vpop.f32.mrb[93].mxu1 }
 0x49f   : > { %v2481_v22 = vpop.f32.mrb[94].mxu1  ;;  %v5218_v53 = vsel %vm5190_vm11, %v5185_v35, %v4865_v36 }
 0x4a0   : > { %v2482_v57 = vadd.f32 %v9121_v21, %v2481_v22  ;;  %v2483_v58 = vpop.f32.mrb[95].mxu1  ;;  %v2515_v32 = vmax.f32 %v2479_v16, 0.0 }
 0x4a1   : > { %v5009_v10 = vpop.permute.xlu1 %5008 }
 0x4a2   : > { %v4913_v51 = vpop.permute.xlu0 %4912  ;;  %v2516_v34 = vmax.f32 %v2482_v57, 0.0  ;;  %v5331_v59 = vsel %vm796_vm4, %v4961_v3, %v5009_v10 }
 0x4a3   : > { %v5250_v21 = vsel %vm2115_vm8, %v5218_v53, %v4913_v51 }
 0x4a4   : > { %v2532_v44 = vpack.c.bf16 %v2516_v34, %v2515_v32  ;;  %v5296_v48 = vsel %vm5255_vm14, %v5250_v21, %v4961_v3 }
 0x4a5   : > { %v5057_v17 = vpop.permute.xlu1 %5056 }
 0x4a6   : > { %v4771_v15 = vpop.permute.xlu0 %4770  ;;  %6611 = vmatmul.mubr.msk.bf16.gmra.mrb[28].mxu1 %vm406_vm0, %v2532_v44  ;;  %v5364_v60 = vsel %vm5336_vm12, %v5331_v59, %v5057_v17 }
 0x4a7   : > { %v5154_v23 = vsel %vm406_vm0, %v9163_v20, %v4771_v15 }
 0x4a8   : > { %v5187_v25 = vsel %vm2016_vm5, %v5154_v23, %v4819_v29 }
 0x4a9   : > { %v5105_v9 = vpop.permute.xlu1 %5104 }
 0x4aa   : > { %v4963_v18 = vpop.permute.xlu0 %4962  ;;  %v5396_v47 = vsel %vm2049_vm6, %v5364_v60, %v5105_v9 }
 0x4ab   : > { %6409 = vmatprep.mubr.msk.bf16.mxu0 %vm5516_vm13, %v5396_v47 }
 0x4ac   : > { %5689 = vmatmul.mubr.bf16.gmra.mrb[148].mxu0 %v5296_v48 }
 0x4ad   : > { %v4821_v5 = vpop.permute.xlu1 %4820 }
 0x4ae   : > { %v4867_v12 = vpop.permute.xlu0 %4866 }
 0x4af   : > { %v5586_v46 = vpop.f32.mrb[96].mxu0  ;;  %v5220_v39 = vsel %vm5190_vm11, %v5187_v25, %v4867_v12 }
 0x4b0   : > { %v5587_v50 = vadd.f32 %v9334_v63, %v5586_v46  ;;  %v5588_v52 = vpop.f32.mrb[97].mxu0 }
 0x4b1   : > { %v5011_v55 = vpop.permute.xlu1 %5010  ;;  %v5589_v26 = vpop.f32.mrb[98].mxu0 }
 0x4b2   : > { %v5590_v62 = vadd.f32 %v9334_v63, %v5589_v26  ;;  %v4915_v6 = vpop.permute.xlu0 %4914  ;;  %v5591_v42 = vpop.f32.mrb[99].mxu0  ;;  %v5713_v14 = vmax.f32 %v5587_v50, 0.0  ;;  %v5333_v49 = vsel %vm796_vm4, %v4963_v18, %v5011_v55 }
 0x4b3   : > { %v5252_v4 = vsel %vm2115_vm8, %v5220_v39, %v4915_v6 }
 0x4b4   : > { %v5714_v28 = vmax.f32 %v5590_v62, 0.0  ;;  %v5299_v54 = vsel %vm5255_vm14, %v5252_v4, %v4963_v18 }
 0x4b5   : > { %v5059_v8 = vpop.permute.xlu1 %5058 }
 0x4b6   : > { %v5745_v13 = vpack.c.bf16 %v5714_v28, %v5713_v14  ;;  %v4773_v19 = vpop.permute.xlu0 %4772  ;;  %v5366_v2 = vsel %vm5336_vm12, %v5333_v49, %v5059_v8 }
 0x4b7   : > { %v5157_v0 = vsel %vm406_vm0, %v9186_v1, %v4773_v19 }
 0x4b8   : > { %6618 = vmatprep.mubr.msk.bf16.mxu1 %vm523_vm3, %v5745_v13  ;;  %v5189_v41 = vsel %vm2016_vm5, %v5157_v0, %v4821_v5 }
 0x4b9   : > { %v5107_v61 = vpop.permute.xlu1 %5106 }
 0x4ba   : > { %v5398_v20 = vsel %vm2049_vm6, %v5366_v2, %v5107_v61  ;;  %v4965_v45 = vpop.permute.xlu0 %4964 }
 0x4bb   : > { %6410 = vmatprep.mubr.msk.bf16.mxu0 %vm5516_vm13, %v5398_v20  ;;  %v5335_v56 = vsel %vm796_vm4, %v4965_v45, %v8971_v31 }
 0x4bc   : > { %5697 = vmatmul.mubr.bf16.gmra.mrb[152].mxu0 %v5299_v54 }
 0x4bd   : > { %v5061_v7 = vpop.permute.xlu1 %5060 }
 0x4be   : > { %v4869_v27 = vpop.permute.xlu0 %4868  ;;  %v5368_v40 = vsel %vm5336_vm12, %v5335_v56, %v5061_v7 }
 0x4bf   : > { %v5222_v30 = vsel %vm5190_vm11, %v5189_v41, %v4869_v27 }
 0x4c1   : > { %v5109_v33 = vpop.permute.xlu1 %5108 }
 0x4c2   : > { %v5400_v3 = vsel %vm2049_vm6, %v5368_v40, %v5109_v33  ;;  %v4917_v24 = vpop.permute.xlu0 %4916 }
 0x4c3   : > { %v5254_v38 = vsel %vm2115_vm8, %v5222_v30, %v4917_v24  ;;  %6411 = vmatprep.mubr.msk.bf16.mxu0 %vm5516_vm13, %v5400_v3  ;;  %v5594_v29 = vpop.f32.mrb[100].mxu0 }
 0x4c4   : > { %v5595_v1 = vadd.f32 %v9334_v63, %v5594_v29  ;;  %v5302_v36 = vsel %vm5255_vm14, %v5254_v38, %v4965_v45  ;;  %v5596_v31 = vpop.f32.mrb[101].mxu0 }
 0x4c5   : > { %5705 = vmatmul.mubr.bf16.gmra.mrb[156].mxu0 %v5302_v36  ;;  %v5597_v11 = vpop.f32.mrb[102].mxu0 }
 0x4c6   : > { %v5598_v16 = vadd.f32 %v9334_v63, %v5597_v11  ;;  %v5599_v37 = vpop.f32.mrb[103].mxu0  ;;  %v5715_v22 = vmax.f32 %v5595_v1, 0.0 }
 0x4c8   : > { %v5716_v57 = vmax.f32 %v5598_v16, 0.0 }
 0x4ca   : > { %v5746_v10 = vpack.c.bf16 %v5716_v57, %v5715_v22 }
 0x4cc   : > { %6619 = vmatmul.mubr.msk.bf16.vlgmr.msra.gmra.mrb[0].mxu1 %vm523_vm3, %v5746_v10 }
 0x4ce   : > { %v5602_v51 = vpop.f32.mrb[104].mxu0 }
 0x4cf   : > { %v5603_v58 = vadd.f32 %v9334_v63, %v5602_v51  ;;  %v5604_v43 = vpop.f32.mrb[105].mxu0 }
 0x4d0   : > { %v5605_v32 = vpop.f32.mrb[106].mxu0 }
 0x4d1   : > { %v5606_v34 = vadd.f32 %v9334_v63, %v5605_v32  ;;  %v5607_v44 = vpop.f32.mrb[107].mxu0  ;;  %v5717_v17 = vmax.f32 %v5603_v58, 0.0 }
 0x4d3   : > { %v5718_v15 = vmax.f32 %v5606_v34, 0.0 }
 0x4d5   : > { %v5747_v35 = vpack.c.bf16 %v5718_v15, %v5717_v17 }
 0x4d7   : > { %6622 = vmatprep.mubr.msk.bf16.mxu1 %vm523_vm3, %v5747_v35 }
 0x4e4   : > { %v5610_v53 = vpop.f32.mrb[108].mxu0 }
 0x4e5   : > { %v5611_v59 = vadd.f32 %v9334_v63, %v5610_v53  ;;  %v5612_v21 = vpop.f32.mrb[109].mxu0 }
 0x4e6   : > { %v5613_v60 = vpop.f32.mrb[110].mxu0 }
 0x4e7   : > { %v5614_v9 = vadd.f32 %v9334_v63, %v5613_v60  ;;  %v5615_v18 = vpop.f32.mrb[111].mxu0  ;;  %v5719_v47 = vmax.f32 %v5611_v59, 0.0 }
 0x4e9   : > { %v5720_v48 = vmax.f32 %v5614_v9, 0.0 }
 0x4eb   : > { %v5748_v5 = vpack.c.bf16 %v5720_v48, %v5719_v47 }
 0x4ed   : > { %6623 = vmatmul.mubr.msk.bf16.gmra.mrb[4].mxu1 %vm523_vm3, %v5748_v5 }
 0x4ef   : > { %v5618_v12 = vpop.f32.mrb[112].mxu0 }
 0x4f0   : > { %v5619_v46 = vadd.f32 %v9334_v63, %v5618_v12  ;;  %v5620_v50 = vpop.f32.mrb[113].mxu0 }
 0x4f1   : > { %v5621_v52 = vpop.f32.mrb[114].mxu0 }
 0x4f2   : > { %v5622_v55 = vadd.f32 %v9334_v63, %v5621_v52  ;;  %v5623_v26 = vpop.f32.mrb[115].mxu0  ;;  %v5721_v62 = vmax.f32 %v5619_v46, 0.0 }
 0x4f4   : > { %v5722_v6 = vmax.f32 %v5622_v55, 0.0 }
 0x4f6   : > { %v5749_v42 = vpack.c.bf16 %v5722_v6, %v5721_v62 }
 0x4f8   : > { %6626 = vmatprep.mubr.msk.bf16.mxu1 %vm523_vm3, %v5749_v42 }
 0x504   : > { %v5626_v23 = vpop.f32.mrb[116].mxu0 }
 0x505   : > { %v5627_v14 = vadd.f32 %v9334_v63, %v5626_v23  ;;  %v5628_v28 = vpop.f32.mrb[117].mxu0 }
 0x506   : > { %v5629_v8 = vpop.f32.mrb[118].mxu0 }
 0x507   : > { %v5630_v25 = vadd.f32 %v9334_v63, %v5629_v8  ;;  %v5631_v13 = vpop.f32.mrb[119].mxu0  ;;  %v5723_v19 = vmax.f32 %v5627_v14, 0.0 }
 0x509   : > { %v5724_v39 = vmax.f32 %v5630_v25, 0.0 }
 0x50b   : > { %v5750_v49 = vpack.c.bf16 %v5724_v39, %v5723_v19 }
 0x50d   : > { %6627 = vmatmul.mubr.msk.bf16.gmra.mrb[8].mxu1 %vm523_vm3, %v5750_v49 }
 0x50f   : > { %v5634_v4 = vpop.f32.mrb[120].mxu0 }
 0x510   : > { %v5635_v2 = vadd.f32 %v9334_v63, %v5634_v4  ;;  %v5636_v61 = vpop.f32.mrb[121].mxu0 }
 0x511   : > { %v5637_v20 = vpop.f32.mrb[122].mxu0 }
 0x512   : > { %v5638_v45 = vadd.f32 %v9334_v63, %v5637_v20  ;;  %v5639_v54 = vpop.f32.mrb[123].mxu0  ;;  %v5725_v7 = vmax.f32 %v5635_v2, 0.0 }
 0x514   : > { %v5726_v0 = vmax.f32 %v5638_v45, 0.0 }
 0x516   : > { %v5751_v27 = vpack.c.bf16 %v5726_v0, %v5725_v7 }
 0x518   : > { %6630 = vmatprep.mubr.msk.bf16.mxu1 %vm523_vm3, %v5751_v27 }
 0x520   : > { %v5642_v56 = vpop.f32.mrb[124].mxu0 }
 0x521   : > { %v5643_v40 = vadd.f32 %v9334_v63, %v5642_v56  ;;  %v5644_v41 = vpop.f32.mrb[125].mxu0 }
 0x522   : > { %v5645_v33 = vpop.f32.mrb[126].mxu0 }
 0x523   : > { %v5646_v30 = vadd.f32 %v9334_v63, %v5645_v33  ;;  %v5647_v3 = vpop.f32.mrb[127].mxu0  ;;  %v5727_v24 = vmax.f32 %v5643_v40, 0.0 }
 0x525   : > { %v5728_v38 = vmax.f32 %v5646_v30, 0.0 }
 0x527   : > { %v5752_v29 = vpack.c.bf16 %v5728_v38, %v5727_v24 }
 0x529   : > { %6631 = vmatmul.mubr.msk.bf16.gmra.mrb[12].mxu1 %vm523_vm3, %v5752_v29 }
 0x52f   : > { %v5650_v1 = vpop.f32.mrb[128].mxu0 }
 0x530   : > { %v5651_v36 = vadd.f32 %v9334_v63, %v5650_v1  ;;  %v5652_v31 = vpop.f32.mrb[129].mxu0 }
 0x531   : > { %v5653_v11 = vpop.f32.mrb[130].mxu0 }
 0x532   : > { %v5654_v16 = vadd.f32 %v9334_v63, %v5653_v11  ;;  %v5655_v37 = vpop.f32.mrb[131].mxu0  ;;  %v5729_v22 = vmax.f32 %v5651_v36, 0.0 }
 0x534   : > { %v5730_v57 = vmax.f32 %v5654_v16, 0.0 }
 0x536   : > { %v5753_v10 = vpack.c.bf16 %v5730_v57, %v5729_v22 }
 0x538   : > { %6634 = vmatprep.mubr.msk.bf16.mxu1 %vm523_vm3, %v5753_v10  ;;  %v9407_v10 = vld [vmem:[%s9603_s10] ss:$0 sm:$0xff] }
 0x53f   : > { %v5658_v51 = vpop.f32.mrb[132].mxu0 }
 0x540   : > { %v5659_v58 = vadd.f32 %v9334_v63, %v5658_v51  ;;  %v5660_v43 = vpop.f32.mrb[133].mxu0 }
 0x541   : > { %v5661_v32 = vpop.f32.mrb[134].mxu0 }
 0x542   : > { %v5662_v34 = vadd.f32 %v9334_v63, %v5661_v32  ;;  %v5663_v44 = vpop.f32.mrb[135].mxu0  ;;  %v5731_v17 = vmax.f32 %v5659_v58, 0.0 }
 0x544   : > { %v5732_v15 = vmax.f32 %v5662_v34, 0.0  ;;  %v6020_v34 = vld [vmem:[%s7138_s27 + $0x10] sm:$0xff] }
 0x546   : > { %v5754_v35 = vpack.c.bf16 %v5732_v15, %v5731_v17  ;;  %v6018_v15 = vld [vmem:[%s7138_s27] sm:$0xff] }
 0x548   : > { %6635 = vmatmul.mubr.msk.bf16.gmra.mrb[16].mxu1 %vm523_vm3, %v5754_v35 }
 0x54f   : > { %v5666_v53 = vpop.f32.mrb[136].mxu0 }
 0x550   : > { %v5667_v59 = vadd.f32 %v9334_v63, %v5666_v53  ;;  %v5668_v21 = vpop.f32.mrb[137].mxu0 }
 0x551   : > { %v5669_v60 = vpop.f32.mrb[138].mxu0  ;;  %v6021_v21 = vld [vmem:[%s7138_s27 + $0x18] sm:$0xff] }
 0x552   : > { %v5670_v9 = vadd.f32 %v9334_v63, %v5669_v60  ;;  %v5671_v18 = vpop.f32.mrb[139].mxu0  ;;  %v5733_v47 = vmax.f32 %v5667_v59, 0.0 }
 0x554   : > { %v5734_v48 = vmax.f32 %v5670_v9, 0.0 }
 0x556   : > { %v5755_v5 = vpack.c.bf16 %v5734_v48, %v5733_v47  ;;  %v6019_v47 = vld [vmem:[%s7138_s27 + $0x8] sm:$0xff] }
 0x558   : > { %6638 = vmatprep.mubr.msk.bf16.mxu1 %vm523_vm3, %v5755_v5 }
 0x55f   : > { %v5674_v12 = vpop.f32.mrb[140].mxu0 }
 0x560   : > { %v5675_v46 = vadd.f32 %v9334_v63, %v5674_v12  ;;  %v5676_v50 = vpop.f32.mrb[141].mxu0 }
 0x561   : > { %v5677_v52 = vpop.f32.mrb[142].mxu0 }
 0x562   : > { %v5678_v55 = vadd.f32 %v9334_v63, %v5677_v52  ;;  %v5679_v26 = vpop.f32.mrb[143].mxu0  ;;  %v5735_v62 = vmax.f32 %v5675_v46, 0.0 }
 0x564   : > { %v5736_v6 = vmax.f32 %v5678_v55, 0.0 }
 0x566   : > { %v5756_v42 = vpack.c.bf16 %v5736_v6, %v5735_v62 }
 0x568   : > { %6639 = vmatmul.mubr.msk.bf16.gmra.mrb[20].mxu1 %vm523_vm3, %v5756_v42 }
 0x56f   : > { %v5682_v23 = vpop.f32.mrb[144].mxu0 }
 0x570   : > { %v5683_v14 = vadd.f32 %v9334_v63, %v5682_v23  ;;  %v5684_v28 = vpop.f32.mrb[145].mxu0  ;;  %v6024_v23 = vld [vmem:[%s7138_s27 + $0x30] sm:$0xff] }
 0x571   : > { %v5685_v8 = vpop.f32.mrb[146].mxu0 }
 0x572   : > { %v5686_v25 = vadd.f32 %v9334_v63, %v5685_v8  ;;  %v5687_v13 = vpop.f32.mrb[147].mxu0  ;;  %v5737_v19 = vmax.f32 %v5683_v14, 0.0 }
 0x574   : > { %v5738_v39 = vmax.f32 %v5686_v25, 0.0  ;;  %v6022_v25 = vld [vmem:[%s7138_s27 + $0x20] sm:$0xff] }
 0x576   : > { %v5757_v49 = vpack.c.bf16 %v5738_v39, %v5737_v19 }
 0x578   : > { %6642 = vmatprep.mubr.msk.bf16.mxu1 %vm523_vm3, %v5757_v49  ;;  %v6025_v49 = vld [vmem:[%s7138_s27 + $0x38] sm:$0xff] }
 0x57f   : > { %v5690_v4 = vpop.f32.mrb[148].mxu0 }
 0x580   : > { %v5691_v2 = vadd.f32 %v9334_v63, %v5690_v4  ;;  %v5692_v61 = vpop.f32.mrb[149].mxu0 }
 0x581   : > { %v5693_v20 = vpop.f32.mrb[150].mxu0 }
 0x582   : > { %v5694_v45 = vadd.f32 %v9334_v63, %v5693_v20  ;;  %v5695_v54 = vpop.f32.mrb[151].mxu0  ;;  %v5739_v7 = vmax.f32 %v5691_v2, 0.0  ;;  %v6023_v20 = vld [vmem:[%s7138_s27 + $0x28] sm:$0xff] }
 0x584   : > { %v5740_v0 = vmax.f32 %v5694_v45, 0.0 }
 0x586   : > { %v5758_v27 = vpack.c.bf16 %v5740_v0, %v5739_v7 }
 0x588   : > { %6643 = vmatmul.mubr.msk.bf16.gmra.mrb[24].mxu1 %vm523_vm3, %v5758_v27 }
 0x58f   : > { %v5698_v56 = vpop.f32.mrb[152].mxu0 }
 0x590   : > { %v5699_v40 = vadd.f32 %v9334_v63, %v5698_v56  ;;  %v5700_v41 = vpop.f32.mrb[153].mxu0 }
 0x591   : > { %v5701_v33 = vpop.f32.mrb[154].mxu0 }
 0x592   : > { %v5702_v30 = vadd.f32 %v9334_v63, %v5701_v33  ;;  %v5703_v3 = vpop.f32.mrb[155].mxu0  ;;  %v5741_v24 = vmax.f32 %v5699_v40, 0.0 }
 0x594   : > { %v5742_v38 = vmax.f32 %v5702_v30, 0.0 }
 0x596   : > { %v5759_v29 = vpack.c.bf16 %v5742_v38, %v5741_v24  ;;  %v6028_v24 = vld [vmem:[%s7138_s27 + $0x50] sm:$0xff] }
 0x598   : > { %v5706_v1 = vpop.f32.mrb[156].mxu0  ;;  %6646 = vmatprep.mubr.msk.bf16.mxu1 %vm523_vm3, %v5759_v29 }
 0x599   : > { %v5707_v36 = vadd.f32 %v9334_v63, %v5706_v1  ;;  %v5708_v31 = vpop.f32.mrb[157].mxu0 }
 0x59a   : > { %v5709_v11 = vpop.f32.mrb[158].mxu0 }
 0x59b   : > { %v5710_v16 = vadd.f32 %v9334_v63, %v5709_v11  ;;  %v5711_v37 = vpop.f32.mrb[159].mxu0  ;;  %v5743_v22 = vmax.f32 %v5707_v36, 0.0  ;;  %v6026_v36 = vld [vmem:[%s7138_s27 + $0x40] sm:$0xff] }
 0x59c   : > { %v6029_v37 = vld [vmem:[%s7138_s27 + $0x58] sm:$0xff] }
 0x59d   : > { %v5744_v57 = vmax.f32 %v5710_v16, 0.0 }
 0x59f   : > { %v5760_v51 = vpack.c.bf16 %v5744_v57, %v5743_v22  ;;  %v6620_v58 = vpop.f32.mrb[0].mxu1 }
 0x5a0   : > { %v6650_v43 = vadd.f32 %v6620_v58, %v9407_v10  ;;  %v5859_v32 = vpop.f32.mrb[1].mxu1  ;;  %v6027_v58 = vld [vmem:[%s7138_s27 + $0x48] sm:$0xff] }
 0x5a1   : > { %6647 = vmatmul.mubr.msk.bf16.gmra.mrb[28].mxu1 %vm523_vm3, %v5760_v51  ;;  %v6651_v63 = vadd.f32 %v9407_v10, %v5859_v32  ;;  %v6621_v44 = vpop.f32.mrb[2].mxu1 }
 0x5a2   : > { %v6052_v17 = vmul.f32 0.1, %v6650_v43  ;;  %v6652_v35 = vadd.f32 %v6621_v44, %v9407_v10  ;;  %v5862_v53 = vpop.f32.mrb[3].mxu1 }
 0x5a3   : > { %v6050_v59 = vmul.f32 0.1, %v6651_v63  ;;  %v6653_v60 = vadd.f32 %v9407_v10, %v5862_v53 }
 0x5a4   : > { %v6084_v9 = vadd.f32 %v6052_v17, %v6020_v34  ;;  %v6053_v18 = vmul.f32 0.1, %v6652_v35 }
 0x5a5   : > { %v6082_v48 = vadd.f32 %v6050_v59, %v6018_v15  ;;  %v6051_v5 = vmul.f32 0.1, %v6653_v60  ;;  %v6032_v60 = vld [vmem:[%s7138_s27 + $0x70] sm:$0xff] }
 0x5a6   : > { %v6116_v12 = vmax.f32 %v6084_v9, 0.0  ;;  %v6085_v46 = vadd.f32 %v6053_v18, %v6021_v21 }
 0x5a7   : > { %v6114_v50 = vmax.f32 %v6082_v48, 0.0  ;;  %v6083_v52 = vadd.f32 %v6051_v5, %v6019_v47  ;;  %v6030_v48 = vld [vmem:[%s7138_s27 + $0x60] sm:$0xff] }
 0x5a8   : > { %6148 = vst.msk [vmem:[%s9420_s28 + $0x10] sm:$0xff] %vm523_vm3, %v6116_v12  ;;  %v6117_v55 = vmax.f32 %v6085_v46, 0.0 }
 0x5a9   : > { %6146 = vst.msk [vmem:[%s9420_s28] sm:$0xff] %vm523_vm3, %v6114_v50  ;;  %v6115_v26 = vmax.f32 %v6083_v52, 0.0  ;;  %v6033_v50 = vld [vmem:[%s7138_s27 + $0x78] sm:$0xff] }
 0x5aa   : > { %6149 = vst.msk [vmem:[%s9420_s28 + $0x18] sm:$0xff] %vm523_vm3, %v6117_v55 }
 0x5ab   : > { %6147 = vst.msk [vmem:[%s9420_s28 + $0x8] sm:$0xff] %vm523_vm3, %v6115_v26 }
 0x5c0   : > { %v6624_v62 = vpop.f32.mrb[4].mxu1 }
 0x5c1   : > { %v6654_v6 = vadd.f32 %v6624_v62, %v9407_v10  ;;  %v5875_v42 = vpop.f32.mrb[5].mxu1  ;;  %v6031_v62 = vld [vmem:[%s7138_s27 + $0x68] sm:$0xff] }
 0x5c2   : > { %v6655_v14 = vadd.f32 %v9407_v10, %v5875_v42  ;;  %v6625_v28 = vpop.f32.mrb[6].mxu1 }
 0x5c3   : > { %v6056_v8 = vmul.f32 0.1, %v6654_v6  ;;  %v6656_v13 = vadd.f32 %v6625_v28, %v9407_v10  ;;  %v5878_v19 = vpop.f32.mrb[7].mxu1 }
 0x5c4   : > { %v6054_v39 = vmul.f32 0.1, %v6655_v14  ;;  %v6657_v4 = vadd.f32 %v9407_v10, %v5878_v19 }
 0x5c5   : > { %v6088_v2 = vadd.f32 %v6056_v8, %v6024_v23  ;;  %v6057_v61 = vmul.f32 0.1, %v6656_v13 }
 0x5c6   : > { %v6086_v45 = vadd.f32 %v6054_v39, %v6022_v25  ;;  %v6055_v54 = vmul.f32 0.1, %v6657_v4  ;;  %v6036_v4 = vld [vmem:[%s7138_s27 + $0x90] sm:$0xff] }
 0x5c7   : > { %v6120_v7 = vmax.f32 %v6088_v2, 0.0  ;;  %v6089_v0 = vadd.f32 %v6057_v61, %v6025_v49 }
 0x5c8   : > { %v6118_v27 = vmax.f32 %v6086_v45, 0.0  ;;  %v6087_v56 = vadd.f32 %v6055_v54, %v6023_v20  ;;  %v6034_v45 = vld [vmem:[%s7138_s27 + $0x80] sm:$0xff] }
 0x5c9   : > { %6152 = vst.msk [vmem:[%s9420_s28 + $0x30] sm:$0xff] %vm523_vm3, %v6120_v7  ;;  %v6121_v40 = vmax.f32 %v6089_v0, 0.0 }
 0x5ca   : > { %6150 = vst.msk [vmem:[%s9420_s28 + $0x20] sm:$0xff] %vm523_vm3, %v6118_v27  ;;  %v6119_v41 = vmax.f32 %v6087_v56, 0.0  ;;  %v6037_v27 = vld [vmem:[%s7138_s27 + $0x98] sm:$0xff] }
 0x5cb   : > { %6153 = vst.msk [vmem:[%s9420_s28 + $0x38] sm:$0xff] %vm523_vm3, %v6121_v40 }
 0x5cc   : > { %6151 = vst.msk [vmem:[%s9420_s28 + $0x28] sm:$0xff] %vm523_vm3, %v6119_v41 }
 0x5e0   : > { %v6628_v33 = vpop.f32.mrb[8].mxu1 }
 0x5e1   : > { %v6658_v30 = vadd.f32 %v6628_v33, %v9407_v10  ;;  %v5891_v3 = vpop.f32.mrb[9].mxu1  ;;  %v6035_v33 = vld [vmem:[%s7138_s27 + $0x88] sm:$0xff] }
 0x5e2   : > { %v6659_v38 = vadd.f32 %v9407_v10, %v5891_v3  ;;  %v6629_v29 = vpop.f32.mrb[10].mxu1 }
 0x5e3   : > { %v6060_v1 = vmul.f32 0.1, %v6658_v30  ;;  %v6660_v31 = vadd.f32 %v6629_v29, %v9407_v10  ;;  %v5894_v11 = vpop.f32.mrb[11].mxu1 }
 0x5e4   : > { %v6058_v16 = vmul.f32 0.1, %v6659_v38  ;;  %v6661_v22 = vadd.f32 %v9407_v10, %v5894_v11 }
 0x5e5   : > { %v6092_v57 = vadd.f32 %v6060_v1, %v6028_v24  ;;  %v6061_v51 = vmul.f32 0.1, %v6660_v31 }
 0x5e6   : > { %v6090_v43 = vadd.f32 %v6058_v16, %v6026_v36  ;;  %v6059_v32 = vmul.f32 0.1, %v6661_v22  ;;  %v6040_v22 = vld [vmem:[%s7138_s27 + $0xb0] sm:$0xff] }
 0x5e7   : > { %v6124_v34 = vmax.f32 %v6092_v57, 0.0  ;;  %v6093_v63 = vadd.f32 %v6061_v51, %v6029_v37 }
 0x5e8   : > { %v6122_v44 = vmax.f32 %v6090_v43, 0.0  ;;  %v6091_v17 = vadd.f32 %v6059_v32, %v6027_v58  ;;  %v6038_v43 = vld [vmem:[%s7138_s27 + $0xa0] sm:$0xff] }
 0x5e9   : > { %6156 = vst.msk [vmem:[%s9420_s28 + $0x50] sm:$0xff] %vm523_vm3, %v6124_v34  ;;  %v6125_v15 = vmax.f32 %v6093_v63, 0.0 }
 0x5ea   : > { %6154 = vst.msk [vmem:[%s9420_s28 + $0x40] sm:$0xff] %vm523_vm3, %v6122_v44  ;;  %v6123_v35 = vmax.f32 %v6091_v17, 0.0  ;;  %v6041_v44 = vld [vmem:[%s7138_s27 + $0xb8] sm:$0xff] }
 0x5eb   : > { %6157 = vst.msk [vmem:[%s9420_s28 + $0x58] sm:$0xff] %vm523_vm3, %v6125_v15 }
 0x5ec   : > { %6155 = vst.msk [vmem:[%s9420_s28 + $0x48] sm:$0xff] %vm523_vm3, %v6123_v35 }
 0x5fc   : > { %v6632_v53 = vpop.f32.mrb[12].mxu1 }
 0x5fd   : > { %v6662_v59 = vadd.f32 %v6632_v53, %v9407_v10  ;;  %v5907_v21 = vpop.f32.mrb[13].mxu1  ;;  %v6039_v53 = vld [vmem:[%s7138_s27 + $0xa8] sm:$0xff] }
 0x5fe   : > { %v6663_v9 = vadd.f32 %v9407_v10, %v5907_v21  ;;  %v6633_v18 = vpop.f32.mrb[14].mxu1 }
 0x5ff   : > { %v6064_v47 = vmul.f32 0.1, %v6662_v59  ;;  %v6664_v5 = vadd.f32 %v6633_v18, %v9407_v10  ;;  %v5910_v12 = vpop.f32.mrb[15].mxu1 }
 0x600   : > { %v6062_v46 = vmul.f32 0.1, %v6663_v9  ;;  %v6665_v52 = vadd.f32 %v9407_v10, %v5910_v12 }
 0x601   : > { %v6096_v55 = vadd.f32 %v6064_v47, %v6032_v60  ;;  %v6065_v26 = vmul.f32 0.1, %v6664_v5 }
 0x602   : > { %v6094_v6 = vadd.f32 %v6062_v46, %v6030_v48  ;;  %v6063_v42 = vmul.f32 0.1, %v6665_v52  ;;  %v6044_v52 = vld [vmem:[%s7138_s27 + $0xd0] sm:$0xff] }
 0x603   : > { %v6128_v23 = vmax.f32 %v6096_v55, 0.0  ;;  %v6097_v14 = vadd.f32 %v6065_v26, %v6033_v50 }
 0x604   : > { %v6126_v28 = vmax.f32 %v6094_v6, 0.0  ;;  %v6095_v8 = vadd.f32 %v6063_v42, %v6031_v62  ;;  %v6042_v6 = vld [vmem:[%s7138_s27 + $0xc0] sm:$0xff] }
 0x605   : > { %6160 = vst.msk [vmem:[%s9420_s28 + $0x70] sm:$0xff] %vm523_vm3, %v6128_v23  ;;  %v6129_v25 = vmax.f32 %v6097_v14, 0.0 }
 0x606   : > { %6158 = vst.msk [vmem:[%s9420_s28 + $0x60] sm:$0xff] %vm523_vm3, %v6126_v28  ;;  %v6127_v13 = vmax.f32 %v6095_v8, 0.0  ;;  %v6045_v28 = vld [vmem:[%s7138_s27 + $0xd8] sm:$0xff] }
 0x607   : > { %6161 = vst.msk [vmem:[%s9420_s28 + $0x78] sm:$0xff] %vm523_vm3, %v6129_v25 }
 0x608   : > { %6159 = vst.msk [vmem:[%s9420_s28 + $0x68] sm:$0xff] %vm523_vm3, %v6127_v13 }
 0x61b   : > { %v6636_v19 = vpop.f32.mrb[16].mxu1 }
 0x61c   : > { %v6666_v39 = vadd.f32 %v6636_v19, %v9407_v10  ;;  %v5923_v49 = vpop.f32.mrb[17].mxu1  ;;  %v6043_v19 = vld [vmem:[%s7138_s27 + $0xc8] sm:$0xff] }
 0x61d   : > { %v6667_v2 = vadd.f32 %v9407_v10, %v5923_v49  ;;  %v6637_v61 = vpop.f32.mrb[18].mxu1 }
 0x61e   : > { %v6068_v20 = vmul.f32 0.1, %v6666_v39  ;;  %v6668_v54 = vadd.f32 %v6637_v61, %v9407_v10  ;;  %v5926_v7 = vpop.f32.mrb[19].mxu1 }
 0x61f   : > { %v6066_v0 = vmul.f32 0.1, %v6667_v2  ;;  %v6669_v56 = vadd.f32 %v9407_v10, %v5926_v7 }
 0x620   : > { %v6100_v40 = vadd.f32 %v6068_v20, %v6036_v4  ;;  %v6069_v41 = vmul.f32 0.1, %v6668_v54 }
 0x621   : > { %v6098_v30 = vadd.f32 %v6066_v0, %v6034_v45  ;;  %v6067_v3 = vmul.f32 0.1, %v6669_v56  ;;  %v6048_v56 = vld [vmem:[%s7138_s27 + $0xf0] sm:$0xff] }
 0x622   : > { %v6132_v24 = vmax.f32 %v6100_v40, 0.0  ;;  %v6101_v38 = vadd.f32 %v6069_v41, %v6037_v27 }
 0x623   : > { %v6130_v29 = vmax.f32 %v6098_v30, 0.0  ;;  %v6099_v1 = vadd.f32 %v6067_v3, %v6035_v33  ;;  %v6046_v30 = vld [vmem:[%s7138_s27 + $0xe0] sm:$0xff] }
 0x624   : > { %6164 = vst.msk [vmem:[%s9420_s28 + $0x90] sm:$0xff] %vm523_vm3, %v6132_v24  ;;  %v6133_v36 = vmax.f32 %v6101_v38, 0.0 }
 0x625   : > { %6162 = vst.msk [vmem:[%s9420_s28 + $0x80] sm:$0xff] %vm523_vm3, %v6130_v29  ;;  %v6131_v31 = vmax.f32 %v6099_v1, 0.0  ;;  %v6049_v29 = vld [vmem:[%s7138_s27 + $0xf8] sm:$0xff] }
 0x626   : > { %6165 = vst.msk [vmem:[%s9420_s28 + $0x98] sm:$0xff] %vm523_vm3, %v6133_v36 }
 0x627   : > { %6163 = vst.msk [vmem:[%s9420_s28 + $0x88] sm:$0xff] %vm523_vm3, %v6131_v31 }
 0x63b   : > { %v6640_v11 = vpop.f32.mrb[20].mxu1 }
 0x63c   : > { %v6670_v16 = vadd.f32 %v6640_v11, %v9407_v10  ;;  %v5939_v37 = vpop.f32.mrb[21].mxu1  ;;  %v6047_v11 = vld [vmem:[%s7138_s27 + $0xe8] sm:$0xff]  ;;  %s6881_s27 = scalar_lea.vmem %s9543_s26, 4096 }
 0x63d   : > { %v6671_v57 = vadd.f32 %v9407_v10, %v5939_v37  ;;  %v6641_v51 = vpop.f32.mrb[22].mxu1  ;;  %p6882_p6 = scmp.ne.s32.totalorder %s9543_s26, %s6881_s27  ;;  %p6889_p10 = scmp.lt.s32.totalorder %s6887_s12, %s6881_s27 }
 0x63e   : > { %v6072_v58 = vmul.f32 0.1, %v6670_v16  ;;  %v6672_v32 = vadd.f32 %v6641_v51, %v9407_v10  ;;  %v5942_v34 = vpop.f32.mrb[23].mxu1 }
 0x63f   : > { %v6070_v63 = vmul.f32 0.1, %v6671_v57  ;;  %v6673_v17 = vadd.f32 %v9407_v10, %v5942_v34  ;;  %p6883_p12 = pnand %p6882_p6, %p9743_p11  ;;  %p6890_p0 = por %p6889_p10, %p6888_p8 }
 0x640   : > { %v6104_v15 = vadd.f32 %v6072_v58, %v6040_v22  ;;  %v6073_v35 = vmul.f32 0.1, %v6672_v32 }
 0x641   : > { %v6102_v59 = vadd.f32 %v6070_v63, %v6038_v43  ;;  %v6071_v21 = vmul.f32 0.1, %v6673_v17  ;;  %p6884_p13 = pneg %p6883_p12 }
 0x642   : > { %v6136_v60 = vmax.f32 %v6104_v15, 0.0  ;;  %v6105_v9 = vadd.f32 %v6073_v35, %v6041_v44 }
 0x643   : > { %v6134_v18 = vmax.f32 %v6102_v59, 0.0  ;;  %v6103_v47 = vadd.f32 %v6071_v21, %v6039_v53  ;;  %p6891_p2 = pnand %p6890_p0, %p6884_p13 }
 0x644   : > { %6168 = vst.msk [vmem:[%s9420_s28 + $0xb0] sm:$0xff] %vm523_vm3, %v6136_v60  ;;  %v6137_v48 = vmax.f32 %v6105_v9, 0.0 }
 0x645   : > { %6166 = vst.msk [vmem:[%s9420_s28 + $0xa0] sm:$0xff] %vm523_vm3, %v6134_v18  ;;  %v6135_v5 = vmax.f32 %v6103_v47, 0.0 }
 0x646   : > { %6169 = vst.msk [vmem:[%s9420_s28 + $0xb8] sm:$0xff] %vm523_vm3, %v6137_v48 }
 0x647   : > { %6167 = vst.msk [vmem:[%s9420_s28 + $0xa8] sm:$0xff] %vm523_vm3, %v6135_v5 }
 0x65b   : > { %v6644_v12 = vpop.f32.mrb[24].mxu1 }
 0x65c   : > { %v6674_v46 = vadd.f32 %v6644_v12, %v9407_v10  ;;  %v5955_v50 = vpop.f32.mrb[25].mxu1 }
 0x65d   : > { %v6675_v55 = vadd.f32 %v9407_v10, %v5955_v50  ;;  %v6645_v26 = vpop.f32.mrb[26].mxu1 }
 0x65e   : > { %v6076_v62 = vmul.f32 0.1, %v6674_v46  ;;  %v6676_v42 = vadd.f32 %v6645_v26, %v9407_v10  ;;  %v5958_v23 = vpop.f32.mrb[27].mxu1 }
 0x65f   : > { %v6074_v14 = vmul.f32 0.1, %v6675_v55  ;;  %v6677_v8 = vadd.f32 %v9407_v10, %v5958_v23 }
 0x660   : > { %v6108_v25 = vadd.f32 %v6076_v62, %v6044_v52  ;;  %v6077_v13 = vmul.f32 0.1, %v6676_v42 }
 0x661   : > { %v6106_v39 = vadd.f32 %v6074_v14, %v6042_v6  ;;  %v6075_v49 = vmul.f32 0.1, %v6677_v8 }
 0x662   : > { %v6140_v4 = vmax.f32 %v6108_v25, 0.0  ;;  %v6109_v2 = vadd.f32 %v6077_v13, %v6045_v28 }
 0x663   : > { %v6138_v61 = vmax.f32 %v6106_v39, 0.0  ;;  %v6107_v20 = vadd.f32 %v6075_v49, %v6043_v19 }
 0x664   : > { %6172 = vst.msk [vmem:[%s9420_s28 + $0xd0] sm:$0xff] %vm523_vm3, %v6140_v4  ;;  %v6141_v45 = vmax.f32 %v6109_v2, 0.0 }
 0x665   : > { %6170 = vst.msk [vmem:[%s9420_s28 + $0xc0] sm:$0xff] %vm523_vm3, %v6138_v61  ;;  %v6139_v54 = vmax.f32 %v6107_v20, 0.0 }
 0x666   : > { %6173 = vst.msk [vmem:[%s9420_s28 + $0xd8] sm:$0xff] %vm523_vm3, %v6141_v45 }
 0x667   : > { %6171 = vst.msk [vmem:[%s9420_s28 + $0xc8] sm:$0xff] %vm523_vm3, %v6139_v54 }
 0x674   : > { %v6648_v7 = vpop.f32.mrb[28].mxu1 }
 0x675   : > { %v6678_v0 = vadd.f32 %v6648_v7, %v9407_v10  ;;  %v5971_v27 = vpop.f32.mrb[29].mxu1 }
 0x676   : > { %v6679_v40 = vadd.f32 %v9407_v10, %v5971_v27  ;;  %v6649_v41 = vpop.f32.mrb[30].mxu1 }
 0x677   : > { %v6080_v33 = vmul.f32 0.1, %v6678_v0  ;;  %v6680_v3 = vadd.f32 %v6649_v41, %v9407_v10  ;;  %v5974_v24 = vpop.f32.mrb[31].mxu1 }
 0x678   : > { %v6078_v38 = vmul.f32 0.1, %v6679_v40  ;;  %v6681_v1 = vadd.f32 %v9407_v10, %v5974_v24 }
 0x679   : > { %v6112_v36 = vadd.f32 %v6080_v33, %v6048_v56  ;;  %v6081_v31 = vmul.f32 0.1, %v6680_v3 }
 0x67a   : > { %v6110_v16 = vadd.f32 %v6078_v38, %v6046_v30  ;;  %v6079_v37 = vmul.f32 0.1, %v6681_v1 }
 0x67b   : > { %v6144_v22 = vmax.f32 %v6112_v36, 0.0  ;;  %v6113_v57 = vadd.f32 %v6081_v31, %v6049_v29 }
 0x67c   : > { %v6142_v51 = vmax.f32 %v6110_v16, 0.0  ;;  %v6111_v58 = vadd.f32 %v6079_v37, %v6047_v11 }
 0x67d   : > { %6176 = vst.msk [vmem:[%s9420_s28 + $0xf0] sm:$0xff] %vm523_vm3, %v6144_v22  ;;  %v6145_v43 = vmax.f32 %v6113_v57, 0.0 }
 0x67e   : > { %6174 = vst.msk [vmem:[%s9420_s28 + $0xe0] sm:$0xff] %vm523_vm3, %v6142_v51  ;;  %v6143_v10 = vmax.f32 %v6111_v58, 0.0 }
 0x67f   : > { %6177 = vst.msk [vmem:[%s9420_s28 + $0xf8] sm:$0xff] %vm523_vm3, %v6145_v43 }
 0x680   : > { %6175 = vst.msk [vmem:[%s9420_s28 + $0xe8] sm:$0xff] %vm523_vm3, %v6143_v10 }
 0x681   : > { %6894 = shalt.err (!%p6891_p2)
}
 0x682   : > { %s6895_s15 = scalar_lea.hbm %s9541_s14, 4096  ;;  %s6899_s25 = scalar_lea.hbm %s9604_s11, 8192 }
 0x683   : > { %p6896_p4 = scmp.ne.s32.totalorder %s9541_s14, %s6895_s15  ;;  %p6900_p9 = scmp.lt.u32.totalorder %s9541_s14, %s9604_s11 }
 0x684   : > { %p6901_p1 = scmp.lt.u32.totalorder %s6899_s25, %s6895_s15  ;;  %p6903_p6 = scmp.lt.u32.totalorder %s6895_s15, %s9541_s14 }
 0x685   : > { %p6897_p5 = pnand %p6896_p4, %p9743_p11 }
 0x686   : > { %p6902_p3 = por %p6901_p1, %p6900_p9 }
 0x687   : > { %p6898_p7 = pneg %p6897_p5 }
 0x688   : > { %p6904_p12 = por %p6903_p6, %p6902_p3 }
 0x68a   : > { %p6905_p13 = pnand %p6904_p12, %p6898_p7 }
 0x68c   : > { %6908 = shalt.err (!%p6905_p13)
}
 0x68d   : > { %s6966_s27 = smov 128   ;;  %s6967_s16 = smov 8  }
 0x68e   : > { %6749 = dma.vmem_to_hbm [thread:$0]  (%p9743_p11), %s9543_s26, 4096, %s9541_s14, %s6179_s21, %s6966_s27, %s6966_s27, %s6967_s16  }
 0x68f PF: > { %s6207_s12 = sand.u32 1, %s6935_s17   ;;  %p9744_p8 = scmp.ne.s32.totalorder %s9638_s30, 0 }
 0x690   : > { %p9745_p10 = scmp.ge.s32.totalorder %s6947_s20, 2  ;;  %s6208_s15 = scalar_lea.sflag [#allocation5], %s6207_s12 }
 0x692   : > { %p6756_p0 = pnand %p9745_p10, %p9744_p8 }
 0x694   : > { %6930 = dma.done.wait (!%p6756_p0), %s6208_s15, 4096  }
 0x695   : > { %6932 = vsyncadd (!%p6756_p0), %s6208_s15, 4294963200  ;;  %s9746_s28 = sld [smem:[#allocation9_spill]]  ;;  %s9747_s19 = sld [smem:[#allocation10_spill]] }
 0x696   : > { %p24_p2 = scmp.ge.s32.totalorder %s7053_s23, 4   ;;  %s9748_s17 = smov %s6939_s18 }
 0x697   : > { %s9750_s20 = smov %s7053_s23 }
 0x698   :  { %26 = sbr.rel (!%p24_p2) target bundleno = 5 (0x5), region = 112 }
 0x69b   : > { %s9749_s18 = smov %s9746_s28 }
 0x69f   :  { %6213 = vsyncpa [#allocation4], 1 }
 0x6a0   :  { %6215 = vsyncpa [#allocation4 + $0x1], 1 }
 0x6a1   :  { %6216 = vsyncpa [#allocation5], 1 }
 0x6a2   :  { %6218 = vsyncpa [#allocation5 + $0x1], 1 }

</bundles_post_ra>
